<compile_context>
chip_gen: v7x
topology: tpu7x:2x2x1
jax: 0.10.0
libtpu: 0.0.40
codegen_flags: <defaults>
</compile_context>

<pallas_src>
import math
import functools

import jax
import jax.numpy as jnp
from jax.experimental import pallas as pl
from jax.experimental.pallas import tpu as pltpu

PAD_ID = 0
EPS = 1e-5
NEG = jnp.float32(-1e9)          # stands in for -inf; identical softmax for non-degenerate rows
INV_SQRT2 = 1.0 / math.sqrt(2.0)


# ---------------- in-kernel helpers ----------------

def _rms(x, w):
    """RMSNorm: x (R, D) f32, w (1, D)."""
    ms = jnp.mean(x * x, axis=-1, keepdims=True)
    return w * x * jax.lax.rsqrt(ms + EPS)


def _gelu(x):
    """Exact erf-based GELU (torch.nn.GELU default)."""
    return 0.5 * x * (1.0 + jax.lax.erf(x * INV_SQRT2))


def _mha(q, k, v, bias, n_heads, scale):
    """All-heads attention on VMEM-resident rows.

    q: (T, D), k/v: (S, D), bias: (T, S) additive mask. Heads are separated via
    full-width head masks (no lane slicing / transposes); per-head contexts land
    in their own columns, so the sum over heads is already the concatenated ctx.
    """
    T, D = q.shape
    dh = D // n_heads
    lane = jax.lax.broadcasted_iota(jnp.int32, (1, D), 1)
    ctx = jnp.zeros((T, D), jnp.float32)
    for h in range(n_heads):
        msk = ((lane >= h * dh) & (lane < (h + 1) * dh)).astype(jnp.float32)  # (1, D)
        s = jax.lax.dot_general(q * msk, k, (((1,), (1,)), ((), ())),
                                preferred_element_type=jnp.float32) * scale
        s = s + bias
        m = jnp.max(s, axis=-1, keepdims=True)
        p = jnp.exp(s - m)
        p = p / jnp.sum(p, axis=-1, keepdims=True)
        ctx = ctx + jnp.dot(p, v * msk, preferred_element_type=jnp.float32)
    return ctx


# ---------------- fused kernels ----------------

def _enc_block_kernel(x_ref, bias_ref,
                      n1_ref, wqkv_ref, bqkv_ref, wo_ref, bo_ref,
                      n2_ref, w1_ref, b1_ref, w2_ref, b2_ref,
                      o_ref, *, n_heads, scale):
    """One encoder layer per grid step; residual stream carried in o_ref."""
    l = pl.program_id(1)

    @pl.when(l == 0)
    def _():
        o_ref[...] = x_ref[...]

    x = o_ref[...].astype(jnp.float32)                       # (S, D)
    D = x.shape[-1]

    # --- self-attention sub-block ---
    h = _rms(x, n1_ref[...])
    qkv = jnp.dot(h, wqkv_ref[...], preferred_element_type=jnp.float32) + bqkv_ref[...]
    attn = _mha(qkv[:, 0:D], qkv[:, D:2 * D], qkv[:, 2 * D:3 * D],
                bias_ref[...], n_heads, scale)
    x = x + jnp.dot(attn, wo_ref[...], preferred_element_type=jnp.float32) + bo_ref[...]

    # --- MLP sub-block ---
    h = _rms(x, n2_ref[...])
    hh = jnp.dot(h, w1_ref[...], preferred_element_type=jnp.float32) + b1_ref[...]
    g = _gelu(hh)
    x = x + jnp.dot(g, w2_ref[...], preferred_element_type=jnp.float32) + b2_ref[...]

    o_ref[...] = x.astype(o_ref.dtype)


def _dec_block_kernel(y_ref, enc_ref, sbias_ref, cbias_ref,
                      n1_ref, swqkv_ref, sbqkv_ref, swo_ref, sbo_ref,
                      n2_ref, cwq_ref, cbq_ref, cwkv_ref, cbkv_ref, cwo_ref, cbo_ref,
                      n3_ref, w1_ref, b1_ref, w2_ref, b2_ref,
                      o_ref, *, n_heads, scale):
    """One decoder layer per grid step; residual stream carried in o_ref."""
    l = pl.program_id(1)

    @pl.when(l == 0)
    def _():
        o_ref[...] = y_ref[...]

    y = o_ref[...].astype(jnp.float32)                       # (T, D)
    enc = enc_ref[...].astype(jnp.float32)                   # (S, D)
    D = y.shape[-1]

    # --- masked self-attention ---
    h = _rms(y, n1_ref[...])
    qkv = jnp.dot(h, swqkv_ref[...], preferred_element_type=jnp.float32) + sbqkv_ref[...]
    attn = _mha(qkv[:, 0:D], qkv[:, D:2 * D], qkv[:, 2 * D:3 * D],
                sbias_ref[...], n_heads, scale)
    y = y + jnp.dot(attn, swo_ref[...], preferred_element_type=jnp.float32) + sbo_ref[...]

    # --- cross-attention (fused KV projection of enc_out) ---
    h = _rms(y, n2_ref[...])
    q = jnp.dot(h, cwq_ref[...], preferred_element_type=jnp.float32) + cbq_ref[...]
    kv = jnp.dot(enc, cwkv_ref[...], preferred_element_type=jnp.float32) + cbkv_ref[...]
    attn = _mha(q, kv[:, 0:D], kv[:, D:2 * D], cbias_ref[...], n_heads, scale)
    y = y + jnp.dot(attn, cwo_ref[...], preferred_element_type=jnp.float32) + cbo_ref[...]

    # --- MLP ---
    h = _rms(y, n3_ref[...])
    hh = jnp.dot(h, w1_ref[...], preferred_element_type=jnp.float32) + b1_ref[...]
    g = _gelu(hh)
    y = y + jnp.dot(g, w2_ref[...], preferred_element_type=jnp.float32) + b2_ref[...]

    o_ref[...] = y.astype(o_ref.dtype)


def _final_kernel(y_ref, w_ref, emb_ref, o_ref):
    """final RMSNorm + tied lm_head (contract D axis of untransposed (V, D) table)."""
    yn = _rms(y_ref[...].astype(jnp.float32), w_ref[...])
    o_ref[...] = jax.lax.dot_general(
        yn, emb_ref[...].astype(jnp.float32),
        (((1,), (1,)), ((), ())),
        preferred_element_type=jnp.float32).astype(o_ref.dtype)


# ---------------- pallas_call wrappers ----------------

def encoder_stack(x, enc_bias, p, *, n_heads):
    B, S, D = x.shape
    L = p["wqkv"].shape[0]
    scale = 1.0 / math.sqrt(D // n_heads)

    def wspec(a):  # per-layer weight tile, indexed by the layer grid axis
        return pl.BlockSpec((None,) + a.shape[1:], lambda b, l: (l, 0, 0))

    return pl.pallas_call(
        functools.partial(_enc_block_kernel, n_heads=n_heads, scale=scale),
        out_shape=jax.ShapeDtypeStruct((B, S, D), x.dtype),
        grid=(B, L),
        in_specs=[
            pl.BlockSpec((None, S, D), lambda b, l: (b, 0, 0)),   # x (used at l==0)
            pl.BlockSpec((None, S, S), lambda b, l: (b, 0, 0)),   # additive key-pad bias
            wspec(p["norm1"]),
            wspec(p["wqkv"]), wspec(p["bqkv"]),
            wspec(p["wo"]), wspec(p["bo"]),
            wspec(p["norm2"]),
            wspec(p["w1"]), wspec(p["b1"]),
            wspec(p["w2"]), wspec(p["b2"]),
        ],
        out_specs=pl.BlockSpec((None, S, D), lambda b, l: (b, 0, 0)),  # resident over l
        compiler_params=pltpu.CompilerParams(
            dimension_semantics=("parallel", "arbitrary")),
    )(x, enc_bias,
      p["norm1"], p["wqkv"], p["bqkv"], p["wo"], p["bo"],
      p["norm2"], p["w1"], p["b1"], p["w2"], p["b2"])


def decoder_stack(y, enc_out, self_bias, cross_bias, p, *, n_heads):
    B, T, D = y.shape
    S = enc_out.shape[1]
    L = p["s_wqkv"].shape[0]
    scale = 1.0 / math.sqrt(D // n_heads)

    def wspec(a):
        return pl.BlockSpec((None,) + a.shape[1:], lambda b, l: (l, 0, 0))

    return pl.pallas_call(
        functools.partial(_dec_block_kernel, n_heads=n_heads, scale=scale),
        out_shape=jax.ShapeDtypeStruct((B, T, D), y.dtype),
        grid=(B, L),
        in_specs=[
            pl.BlockSpec((None, T, D), lambda b, l: (b, 0, 0)),   # y (used at l==0)
            pl.BlockSpec((None, S, D), lambda b, l: (b, 0, 0)),   # enc_out (resident)
            pl.BlockSpec((None, T, T), lambda b, l: (b, 0, 0)),   # causal+pad bias
            pl.BlockSpec((None, T, S), lambda b, l: (b, 0, 0)),   # cross key-pad bias
            wspec(p["norm1"]),
            wspec(p["s_wqkv"]), wspec(p["s_bqkv"]),
            wspec(p["s_wo"]), wspec(p["s_bo"]),
            wspec(p["norm2"]),
            wspec(p["c_wq"]), wspec(p["c_bq"]),
            wspec(p["c_wkv"]), wspec(p["c_bkv"]),
            wspec(p["c_wo"]), wspec(p["c_bo"]),
            wspec(p["norm3"]),
            wspec(p["w1"]), wspec(p["b1"]),
            wspec(p["w2"]), wspec(p["b2"]),
        ],
        out_specs=pl.BlockSpec((None, T, D), lambda b, l: (b, 0, 0)),  # resident over l
        compiler_params=pltpu.CompilerParams(
            dimension_semantics=("parallel", "arbitrary")),
    )(y, enc_out, self_bias, cross_bias,
      p["norm1"],
      p["s_wqkv"], p["s_bqkv"], p["s_wo"], p["s_bo"],
      p["norm2"],
      p["c_wq"], p["c_bq"], p["c_wkv"], p["c_bkv"], p["c_wo"], p["c_bo"],
      p["norm3"],
      p["w1"], p["b1"], p["w2"], p["b2"])


def lm_head(y, norm_w, emb):
    B, T, D = y.shape
    V = emb.shape[0]
    y2 = y.reshape(B * T, D)
    out = pl.pallas_call(
        _final_kernel,
        out_shape=jax.ShapeDtypeStruct((B * T, V), y.dtype),
        grid=(1,),
        in_specs=[pl.BlockSpec((B * T, D), lambda i: (0, 0)),
                  pl.BlockSpec((1, D), lambda i: (0, 0)),
                  pl.BlockSpec((V, D), lambda i: (0, 0))],
        out_specs=pl.BlockSpec((B * T, V), lambda i: (0, 0)),
    )(y2, norm_w.reshape(1, D), emb)
    return out.reshape(B, T, V)


# ---------------- model ----------------

def forward(params, src, tgt_in, *, n_heads):
    B, S = src.shape
    _, T = tgt_in.shape

    # additive attention biases (float32); combined with minimum so values stay >= NEG
    src_pad_bias = jnp.where(src == PAD_ID, NEG, 0.0).astype(jnp.float32)      # (B, S)
    tgt_pad_bias = jnp.where(tgt_in == PAD_ID, NEG, 0.0).astype(jnp.float32)   # (B, T)

    enc_bias = jnp.broadcast_to(src_pad_bias[:, None, :], (B, S, S))
    causal = jnp.where(jnp.arange(T)[:, None] < jnp.arange(T)[None, :],
                       NEG, 0.0).astype(jnp.float32)
    dec_self_bias = jnp.minimum(jnp.broadcast_to(causal[None, :, :], (B, T, T)),
                                jnp.broadcast_to(tgt_pad_bias[:, None, :], (B, T, T)))
    cross_bias = jnp.broadcast_to(src_pad_bias[:, None, :], (B, T, S))

    # ----- encoder -----
    x = params["src_emb"][src] + params["pos_emb"][:, :S]
    enc_out = encoder_stack(x, enc_bias, params["encoder"], n_heads=n_heads)

    # ----- decoder -----
    y = params["tgt_emb"][tgt_in] + params["pos_emb"][:, :T]
    y = decoder_stack(y, enc_out, dec_self_bias, cross_bias,
                      params["decoder"], n_heads=n_heads)

    # ----- final norm + tied lm_head (no transpose of the embedding table) -----
    return lm_head(y, params["final_norm_w"], params["tgt_emb"])


def init_params(key, vocab, D, n_enc, n_dec, max_len):
    keys = iter(jax.random.split(key, 64))

    def nrm(shape, scale=0.02):
        return (scale * jax.random.normal(next(keys), shape)).astype(jnp.float32)

    def zeros(shape):
        return jnp.zeros(shape, jnp.float32)

    def ones(shape):
        return jnp.ones(shape, jnp.float32)

    encoder = dict(
        norm1=ones((n_enc, 1, D)),
        wqkv=nrm((n_enc, D, 3 * D)), bqkv=zeros((n_enc, 1, 3 * D)),
        wo=nrm((n_enc, D, D)), bo=zeros((n_enc, 1, D)),
        norm2=ones((n_enc, 1, D)),
        w1=nrm((n_enc, D, 4 * D)), b1=zeros((n_enc, 1, 4 * D)),
        w2=nrm((n_enc, 4 * D, D)), b2=zeros((n_enc, 1, D)),
    )
    decoder = dict(
        norm1=ones((n_dec, 1, D)),
        s_wqkv=nrm((n_dec, D, 3 * D)), s_bqkv=zeros((n_dec, 1, 3 * D)),
        s_wo=nrm((n_dec, D, D)), s_bo=zeros((n_dec, 1, D)),
        norm2=ones((n_dec, 1, D)),
        c_wq=nrm((n_dec, D, D)), c_bq=zeros((n_dec, 1, D)),
        c_wkv=nrm((n_dec, D, 2 * D)), c_bkv=zeros((n_dec, 1, 2 * D)),
        c_wo=nrm((n_dec, D, D)), c_bo=zeros((n_dec, 1, D)),
        norm3=ones((n_dec, 1, D)),
        w1=nrm((n_dec, D, 4 * D)), b1=zeros((n_dec, 1, 4 * D)),
        w2=nrm((n_dec, 4 * D, D)), b2=zeros((n_dec, 1, D)),
    )

    src_emb = nrm((vocab, D)).at[PAD_ID].set(0.0)   # padding_idx=0
    tgt_emb = nrm((vocab, D)).at[PAD_ID].set(0.0)

    return dict(
        src_emb=src_emb,
        tgt_emb=tgt_emb,
        pos_emb=nrm((1, max_len, D)),
        encoder=encoder,
        decoder=decoder,
        final_norm_w=jnp.ones((D,), jnp.float32),
    )


if __name__ == "__main__":
    VOCAB, D, H = 64, 32, 4
    N_ENC, N_DEC = 2, 2
    MAX_LEN = 16
    B, S, T = 2, 8, 8

    key = jax.random.PRNGKey(0)
    kp, ks, kt = jax.random.split(key, 3)
    params = init_params(kp, VOCAB, D, N_ENC, N_DEC, MAX_LEN)

    src = jax.random.randint(ks, (B, S), 1, VOCAB, dtype=jnp.int32)
    tgt_in = jax.random.randint(kt, (B, T), 1, VOCAB, dtype=jnp.int32)
    src = src.at[:, -2:].set(PAD_ID)     # some padding at the tail
    tgt_in = tgt_in.at[:, -1].set(PAD_ID)

    fwd = jax.jit(functools.partial(forward, n_heads=H))
    logits = fwd(params, src, tgt_in)
    jax.block_until_ready(logits)

    assert logits.shape == (B, T, VOCAB)
    assert bool(jnp.all(jnp.isfinite(logits)))
    print("KERNEL_OK")
</pallas_src>

<mosaic_0001>
module attributes {stable_mosaic.version = 11 : i64} {
  func.func @_final_kernel(%arg0: i32, %arg1: memref<16x32xf32, #tpu.memory_space<vmem>>, %arg2: memref<1x32xf32, #tpu.memory_space<vmem>>, %arg3: memref<64x32xf32, #tpu.memory_space<vmem>>, %arg4: memref<16x64xf32, #tpu.memory_space<vmem>>) attributes {dimension_semantics = [#tpu.dimension_semantics<arbitrary>], iteration_bounds = array<i64: 1>, scalar_prefetch = 0 : i64, scratch_operands = 0 : i64, tpu.core_type = #tpu.core_type<tc>, window_params = [{pipeline_mode = #tpu.pipeline_mode<synchronous>, transform_indices = @transform_0, window_bounds = array<i64: 16, 32>}, {pipeline_mode = #tpu.pipeline_mode<synchronous>, transform_indices = @transform_1, window_bounds = array<i64: 1, 32>}, {pipeline_mode = #tpu.pipeline_mode<synchronous>, transform_indices = @transform_2, window_bounds = array<i64: 64, 32>}, {pipeline_mode = #tpu.pipeline_mode<synchronous>, transform_indices = @transform_3, window_bounds = array<i64: 16, 64>}]} {
    %c0 = arith.constant 0 : index
    %c0_0 = arith.constant 0 : index
    %0 = vector.load %arg1[%c0, %c0_0] : memref<16x32xf32, #tpu.memory_space<vmem>>, vector<16x32xf32>
    %c0_1 = arith.constant 0 : index
    %c0_2 = arith.constant 0 : index
    %1 = vector.load %arg2[%c0_1, %c0_2] : memref<1x32xf32, #tpu.memory_space<vmem>>, vector<1x32xf32>
    %2 = arith.mulf %0, %0 : vector<16x32xf32>
    %cst = arith.constant dense<0.000000e+00> : vector<16xf32>
    %3 = vector.multi_reduction <add>, %2, %cst [1] : vector<16x32xf32> to vector<16xf32>
    %4 = vector.shape_cast %3 : vector<16xf32> to vector<16x1xf32>
    %cst_3 = arith.constant 3.200000e+01 : f32
    %5 = vector.broadcast %cst_3 : f32 to vector<16x1xf32>
    %6 = arith.divf %4, %5 : vector<16x1xf32>
    %7 = vector.broadcast %1 : vector<1x32xf32> to vector<16x32xf32>
    %8 = arith.mulf %7, %0 : vector<16x32xf32>
    %cst_4 = arith.constant 9.99999974E-6 : f32
    %9 = vector.broadcast %cst_4 : f32 to vector<16x1xf32>
    %10 = arith.addf %6, %9 : vector<16x1xf32>
    %11 = math.rsqrt %10 : vector<16x1xf32>
    %12 = vector.broadcast %11 : vector<16x1xf32> to vector<16x32xf32>
    %13 = arith.mulf %8, %12 : vector<16x32xf32>
    %c0_5 = arith.constant 0 : index
    %c0_6 = arith.constant 0 : index
    %14 = vector.load %arg3[%c0_5, %c0_6] : memref<64x32xf32, #tpu.memory_space<vmem>>, vector<64x32xf32>
    %cst_7 = arith.constant dense<0.000000e+00> : vector<16x64xf32>
    %15 = tpu.matmul %13, %14, %cst_7 {dimension_numbers = #tpu.dot_dimension_numbers<[1], [1], [0], [0], [0, 0, 1, 0], [], []>} : vector<16x32xf32>, vector<64x32xf32>, vector<16x64xf32> -> vector<16x64xf32>
    %c0_8 = arith.constant 0 : index
    %c0_9 = arith.constant 0 : index
    %16 = vector.load %arg4[%c0_8, %c0_9] : memref<16x64xf32, #tpu.memory_space<vmem>>, vector<16x64xf32>
    tpu.vector_store %arg4[%c0_8, %c0_9], %15 {strides = array<i32>} : memref<16x64xf32, #tpu.memory_space<vmem>>, vector<16x64xf32>,
    return
  }
  func.func @transform_0(%arg0: i32) -> (i32, i32) {
    %c0_i32 = arith.constant 0 : i32
    %c0_i32_0 = arith.constant 0 : i32
    %c0_i32_1 = arith.constant 0 : i32
    return %c0_i32, %c0_i32_0 : i32, i32
  }
  func.func @transform_1(%arg0: i32) -> (i32, i32) {
    %c0_i32 = arith.constant 0 : i32
    %c0_i32_0 = arith.constant 0 : i32
    %c0_i32_1 = arith.constant 0 : i32
    return %c0_i32, %c0_i32_0 : i32, i32
  }
  func.func @transform_2(%arg0: i32) -> (i32, i32) {
    %c0_i32 = arith.constant 0 : i32
    %c0_i32_0 = arith.constant 0 : i32
    %c0_i32_1 = arith.constant 0 : i32
    return %c0_i32, %c0_i32_0 : i32, i32
  }
  func.func @transform_3(%arg0: i32) -> (i32, i32) {
    %c0_i32 = arith.constant 0 : i32
    %c0_i32_0 = arith.constant 0 : i32
    %c0_i32_1 = arith.constant 0 : i32
    return %c0_i32, %c0_i32_0 : i32, i32
  }
}

module attributes {stable_mosaic.version = 11 : i64} {
  func.func @_enc_block_kernel(%arg0: i32, %arg1: i32, %arg2: memref<1x8x32xf32, #tpu.memory_space<vmem>>, %arg3: memref<1x8x8xf32, #tpu.memory_space<vmem>>, %arg4: memref<1x1x32xf32, #tpu.memory_space<vmem>>, %arg5: memref<1x32x96xf32, #tpu.memory_space<vmem>>, %arg6: memref<1x1x96xf32, #tpu.memory_space<vmem>>, %arg7: memref<1x32x32xf32, #tpu.memory_space<vmem>>, %arg8: memref<1x1x32xf32, #tpu.memory_space<vmem>>, %arg9: memref<1x1x32xf32, #tpu.memory_space<vmem>>, %arg10: memref<1x32x128xf32, #tpu.memory_space<vmem>>, %arg11: memref<1x1x128xf32, #tpu.memory_space<vmem>>, %arg12: memref<1x128x32xf32, #tpu.memory_space<vmem>>, %arg13: memref<1x1x32xf32, #tpu.memory_space<vmem>>, %arg14: memref<1x8x32xf32, #tpu.memory_space<vmem>>) attributes {dimension_semantics = [#tpu.dimension_semantics<parallel>, #tpu.dimension_semantics<arbitrary>], iteration_bounds = array<i64: 2, 2>, scalar_prefetch = 0 : i64, scratch_operands = 0 : i64, tpu.core_type = #tpu.core_type<tc>, window_params = [{transform_indices = @transform_0, window_bounds = array<i64: 1, 8, 32>}, {transform_indices = @transform_1, window_bounds = array<i64: 1, 8, 8>}, {transform_indices = @transform_2, window_bounds = array<i64: 1, 1, 32>}, {transform_indices = @transform_3, window_bounds = array<i64: 1, 32, 96>}, {transform_indices = @transform_4, window_bounds = array<i64: 1, 1, 96>}, {transform_indices = @transform_5, window_bounds = array<i64: 1, 32, 32>}, {transform_indices = @transform_6, window_bounds = array<i64: 1, 1, 32>}, {transform_indices = @transform_7, window_bounds = array<i64: 1, 1, 32>}, {transform_indices = @transform_8, window_bounds = array<i64: 1, 32, 128>}, {transform_indices = @transform_9, window_bounds = array<i64: 1, 1, 128>}, {transform_indices = @transform_10, window_bounds = array<i64: 1, 128, 32>}, {transform_indices = @transform_11, window_bounds = array<i64: 1, 1, 32>}, {transform_indices = @transform_12, window_bounds = array<i64: 1, 8, 32>}]} {
    %c0_i32 = arith.constant 0 : i32
    %0 = arith.cmpi eq, %arg1, %c0_i32 : i32
    %1 = arith.extui %0 : i1 to i32
    %c0_i32_0 = arith.constant 0 : i32
    %2 = arith.cmpi ne, %1, %c0_i32_0 : i32
    scf.if %2 {
      %c0_76 = arith.constant 0 : index
      %c0_77 = arith.constant 0 : index
      %c0_78 = arith.constant 0 : index
      %185 = vector.load %arg2[%c0_76, %c0_77, %c0_78] : memref<1x8x32xf32, #tpu.memory_space<vmem>>, vector<1x8x32xf32>
      %186 = vector.shape_cast %185 : vector<1x8x32xf32> to vector<8x32xf32>
      %c0_79 = arith.constant 0 : index
      %c0_80 = arith.constant 0 : index
      %c0_81 = arith.constant 0 : index
      %187 = vector.load %arg14[%c0_79, %c0_80, %c0_81] : memref<1x8x32xf32, #tpu.memory_space<vmem>>, vector<1x8x32xf32>
      %188 = vector.shape_cast %187 : vector<1x8x32xf32> to vector<8x32xf32>
      %189 = vector.shape_cast %186 : vector<8x32xf32> to vector<1x8x32xf32>
      tpu.vector_store %arg14[%c0_79, %c0_80, %c0_81], %189 {strides = array<i32>} : memref<1x8x32xf32, #tpu.memory_space<vmem>>, vector<1x8x32xf32>,
    } else {
    }
    %c0 = arith.constant 0 : index
    %c0_1 = arith.constant 0 : index
    %c0_2 = arith.constant 0 : index
    %3 = vector.load %arg14[%c0, %c0_1, %c0_2] : memref<1x8x32xf32, #tpu.memory_space<vmem>>, vector<1x8x32xf32>
    %4 = vector.shape_cast %3 : vector<1x8x32xf32> to vector<8x32xf32>
    %c0_3 = arith.constant 0 : index
    %c0_4 = arith.constant 0 : index
    %c0_5 = arith.constant 0 : index
    %5 = vector.load %arg4[%c0_3, %c0_4, %c0_5] : memref<1x1x32xf32, #tpu.memory_space<vmem>>, vector<1x1x32xf32>
    %6 = vector.shape_cast %5 : vector<1x1x32xf32> to vector<1x32xf32>
    %7 = arith.mulf %4, %4 : vector<8x32xf32>
    %cst = arith.constant dense<0.000000e+00> : vector<8xf32>
    %8 = vector.multi_reduction <add>, %7, %cst [1] : vector<8x32xf32> to vector<8xf32>
    %9 = vector.shape_cast %8 : vector<8xf32> to vector<8x1xf32>
    %cst_6 = arith.constant 3.200000e+01 : f32
    %10 = vector.broadcast %cst_6 : f32 to vector<8x1xf32>
    %11 = arith.divf %9, %10 : vector<8x1xf32>
    %12 = vector.broadcast %6 : vector<1x32xf32> to vector<8x32xf32>
    %13 = arith.mulf %12, %4 : vector<8x32xf32>
    %cst_7 = arith.constant 9.99999974E-6 : f32
    %14 = vector.broadcast %cst_7 : f32 to vector<8x1xf32>
    %15 = arith.addf %11, %14 : vector<8x1xf32>
    %16 = math.rsqrt %15 : vector<8x1xf32>
    %17 = vector.broadcast %16 : vector<8x1xf32> to vector<8x32xf32>
    %18 = arith.mulf %13, %17 : vector<8x32xf32>
    %c0_8 = arith.constant 0 : index
    %c0_9 = arith.constant 0 : index
    %c0_10 = arith.constant 0 : index
    %19 = vector.load %arg5[%c0_8, %c0_9, %c0_10] : memref<1x32x96xf32, #tpu.memory_space<vmem>>, vector<1x32x96xf32>
    %20 = vector.shape_cast %19 : vector<1x32x96xf32> to vector<32x96xf32>
    %cst_11 = arith.constant dense<0.000000e+00> : vector<8x96xf32>
    %21 = tpu.matmul %18, %20, %cst_11 {dimension_numbers = #tpu.dot_dimension_numbers<[1], [0], [0], [1], [0, 0, 1, 1], [], []>} : vector<8x32xf32>, vector<32x96xf32>, vector<8x96xf32> -> vector<8x96xf32>
    %c0_12 = arith.constant 0 : index
    %c0_13 = arith.constant 0 : index
    %c0_14 = arith.constant 0 : index
    %22 = vector.load %arg6[%c0_12, %c0_13, %c0_14] : memref<1x1x96xf32, #tpu.memory_space<vmem>>, vector<1x1x96xf32>
    %23 = vector.shape_cast %22 : vector<1x1x96xf32> to vector<1x96xf32>
    %24 = vector.broadcast %23 : vector<1x96xf32> to vector<8x96xf32>
    %25 = arith.addf %21, %24 : vector<8x96xf32>
    %26 = vector.extract_strided_slice %25 {offsets = [0, 0], sizes = [8, 32], strides = [1, 1]} : vector<8x96xf32> to vector<8x32xf32>
    %27 = vector.extract_strided_slice %25 {offsets = [0, 32], sizes = [8, 32], strides = [1, 1]} : vector<8x96xf32> to vector<8x32xf32>
    %28 = vector.extract_strided_slice %25 {offsets = [0, 64], sizes = [8, 32], strides = [1, 1]} : vector<8x96xf32> to vector<8x32xf32>
    %c0_15 = arith.constant 0 : index
    %c0_16 = arith.constant 0 : index
    %c0_17 = arith.constant 0 : index
    %29 = vector.load %arg3[%c0_15, %c0_16, %c0_17] : memref<1x8x8xf32, #tpu.memory_space<vmem>>, vector<1x8x8xf32>
    %30 = vector.shape_cast %29 : vector<1x8x8xf32> to vector<8x8xf32>
    %31 = tpu.iota {dimensions = array<i32: 1>} : vector<1x32xi32>
    %cst_18 = arith.constant 0.000000e+00 : f32
    %32 = vector.broadcast %cst_18 : f32 to vector<8x32xf32>
    %c0_i32_19 = arith.constant 0 : i32
    %33 = vector.broadcast %c0_i32_19 : i32 to vector<1x32xi32>
    %34 = arith.cmpi sge, %31, %33 : vector<1x32xi32>
    %c8_i32 = arith.constant 8 : i32
    %35 = vector.broadcast %c8_i32 : i32 to vector<1x32xi32>
    %36 = arith.cmpi slt, %31, %35 : vector<1x32xi32>
    %37 = arith.andi %34, %36 : vector<1x32xi1>
    %38 = arith.extui %37 : vector<1x32xi1> to vector<1x32xi32>
    %39 = arith.sitofp %38 : vector<1x32xi32> to vector<1x32xf32>
    %40 = vector.broadcast %39 : vector<1x32xf32> to vector<8x32xf32>
    %41 = arith.mulf %26, %40 : vector<8x32xf32>
    %cst_20 = arith.constant dense<0.000000e+00> : vector<8x8xf32>
    %42 = tpu.matmul %41, %27, %cst_20 {dimension_numbers = #tpu.dot_dimension_numbers<[1], [1], [0], [0], [0, 0, 1, 0], [], []>} : vector<8x32xf32>, vector<8x32xf32>, vector<8x8xf32> -> vector<8x8xf32>
    %cst_21 = arith.constant 0.353553385 : f32
    %43 = vector.broadcast %cst_21 : f32 to vector<8x8xf32>
    %44 = arith.mulf %42, %43 : vector<8x8xf32>
    %45 = arith.addf %44, %30 : vector<8x8xf32>
    %cst_22 = arith.constant dense<0xFF800000> : vector<8xf32>
    %46 = vector.multi_reduction <maximumf>, %45, %cst_22 [1] : vector<8x8xf32> to vector<8xf32>
    %47 = vector.shape_cast %46 : vector<8xf32> to vector<8x1xf32>
    %48 = vector.broadcast %47 : vector<8x1xf32> to vector<8x8xf32>
    %49 = arith.subf %45, %48 : vector<8x8xf32>
    %50 = math.exp %49 : vector<8x8xf32>
    %cst_23 = arith.constant dense<0.000000e+00> : vector<8xf32>
    %51 = vector.multi_reduction <add>, %50, %cst_23 [1] : vector<8x8xf32> to vector<8xf32>
    %52 = vector.shape_cast %51 : vector<8xf32> to vector<8x1xf32>
    %53 = vector.broadcast %52 : vector<8x1xf32> to vector<8x8xf32>
    %54 = arith.divf %50, %53 : vector<8x8xf32>
    %55 = vector.broadcast %39 : vector<1x32xf32> to vector<8x32xf32>
    %56 = arith.mulf %28, %55 : vector<8x32xf32>
    %cst_24 = arith.constant dense<0.000000e+00> : vector<8x32xf32>
    %57 = tpu.matmul %54, %56, %cst_24 {dimension_numbers = #tpu.dot_dimension_numbers<[1], [0], [0], [1], [0, 0, 1, 1], [], []>} : vector<8x8xf32>, vector<8x32xf32>, vector<8x32xf32> -> vector<8x32xf32>
    %58 = arith.addf %32, %57 : vector<8x32xf32>
    %c8_i32_25 = arith.constant 8 : i32
    %59 = vector.broadcast %c8_i32_25 : i32 to vector<1x32xi32>
    %60 = arith.cmpi sge, %31, %59 : vector<1x32xi32>
    %c16_i32 = arith.constant 16 : i32
    %61 = vector.broadcast %c16_i32 : i32 to vector<1x32xi32>
    %62 = arith.cmpi slt, %31, %61 : vector<1x32xi32>
    %63 = arith.andi %60, %62 : vector<1x32xi1>
    %64 = arith.extui %63 : vector<1x32xi1> to vector<1x32xi32>
    %65 = arith.sitofp %64 : vector<1x32xi32> to vector<1x32xf32>
    %66 = vector.broadcast %65 : vector<1x32xf32> to vector<8x32xf32>
    %67 = arith.mulf %26, %66 : vector<8x32xf32>
    %cst_26 = arith.constant dense<0.000000e+00> : vector<8x8xf32>
    %68 = tpu.matmul %67, %27, %cst_26 {dimension_numbers = #tpu.dot_dimension_numbers<[1], [1], [0], [0], [0, 0, 1, 0], [], []>} : vector<8x32xf32>, vector<8x32xf32>, vector<8x8xf32> -> vector<8x8xf32>
    %cst_27 = arith.constant 0.353553385 : f32
    %69 = vector.broadcast %cst_27 : f32 to vector<8x8xf32>
    %70 = arith.mulf %68, %69 : vector<8x8xf32>
    %71 = arith.addf %70, %30 : vector<8x8xf32>
    %cst_28 = arith.constant dense<0xFF800000> : vector<8xf32>
    %72 = vector.multi_reduction <maximumf>, %71, %cst_28 [1] : vector<8x8xf32> to vector<8xf32>
    %73 = vector.shape_cast %72 : vector<8xf32> to vector<8x1xf32>
    %74 = vector.broadcast %73 : vector<8x1xf32> to vector<8x8xf32>
    %75 = arith.subf %71, %74 : vector<8x8xf32>
    %76 = math.exp %75 : vector<8x8xf32>
    %cst_29 = arith.constant dense<0.000000e+00> : vector<8xf32>
    %77 = vector.multi_reduction <add>, %76, %cst_29 [1] : vector<8x8xf32> to vector<8xf32>
    %78 = vector.shape_cast %77 : vector<8xf32> to vector<8x1xf32>
    %79 = vector.broadcast %78 : vector<8x1xf32> to vector<8x8xf32>
    %80 = arith.divf %76, %79 : vector<8x8xf32>
    %81 = vector.broadcast %65 : vector<1x32xf32> to vector<8x32xf32>
    %82 = arith.mulf %28, %81 : vector<8x32xf32>
    %cst_30 = arith.constant dense<0.000000e+00> : vector<8x32xf32>
    %83 = tpu.matmul %80, %82, %cst_30 {dimension_numbers = #tpu.dot_dimension_numbers<[1], [0], [0], [1], [0, 0, 1, 1], [], []>} : vector<8x8xf32>, vector<8x32xf32>, vector<8x32xf32> -> vector<8x32xf32>
    %84 = arith.addf %58, %83 : vector<8x32xf32>
    %c16_i32_31 = arith.constant 16 : i32
    %85 = vector.broadcast %c16_i32_31 : i32 to vector<1x32xi32>
    %86 = arith.cmpi sge, %31, %85 : vector<1x32xi32>
    %c24_i32 = arith.constant 24 : i32
    %87 = vector.broadcast %c24_i32 : i32 to vector<1x32xi32>
    %88 = arith.cmpi slt, %31, %87 : vector<1x32xi32>
    %89 = arith.andi %86, %88 : vector<1x32xi1>
    %90 = arith.extui %89 : vector<1x32xi1> to vector<1x32xi32>
    %91 = arith.sitofp %90 : vector<1x32xi32> to vector<1x32xf32>
    %92 = vector.broadcast %91 : vector<1x32xf32> to vector<8x32xf32>
    %93 = arith.mulf %26, %92 : vector<8x32xf32>
    %cst_32 = arith.constant dense<0.000000e+00> : vector<8x8xf32>
    %94 = tpu.matmul %93, %27, %cst_32 {dimension_numbers = #tpu.dot_dimension_numbers<[1], [1], [0], [0], [0, 0, 1, 0], [], []>} : vector<8x32xf32>, vector<8x32xf32>, vector<8x8xf32> -> vector<8x8xf32>
    %cst_33 = arith.constant 0.353553385 : f32
    %95 = vector.broadcast %cst_33 : f32 to vector<8x8xf32>
    %96 = arith.mulf %94, %95 : vector<8x8xf32>
    %97 = arith.addf %96, %30 : vector<8x8xf32>
    %cst_34 = arith.constant dense<0xFF800000> : vector<8xf32>
    %98 = vector.multi_reduction <maximumf>, %97, %cst_34 [1] : vector<8x8xf32> to vector<8xf32>
    %99 = vector.shape_cast %98 : vector<8xf32> to vector<8x1xf32>
    %100 = vector.broadcast %99 : vector<8x1xf32> to vector<8x8xf32>
    %101 = arith.subf %97, %100 : vector<8x8xf32>
    %102 = math.exp %101 : vector<8x8xf32>
    %cst_35 = arith.constant dense<0.000000e+00> : vector<8xf32>
    %103 = vector.multi_reduction <add>, %102, %cst_35 [1] : vector<8x8xf32> to vector<8xf32>
    %104 = vector.shape_cast %103 : vector<8xf32> to vector<8x1xf32>
    %105 = vector.broadcast %104 : vector<8x1xf32> to vector<8x8xf32>
    %106 = arith.divf %102, %105 : vector<8x8xf32>
    %107 = vector.broadcast %91 : vector<1x32xf32> to vector<8x32xf32>
    %108 = arith.mulf %28, %107 : vector<8x32xf32>
    %cst_36 = arith.constant dense<0.000000e+00> : vector<8x32xf32>
    %109 = tpu.matmul %106, %108, %cst_36 {dimension_numbers = #tpu.dot_dimension_numbers<[1], [0], [0], [1], [0, 0, 1, 1], [], []>} : vector<8x8xf32>, vector<8x32xf32>, vector<8x32xf32> -> vector<8x32xf32>
    %110 = arith.addf %84, %109 : vector<8x32xf32>
    %c24_i32_37 = arith.constant 24 : i32
    %111 = vector.broadcast %c24_i32_37 : i32 to vector<1x32xi32>
    %112 = arith.cmpi sge, %31, %111 : vector<1x32xi32>
    %c32_i32 = arith.constant 32 : i32
    %113 = vector.broadcast %c32_i32 : i32 to vector<1x32xi32>
    %114 = arith.cmpi slt, %31, %113 : vector<1x32xi32>
    %115 = arith.andi %112, %114 : vector<1x32xi1>
    %116 = arith.extui %115 : vector<1x32xi1> to vector<1x32xi32>
    %117 = arith.sitofp %116 : vector<1x32xi32> to vector<1x32xf32>
    %118 = vector.broadcast %117 : vector<1x32xf32> to vector<8x32xf32>
    %119 = arith.mulf %26, %118 : vector<8x32xf32>
    %cst_38 = arith.constant dense<0.000000e+00> : vector<8x8xf32>
    %120 = tpu.matmul %119, %27, %cst_38 {dimension_numbers = #tpu.dot_dimension_numbers<[1], [1], [0], [0], [0, 0, 1, 0], [], []>} : vector<8x32xf32>, vector<8x32xf32>, vector<8x8xf32> -> vector<8x8xf32>
    %cst_39 = arith.constant 0.353553385 : f32
    %121 = vector.broadcast %cst_39 : f32 to vector<8x8xf32>
    %122 = arith.mulf %120, %121 : vector<8x8xf32>
    %123 = arith.addf %122, %30 : vector<8x8xf32>
    %cst_40 = arith.constant dense<0xFF800000> : vector<8xf32>
    %124 = vector.multi_reduction <maximumf>, %123, %cst_40 [1] : vector<8x8xf32> to vector<8xf32>
    %125 = vector.shape_cast %124 : vector<8xf32> to vector<8x1xf32>
    %126 = vector.broadcast %125 : vector<8x1xf32> to vector<8x8xf32>
    %127 = arith.subf %123, %126 : vector<8x8xf32>
    %128 = math.exp %127 : vector<8x8xf32>
    %cst_41 = arith.constant dense<0.000000e+00> : vector<8xf32>
    %129 = vector.multi_reduction <add>, %128, %cst_41 [1] : vector<8x8xf32> to vector<8xf32>
    %130 = vector.shape_cast %129 : vector<8xf32> to vector<8x1xf32>
    %131 = vector.broadcast %130 : vector<8x1xf32> to vector<8x8xf32>
    %132 = arith.divf %128, %131 : vector<8x8xf32>
    %133 = vector.broadcast %117 : vector<1x32xf32> to vector<8x32xf32>
    %134 = arith.mulf %28, %133 : vector<8x32xf32>
    %cst_42 = arith.constant dense<0.000000e+00> : vector<8x32xf32>
    %135 = tpu.matmul %132, %134, %cst_42 {dimension_numbers = #tpu.dot_dimension_numbers<[1], [0], [0], [1], [0, 0, 1, 1], [], []>} : vector<8x8xf32>, vector<8x32xf32>, vector<8x32xf32> -> vector<8x32xf32>
    %136 = arith.addf %110, %135 : vector<8x32xf32>
    %c0_43 = arith.constant 0 : index
    %c0_44 = arith.constant 0 : index
    %c0_45 = arith.constant 0 : index
    %137 = vector.load %arg7[%c0_43, %c0_44, %c0_45] : memref<1x32x32xf32, #tpu.memory_space<vmem>>, vector<1x32x32xf32>
    %138 = vector.shape_cast %137 : vector<1x32x32xf32> to vector<32x32xf32>
    %cst_46 = arith.constant dense<0.000000e+00> : vector<8x32xf32>
    %139 = tpu.matmul %136, %138, %cst_46 {dimension_numbers = #tpu.dot_dimension_numbers<[1], [0], [0], [1], [0, 0, 1, 1], [], []>} : vector<8x32xf32>, vector<32x32xf32>, vector<8x32xf32> -> vector<8x32xf32>
    %140 = arith.addf %4, %139 : vector<8x32xf32>
    %c0_47 = arith.constant 0 : index
    %c0_48 = arith.constant 0 : index
    %c0_49 = arith.constant 0 : index
    %141 = vector.load %arg8[%c0_47, %c0_48, %c0_49] : memref<1x1x32xf32, #tpu.memory_space<vmem>>, vector<1x1x32xf32>
    %142 = vector.shape_cast %141 : vector<1x1x32xf32> to vector<1x32xf32>
    %143 = vector.broadcast %142 : vector<1x32xf32> to vector<8x32xf32>
    %144 = arith.addf %140, %143 : vector<8x32xf32>
    %c0_50 = arith.constant 0 : index
    %c0_51 = arith.constant 0 : index
    %c0_52 = arith.constant 0 : index
    %145 = vector.load %arg9[%c0_50, %c0_51, %c0_52] : memref<1x1x32xf32, #tpu.memory_space<vmem>>, vector<1x1x32xf32>
    %146 = vector.shape_cast %145 : vector<1x1x32xf32> to vector<1x32xf32>
    %147 = arith.mulf %144, %144 : vector<8x32xf32>
    %cst_53 = arith.constant dense<0.000000e+00> : vector<8xf32>
    %148 = vector.multi_reduction <add>, %147, %cst_53 [1] : vector<8x32xf32> to vector<8xf32>
    %149 = vector.shape_cast %148 : vector<8xf32> to vector<8x1xf32>
    %cst_54 = arith.constant 3.200000e+01 : f32
    %150 = vector.broadcast %cst_54 : f32 to vector<8x1xf32>
    %151 = arith.divf %149, %150 : vector<8x1xf32>
    %152 = vector.broadcast %146 : vector<1x32xf32> to vector<8x32xf32>
    %153 = arith.mulf %152, %144 : vector<8x32xf32>
    %cst_55 = arith.constant 9.99999974E-6 : f32
    %154 = vector.broadcast %cst_55 : f32 to vector<8x1xf32>
    %155 = arith.addf %151, %154 : vector<8x1xf32>
    %156 = math.rsqrt %155 : vector<8x1xf32>
    %157 = vector.broadcast %156 : vector<8x1xf32> to vector<8x32xf32>
    %158 = arith.mulf %153, %157 : vector<8x32xf32>
    %c0_56 = arith.constant 0 : index
    %c0_57 = arith.constant 0 : index
    %c0_58 = arith.constant 0 : index
    %159 = vector.load %arg10[%c0_56, %c0_57, %c0_58] : memref<1x32x128xf32, #tpu.memory_space<vmem>>, vector<1x32x128xf32>
    %160 = vector.shape_cast %159 : vector<1x32x128xf32> to vector<32x128xf32>
    %cst_59 = arith.constant dense<0.000000e+00> : vector<8x128xf32>
    %161 = tpu.matmul %158, %160, %cst_59 {dimension_numbers = #tpu.dot_dimension_numbers<[1], [0], [0], [1], [0, 0, 1, 1], [], []>} : vector<8x32xf32>, vector<32x128xf32>, vector<8x128xf32> -> vector<8x128xf32>
    %c0_60 = arith.constant 0 : index
    %c0_61 = arith.constant 0 : index
    %c0_62 = arith.constant 0 : index
    %162 = vector.load %arg11[%c0_60, %c0_61, %c0_62] : memref<1x1x128xf32, #tpu.memory_space<vmem>>, vector<1x1x128xf32>
    %163 = vector.shape_cast %162 : vector<1x1x128xf32> to vector<1x128xf32>
    %164 = vector.broadcast %163 : vector<1x128xf32> to vector<8x128xf32>
    %165 = arith.addf %161, %164 : vector<8x128xf32>
    %cst_63 = arith.constant 5.000000e-01 : f32
    %166 = vector.broadcast %cst_63 : f32 to vector<8x128xf32>
    %167 = arith.mulf %166, %165 : vector<8x128xf32>
    %cst_64 = arith.constant 0.707106769 : f32
    %168 = vector.broadcast %cst_64 : f32 to vector<8x128xf32>
    %169 = arith.mulf %165, %168 : vector<8x128xf32>
    %170 = math.erf %169 : vector<8x128xf32>
    %cst_65 = arith.constant 1.000000e+00 : f32
    %171 = vector.broadcast %cst_65 : f32 to vector<8x128xf32>
    %172 = arith.addf %171, %170 : vector<8x128xf32>
    %173 = arith.mulf %167, %172 : vector<8x128xf32>
    %c0_66 = arith.constant 0 : index
    %c0_67 = arith.constant 0 : index
    %c0_68 = arith.constant 0 : index
    %174 = vector.load %arg12[%c0_66, %c0_67, %c0_68] : memref<1x128x32xf32, #tpu.memory_space<vmem>>, vector<1x128x32xf32>
    %175 = vector.shape_cast %174 : vector<1x128x32xf32> to vector<128x32xf32>
    %cst_69 = arith.constant dense<0.000000e+00> : vector<8x32xf32>
    %176 = tpu.matmul %173, %175, %cst_69 {dimension_numbers = #tpu.dot_dimension_numbers<[1], [0], [0], [1], [0, 0, 1, 1], [], []>} : vector<8x128xf32>, vector<128x32xf32>, vector<8x32xf32> -> vector<8x32xf32>
    %177 = arith.addf %144, %176 : vector<8x32xf32>
    %c0_70 = arith.constant 0 : index
    %c0_71 = arith.constant 0 : index
    %c0_72 = arith.constant 0 : index
    %178 = vector.load %arg13[%c0_70, %c0_71, %c0_72] : memref<1x1x32xf32, #tpu.memory_space<vmem>>, vector<1x1x32xf32>
    %179 = vector.shape_cast %178 : vector<1x1x32xf32> to vector<1x32xf32>
    %180 = vector.broadcast %179 : vector<1x32xf32> to vector<8x32xf32>
    %181 = arith.addf %177, %180 : vector<8x32xf32>
    %c0_73 = arith.constant 0 : index
    %c0_74 = arith.constant 0 : index
    %c0_75 = arith.constant 0 : index
    %182 = vector.load %arg14[%c0_73, %c0_74, %c0_75] : memref<1x8x32xf32, #tpu.memory_space<vmem>>, vector<1x8x32xf32>
    %183 = vector.shape_cast %182 : vector<1x8x32xf32> to vector<8x32xf32>
    %184 = vector.shape_cast %181 : vector<8x32xf32> to vector<1x8x32xf32>
    tpu.vector_store %arg14[%c0_73, %c0_74, %c0_75], %184 {strides = array<i32>} : memref<1x8x32xf32, #tpu.memory_space<vmem>>, vector<1x8x32xf32>,
    return
  }
  func.func @transform_0(%arg0: i32, %arg1: i32) -> (i32, i32, i32) {
    %c0_i32 = arith.constant 0 : i32
    %c0_i32_0 = arith.constant 0 : i32
    %c0_i32_1 = arith.constant 0 : i32
    return %arg0, %c0_i32, %c0_i32_0 : i32, i32, i32
  }
  func.func @transform_1(%arg0: i32, %arg1: i32) -> (i32, i32, i32) {
    %c0_i32 = arith.constant 0 : i32
    %c0_i32_0 = arith.constant 0 : i32
    %c0_i32_1 = arith.constant 0 : i32
    return %arg0, %c0_i32, %c0_i32_0 : i32, i32, i32
  }
  func.func @transform_2(%arg0: i32, %arg1: i32) -> (i32, i32, i32) {
    %c0_i32 = arith.constant 0 : i32
    %c0_i32_0 = arith.constant 0 : i32
    %c0_i32_1 = arith.constant 0 : i32
    return %arg1, %c0_i32, %c0_i32_0 : i32, i32, i32
  }
  func.func @transform_3(%arg0: i32, %arg1: i32) -> (i32, i32, i32) {
    %c0_i32 = arith.constant 0 : i32
    %c0_i32_0 = arith.constant 0 : i32
    %c0_i32_1 = arith.constant 0 : i32
    return %arg1, %c0_i32, %c0_i32_0 : i32, i32, i32
  }
  func.func @transform_4(%arg0: i32, %arg1: i32) -> (i32, i32, i32) {
    %c0_i32 = arith.constant 0 : i32
    %c0_i32_0 = arith.constant 0 : i32
    %c0_i32_1 = arith.constant 0 : i32
    return %arg1, %c0_i32, %c0_i32_0 : i32, i32, i32
  }
  func.func @transform_5(%arg0: i32, %arg1: i32) -> (i32, i32, i32) {
    %c0_i32 = arith.constant 0 : i32
    %c0_i32_0 = arith.constant 0 : i32
    %c0_i32_1 = arith.constant 0 : i32
    return %arg1, %c0_i32, %c0_i32_0 : i32, i32, i32
  }
  func.func @transform_6(%arg0: i32, %arg1: i32) -> (i32, i32, i32) {
    %c0_i32 = arith.constant 0 : i32
    %c0_i32_0 = arith.constant 0 : i32
    %c0_i32_1 = arith.constant 0 : i32
    return %arg1, %c0_i32, %c0_i32_0 : i32, i32, i32
  }
  func.func @transform_7(%arg0: i32, %arg1: i32) -> (i32, i32, i32) {
    %c0_i32 = arith.constant 0 : i32
    %c0_i32_0 = arith.constant 0 : i32
    %c0_i32_1 = arith.constant 0 : i32
    return %arg1, %c0_i32, %c0_i32_0 : i32, i32, i32
  }
  func.func @transform_8(%arg0: i32, %arg1: i32) -> (i32, i32, i32) {
    %c0_i32 = arith.constant 0 : i32
    %c0_i32_0 = arith.constant 0 : i32
    %c0_i32_1 = arith.constant 0 : i32
    return %arg1, %c0_i32, %c0_i32_0 : i32, i32, i32
  }
  func.func @transform_9(%arg0: i32, %arg1: i32) -> (i32, i32, i32) {
    %c0_i32 = arith.constant 0 : i32
    %c0_i32_0 = arith.constant 0 : i32
    %c0_i32_1 = arith.constant 0 : i32
    return %arg1, %c0_i32, %c0_i32_0 : i32, i32, i32
  }
  func.func @transform_10(%arg0: i32, %arg1: i32) -> (i32, i32, i32) {
    %c0_i32 = arith.constant 0 : i32
    %c0_i32_0 = arith.constant 0 : i32
    %c0_i32_1 = arith.constant 0 : i32
    return %arg1, %c0_i32, %c0_i32_0 : i32, i32, i32
  }
  func.func @transform_11(%arg0: i32, %arg1: i32) -> (i32, i32, i32) {
    %c0_i32 = arith.constant 0 : i32
    %c0_i32_0 = arith.constant 0 : i32
    %c0_i32_1 = arith.constant 0 : i32
    return %arg1, %c0_i32, %c0_i32_0 : i32, i32, i32
  }
  func.func @transform_12(%arg0: i32, %arg1: i32) -> (i32, i32, i32) {
    %c0_i32 = arith.constant 0 : i32
    %c0_i32_0 = arith.constant 0 : i32
    %c0_i32_1 = arith.constant 0 : i32
    return %arg0, %c0_i32, %c0_i32_0 : i32, i32, i32
  }
}

module attributes {stable_mosaic.version = 11 : i64} {
  func.func @_dec_block_kernel(%arg0: i32, %arg1: i32, %arg2: memref<1x8x32xf32, #tpu.memory_space<vmem>>, %arg3: memref<1x8x32xf32, #tpu.memory_space<vmem>>, %arg4: memref<1x8x8xf32, #tpu.memory_space<vmem>>, %arg5: memref<1x8x8xf32, #tpu.memory_space<vmem>>, %arg6: memref<1x1x32xf32, #tpu.memory_space<vmem>>, %arg7: memref<1x32x96xf32, #tpu.memory_space<vmem>>, %arg8: memref<1x1x96xf32, #tpu.memory_space<vmem>>, %arg9: memref<1x32x32xf32, #tpu.memory_space<vmem>>, %arg10: memref<1x1x32xf32, #tpu.memory_space<vmem>>, %arg11: memref<1x1x32xf32, #tpu.memory_space<vmem>>, %arg12: memref<1x32x32xf32, #tpu.memory_space<vmem>>, %arg13: memref<1x1x32xf32, #tpu.memory_space<vmem>>, %arg14: memref<1x32x64xf32, #tpu.memory_space<vmem>>, %arg15: memref<1x1x64xf32, #tpu.memory_space<vmem>>, %arg16: memref<1x32x32xf32, #tpu.memory_space<vmem>>, %arg17: memref<1x1x32xf32, #tpu.memory_space<vmem>>, %arg18: memref<1x1x32xf32, #tpu.memory_space<vmem>>, %arg19: memref<1x32x128xf32, #tpu.memory_space<vmem>>, %arg20: memref<1x1x128xf32, #tpu.memory_space<vmem>>, %arg21: memref<1x128x32xf32, #tpu.memory_space<vmem>>, %arg22: memref<1x1x32xf32, #tpu.memory_space<vmem>>, %arg23: memref<1x8x32xf32, #tpu.memory_space<vmem>>) attributes {dimension_semantics = [#tpu.dimension_semantics<parallel>, #tpu.dimension_semantics<arbitrary>], iteration_bounds = array<i64: 2, 2>, scalar_prefetch = 0 : i64, scratch_operands = 0 : i64, tpu.core_type = #tpu.core_type<tc>, window_params = [{transform_indices = @transform_0, window_bounds = array<i64: 1, 8, 32>}, {transform_indices = @transform_1, window_bounds = array<i64: 1, 8, 32>}, {transform_indices = @transform_2, window_bounds = array<i64: 1, 8, 8>}, {transform_indices = @transform_3, window_bounds = array<i64: 1, 8, 8>}, {transform_indices = @transform_4, window_bounds = array<i64: 1, 1, 32>}, {transform_indices = @transform_5, window_bounds = array<i64: 1, 32, 96>}, {transform_indices = @transform_6, window_bounds = array<i64: 1, 1, 96>}, {transform_indices = @transform_7, window_bounds = array<i64: 1, 32, 32>}, {transform_indices = @transform_8, window_bounds = array<i64: 1, 1, 32>}, {transform_indices = @transform_9, window_bounds = array<i64: 1, 1, 32>}, {transform_indices = @transform_10, window_bounds = array<i64: 1, 32, 32>}, {transform_indices = @transform_11, window_bounds = array<i64: 1, 1, 32>}, {transform_indices = @transform_12, window_bounds = array<i64: 1, 32, 64>}, {transform_indices = @transform_13, window_bounds = array<i64: 1, 1, 64>}, {transform_indices = @transform_14, window_bounds = array<i64: 1, 32, 32>}, {transform_indices = @transform_15, window_bounds = array<i64: 1, 1, 32>}, {transform_indices = @transform_16, window_bounds = array<i64: 1, 1, 32>}, {transform_indices = @transform_17, window_bounds = array<i64: 1, 32, 128>}, {transform_indices = @transform_18, window_bounds = array<i64: 1, 1, 128>}, {transform_indices = @transform_19, window_bounds = array<i64: 1, 128, 32>}, {transform_indices = @transform_20, window_bounds = array<i64: 1, 1, 32>}, {transform_indices = @transform_21, window_bounds = array<i64: 1, 8, 32>}]} {
    %c0_i32 = arith.constant 0 : i32
    %0 = arith.cmpi eq, %arg1, %c0_i32 : i32
    %1 = arith.extui %0 : i1 to i32
    %c0_i32_0 = arith.constant 0 : i32
    %2 = arith.cmpi ne, %1, %c0_i32_0 : i32
    scf.if %2 {
      %c0_138 = arith.constant 0 : index
      %c0_139 = arith.constant 0 : index
      %c0_140 = arith.constant 0 : index
      %333 = vector.load %arg2[%c0_138, %c0_139, %c0_140] : memref<1x8x32xf32, #tpu.memory_space<vmem>>, vector<1x8x32xf32>
      %334 = vector.shape_cast %333 : vector<1x8x32xf32> to vector<8x32xf32>
      %c0_141 = arith.constant 0 : index
      %c0_142 = arith.constant 0 : index
      %c0_143 = arith.constant 0 : index
      %335 = vector.load %arg23[%c0_141, %c0_142, %c0_143] : memref<1x8x32xf32, #tpu.memory_space<vmem>>, vector<1x8x32xf32>
      %336 = vector.shape_cast %335 : vector<1x8x32xf32> to vector<8x32xf32>
      %337 = vector.shape_cast %334 : vector<8x32xf32> to vector<1x8x32xf32>
      tpu.vector_store %arg23[%c0_141, %c0_142, %c0_143], %337 {strides = array<i32>} : memref<1x8x32xf32, #tpu.memory_space<vmem>>, vector<1x8x32xf32>,
    } else {
    }
    %c0 = arith.constant 0 : index
    %c0_1 = arith.constant 0 : index
    %c0_2 = arith.constant 0 : index
    %3 = vector.load %arg23[%c0, %c0_1, %c0_2] : memref<1x8x32xf32, #tpu.memory_space<vmem>>, vector<1x8x32xf32>
    %4 = vector.shape_cast %3 : vector<1x8x32xf32> to vector<8x32xf32>
    %c0_3 = arith.constant 0 : index
    %c0_4 = arith.constant 0 : index
    %c0_5 = arith.constant 0 : index
    %5 = vector.load %arg3[%c0_3, %c0_4, %c0_5] : memref<1x8x32xf32, #tpu.memory_space<vmem>>, vector<1x8x32xf32>
    %6 = vector.shape_cast %5 : vector<1x8x32xf32> to vector<8x32xf32>
    %c0_6 = arith.constant 0 : index
    %c0_7 = arith.constant 0 : index
    %c0_8 = arith.constant 0 : index
    %7 = vector.load %arg6[%c0_6, %c0_7, %c0_8] : memref<1x1x32xf32, #tpu.memory_space<vmem>>, vector<1x1x32xf32>
    %8 = vector.shape_cast %7 : vector<1x1x32xf32> to vector<1x32xf32>
    %9 = arith.mulf %4, %4 : vector<8x32xf32>
    %cst = arith.constant dense<0.000000e+00> : vector<8xf32>
    %10 = vector.multi_reduction <add>, %9, %cst [1] : vector<8x32xf32> to vector<8xf32>
    %11 = vector.shape_cast %10 : vector<8xf32> to vector<8x1xf32>
    %cst_9 = arith.constant 3.200000e+01 : f32
    %12 = vector.broadcast %cst_9 : f32 to vector<8x1xf32>
    %13 = arith.divf %11, %12 : vector<8x1xf32>
    %14 = vector.broadcast %8 : vector<1x32xf32> to vector<8x32xf32>
    %15 = arith.mulf %14, %4 : vector<8x32xf32>
    %cst_10 = arith.constant 9.99999974E-6 : f32
    %16 = vector.broadcast %cst_10 : f32 to vector<8x1xf32>
    %17 = arith.addf %13, %16 : vector<8x1xf32>
    %18 = math.rsqrt %17 : vector<8x1xf32>
    %19 = vector.broadcast %18 : vector<8x1xf32> to vector<8x32xf32>
    %20 = arith.mulf %15, %19 : vector<8x32xf32>
    %c0_11 = arith.constant 0 : index
    %c0_12 = arith.constant 0 : index
    %c0_13 = arith.constant 0 : index
    %21 = vector.load %arg7[%c0_11, %c0_12, %c0_13] : memref<1x32x96xf32, #tpu.memory_space<vmem>>, vector<1x32x96xf32>
    %22 = vector.shape_cast %21 : vector<1x32x96xf32> to vector<32x96xf32>
    %cst_14 = arith.constant dense<0.000000e+00> : vector<8x96xf32>
    %23 = tpu.matmul %20, %22, %cst_14 {dimension_numbers = #tpu.dot_dimension_numbers<[1], [0], [0], [1], [0, 0, 1, 1], [], []>} : vector<8x32xf32>, vector<32x96xf32>, vector<8x96xf32> -> vector<8x96xf32>
    %c0_15 = arith.constant 0 : index
    %c0_16 = arith.constant 0 : index
    %c0_17 = arith.constant 0 : index
    %24 = vector.load %arg8[%c0_15, %c0_16, %c0_17] : memref<1x1x96xf32, #tpu.memory_space<vmem>>, vector<1x1x96xf32>
    %25 = vector.shape_cast %24 : vector<1x1x96xf32> to vector<1x96xf32>
    %26 = vector.broadcast %25 : vector<1x96xf32> to vector<8x96xf32>
    %27 = arith.addf %23, %26 : vector<8x96xf32>
    %28 = vector.extract_strided_slice %27 {offsets = [0, 0], sizes = [8, 32], strides = [1, 1]} : vector<8x96xf32> to vector<8x32xf32>
    %29 = vector.extract_strided_slice %27 {offsets = [0, 32], sizes = [8, 32], strides = [1, 1]} : vector<8x96xf32> to vector<8x32xf32>
    %30 = vector.extract_strided_slice %27 {offsets = [0, 64], sizes = [8, 32], strides = [1, 1]} : vector<8x96xf32> to vector<8x32xf32>
    %c0_18 = arith.constant 0 : index
    %c0_19 = arith.constant 0 : index
    %c0_20 = arith.constant 0 : index
    %31 = vector.load %arg4[%c0_18, %c0_19, %c0_20] : memref<1x8x8xf32, #tpu.memory_space<vmem>>, vector<1x8x8xf32>
    %32 = vector.shape_cast %31 : vector<1x8x8xf32> to vector<8x8xf32>
    %33 = tpu.iota {dimensions = array<i32: 1>} : vector<1x32xi32>
    %cst_21 = arith.constant 0.000000e+00 : f32
    %34 = vector.broadcast %cst_21 : f32 to vector<8x32xf32>
    %c0_i32_22 = arith.constant 0 : i32
    %35 = vector.broadcast %c0_i32_22 : i32 to vector<1x32xi32>
    %36 = arith.cmpi sge, %33, %35 : vector<1x32xi32>
    %c8_i32 = arith.constant 8 : i32
    %37 = vector.broadcast %c8_i32 : i32 to vector<1x32xi32>
    %38 = arith.cmpi slt, %33, %37 : vector<1x32xi32>
    %39 = arith.andi %36, %38 : vector<1x32xi1>
    %40 = arith.extui %39 : vector<1x32xi1> to vector<1x32xi32>
    %41 = arith.sitofp %40 : vector<1x32xi32> to vector<1x32xf32>
    %42 = vector.broadcast %41 : vector<1x32xf32> to vector<8x32xf32>
    %43 = arith.mulf %28, %42 : vector<8x32xf32>
    %cst_23 = arith.constant dense<0.000000e+00> : vector<8x8xf32>
    %44 = tpu.matmul %43, %29, %cst_23 {dimension_numbers = #tpu.dot_dimension_numbers<[1], [1], [0], [0], [0, 0, 1, 0], [], []>} : vector<8x32xf32>, vector<8x32xf32>, vector<8x8xf32> -> vector<8x8xf32>
    %cst_24 = arith.constant 0.353553385 : f32
    %45 = vector.broadcast %cst_24 : f32 to vector<8x8xf32>
    %46 = arith.mulf %44, %45 : vector<8x8xf32>
    %47 = arith.addf %46, %32 : vector<8x8xf32>
    %cst_25 = arith.constant dense<0xFF800000> : vector<8xf32>
    %48 = vector.multi_reduction <maximumf>, %47, %cst_25 [1] : vector<8x8xf32> to vector<8xf32>
    %49 = vector.shape_cast %48 : vector<8xf32> to vector<8x1xf32>
    %50 = vector.broadcast %49 : vector<8x1xf32> to vector<8x8xf32>
    %51 = arith.subf %47, %50 : vector<8x8xf32>
    %52 = math.exp %51 : vector<8x8xf32>
    %cst_26 = arith.constant dense<0.000000e+00> : vector<8xf32>
    %53 = vector.multi_reduction <add>, %52, %cst_26 [1] : vector<8x8xf32> to vector<8xf32>
    %54 = vector.shape_cast %53 : vector<8xf32> to vector<8x1xf32>
    %55 = vector.broadcast %54 : vector<8x1xf32> to vector<8x8xf32>
    %56 = arith.divf %52, %55 : vector<8x8xf32>
    %57 = vector.broadcast %41 : vector<1x32xf32> to vector<8x32xf32>
    %58 = arith.mulf %30, %57 : vector<8x32xf32>
    %cst_27 = arith.constant dense<0.000000e+00> : vector<8x32xf32>
    %59 = tpu.matmul %56, %58, %cst_27 {dimension_numbers = #tpu.dot_dimension_numbers<[1], [0], [0], [1], [0, 0, 1, 1], [], []>} : vector<8x8xf32>, vector<8x32xf32>, vector<8x32xf32> -> vector<8x32xf32>
    %60 = arith.addf %34, %59 : vector<8x32xf32>
    %c8_i32_28 = arith.constant 8 : i32
    %61 = vector.broadcast %c8_i32_28 : i32 to vector<1x32xi32>
    %62 = arith.cmpi sge, %33, %61 : vector<1x32xi32>
    %c16_i32 = arith.constant 16 : i32
    %63 = vector.broadcast %c16_i32 : i32 to vector<1x32xi32>
    %64 = arith.cmpi slt, %33, %63 : vector<1x32xi32>
    %65 = arith.andi %62, %64 : vector<1x32xi1>
    %66 = arith.extui %65 : vector<1x32xi1> to vector<1x32xi32>
    %67 = arith.sitofp %66 : vector<1x32xi32> to vector<1x32xf32>
    %68 = vector.broadcast %67 : vector<1x32xf32> to vector<8x32xf32>
    %69 = arith.mulf %28, %68 : vector<8x32xf32>
    %cst_29 = arith.constant dense<0.000000e+00> : vector<8x8xf32>
    %70 = tpu.matmul %69, %29, %cst_29 {dimension_numbers = #tpu.dot_dimension_numbers<[1], [1], [0], [0], [0, 0, 1, 0], [], []>} : vector<8x32xf32>, vector<8x32xf32>, vector<8x8xf32> -> vector<8x8xf32>
    %cst_30 = arith.constant 0.353553385 : f32
    %71 = vector.broadcast %cst_30 : f32 to vector<8x8xf32>
    %72 = arith.mulf %70, %71 : vector<8x8xf32>
    %73 = arith.addf %72, %32 : vector<8x8xf32>
    %cst_31 = arith.constant dense<0xFF800000> : vector<8xf32>
    %74 = vector.multi_reduction <maximumf>, %73, %cst_31 [1] : vector<8x8xf32> to vector<8xf32>
    %75 = vector.shape_cast %74 : vector<8xf32> to vector<8x1xf32>
    %76 = vector.broadcast %75 : vector<8x1xf32> to vector<8x8xf32>
    %77 = arith.subf %73, %76 : vector<8x8xf32>
    %78 = math.exp %77 : vector<8x8xf32>
    %cst_32 = arith.constant dense<0.000000e+00> : vector<8xf32>
    %79 = vector.multi_reduction <add>, %78, %cst_32 [1] : vector<8x8xf32> to vector<8xf32>
    %80 = vector.shape_cast %79 : vector<8xf32> to vector<8x1xf32>
    %81 = vector.broadcast %80 : vector<8x1xf32> to vector<8x8xf32>
    %82 = arith.divf %78, %81 : vector<8x8xf32>
    %83 = vector.broadcast %67 : vector<1x32xf32> to vector<8x32xf32>
    %84 = arith.mulf %30, %83 : vector<8x32xf32>
    %cst_33 = arith.constant dense<0.000000e+00> : vector<8x32xf32>
    %85 = tpu.matmul %82, %84, %cst_33 {dimension_numbers = #tpu.dot_dimension_numbers<[1], [0], [0], [1], [0, 0, 1, 1], [], []>} : vector<8x8xf32>, vector<8x32xf32>, vector<8x32xf32> -> vector<8x32xf32>
    %86 = arith.addf %60, %85 : vector<8x32xf32>
    %c16_i32_34 = arith.constant 16 : i32
    %87 = vector.broadcast %c16_i32_34 : i32 to vector<1x32xi32>
    %88 = arith.cmpi sge, %33, %87 : vector<1x32xi32>
    %c24_i32 = arith.constant 24 : i32
    %89 = vector.broadcast %c24_i32 : i32 to vector<1x32xi32>
    %90 = arith.cmpi slt, %33, %89 : vector<1x32xi32>
    %91 = arith.andi %88, %90 : vector<1x32xi1>
    %92 = arith.extui %91 : vector<1x32xi1> to vector<1x32xi32>
    %93 = arith.sitofp %92 : vector<1x32xi32> to vector<1x32xf32>
    %94 = vector.broadcast %93 : vector<1x32xf32> to vector<8x32xf32>
    %95 = arith.mulf %28, %94 : vector<8x32xf32>
    %cst_35 = arith.constant dense<0.000000e+00> : vector<8x8xf32>
    %96 = tpu.matmul %95, %29, %cst_35 {dimension_numbers = #tpu.dot_dimension_numbers<[1], [1], [0], [0], [0, 0, 1, 0], [], []>} : vector<8x32xf32>, vector<8x32xf32>, vector<8x8xf32> -> vector<8x8xf32>
    %cst_36 = arith.constant 0.353553385 : f32
    %97 = vector.broadcast %cst_36 : f32 to vector<8x8xf32>
    %98 = arith.mulf %96, %97 : vector<8x8xf32>
    %99 = arith.addf %98, %32 : vector<8x8xf32>
    %cst_37 = arith.constant dense<0xFF800000> : vector<8xf32>
    %100 = vector.multi_reduction <maximumf>, %99, %cst_37 [1] : vector<8x8xf32> to vector<8xf32>
    %101 = vector.shape_cast %100 : vector<8xf32> to vector<8x1xf32>
    %102 = vector.broadcast %101 : vector<8x1xf32> to vector<8x8xf32>
    %103 = arith.subf %99, %102 : vector<8x8xf32>
    %104 = math.exp %103 : vector<8x8xf32>
    %cst_38 = arith.constant dense<0.000000e+00> : vector<8xf32>
    %105 = vector.multi_reduction <add>, %104, %cst_38 [1] : vector<8x8xf32> to vector<8xf32>
    %106 = vector.shape_cast %105 : vector<8xf32> to vector<8x1xf32>
    %107 = vector.broadcast %106 : vector<8x1xf32> to vector<8x8xf32>
    %108 = arith.divf %104, %107 : vector<8x8xf32>
    %109 = vector.broadcast %93 : vector<1x32xf32> to vector<8x32xf32>
    %110 = arith.mulf %30, %109 : vector<8x32xf32>
    %cst_39 = arith.constant dense<0.000000e+00> : vector<8x32xf32>
    %111 = tpu.matmul %108, %110, %cst_39 {dimension_numbers = #tpu.dot_dimension_numbers<[1], [0], [0], [1], [0, 0, 1, 1], [], []>} : vector<8x8xf32>, vector<8x32xf32>, vector<8x32xf32> -> vector<8x32xf32>
    %112 = arith.addf %86, %111 : vector<8x32xf32>
    %c24_i32_40 = arith.constant 24 : i32
    %113 = vector.broadcast %c24_i32_40 : i32 to vector<1x32xi32>
    %114 = arith.cmpi sge, %33, %113 : vector<1x32xi32>
    %c32_i32 = arith.constant 32 : i32
    %115 = vector.broadcast %c32_i32 : i32 to vector<1x32xi32>
    %116 = arith.cmpi slt, %33, %115 : vector<1x32xi32>
    %117 = arith.andi %114, %116 : vector<1x32xi1>
    %118 = arith.extui %117 : vector<1x32xi1> to vector<1x32xi32>
    %119 = arith.sitofp %118 : vector<1x32xi32> to vector<1x32xf32>
    %120 = vector.broadcast %119 : vector<1x32xf32> to vector<8x32xf32>
    %121 = arith.mulf %28, %120 : vector<8x32xf32>
    %cst_41 = arith.constant dense<0.000000e+00> : vector<8x8xf32>
    %122 = tpu.matmul %121, %29, %cst_41 {dimension_numbers = #tpu.dot_dimension_numbers<[1], [1], [0], [0], [0, 0, 1, 0], [], []>} : vector<8x32xf32>, vector<8x32xf32>, vector<8x8xf32> -> vector<8x8xf32>
    %cst_42 = arith.constant 0.353553385 : f32
    %123 = vector.broadcast %cst_42 : f32 to vector<8x8xf32>
    %124 = arith.mulf %122, %123 : vector<8x8xf32>
    %125 = arith.addf %124, %32 : vector<8x8xf32>
    %cst_43 = arith.constant dense<0xFF800000> : vector<8xf32>
    %126 = vector.multi_reduction <maximumf>, %125, %cst_43 [1] : vector<8x8xf32> to vector<8xf32>
    %127 = vector.shape_cast %126 : vector<8xf32> to vector<8x1xf32>
    %128 = vector.broadcast %127 : vector<8x1xf32> to vector<8x8xf32>
    %129 = arith.subf %125, %128 : vector<8x8xf32>
    %130 = math.exp %129 : vector<8x8xf32>
    %cst_44 = arith.constant dense<0.000000e+00> : vector<8xf32>
    %131 = vector.multi_reduction <add>, %130, %cst_44 [1] : vector<8x8xf32> to vector<8xf32>
    %132 = vector.shape_cast %131 : vector<8xf32> to vector<8x1xf32>
    %133 = vector.broadcast %132 : vector<8x1xf32> to vector<8x8xf32>
    %134 = arith.divf %130, %133 : vector<8x8xf32>
    %135 = vector.broadcast %119 : vector<1x32xf32> to vector<8x32xf32>
    %136 = arith.mulf %30, %135 : vector<8x32xf32>
    %cst_45 = arith.constant dense<0.000000e+00> : vector<8x32xf32>
    %137 = tpu.matmul %134, %136, %cst_45 {dimension_numbers = #tpu.dot_dimension_numbers<[1], [0], [0], [1], [0, 0, 1, 1], [], []>} : vector<8x8xf32>, vector<8x32xf32>, vector<8x32xf32> -> vector<8x32xf32>
    %138 = arith.addf %112, %137 : vector<8x32xf32>
    %c0_46 = arith.constant 0 : index
    %c0_47 = arith.constant 0 : index
    %c0_48 = arith.constant 0 : index
    %139 = vector.load %arg9[%c0_46, %c0_47, %c0_48] : memref<1x32x32xf32, #tpu.memory_space<vmem>>, vector<1x32x32xf32>
    %140 = vector.shape_cast %139 : vector<1x32x32xf32> to vector<32x32xf32>
    %cst_49 = arith.constant dense<0.000000e+00> : vector<8x32xf32>
    %141 = tpu.matmul %138, %140, %cst_49 {dimension_numbers = #tpu.dot_dimension_numbers<[1], [0], [0], [1], [0, 0, 1, 1], [], []>} : vector<8x32xf32>, vector<32x32xf32>, vector<8x32xf32> -> vector<8x32xf32>
    %142 = arith.addf %4, %141 : vector<8x32xf32>
    %c0_50 = arith.constant 0 : index
    %c0_51 = arith.constant 0 : index
    %c0_52 = arith.constant 0 : index
    %143 = vector.load %arg10[%c0_50, %c0_51, %c0_52] : memref<1x1x32xf32, #tpu.memory_space<vmem>>, vector<1x1x32xf32>
    %144 = vector.shape_cast %143 : vector<1x1x32xf32> to vector<1x32xf32>
    %145 = vector.broadcast %144 : vector<1x32xf32> to vector<8x32xf32>
    %146 = arith.addf %142, %145 : vector<8x32xf32>
    %c0_53 = arith.constant 0 : index
    %c0_54 = arith.constant 0 : index
    %c0_55 = arith.constant 0 : index
    %147 = vector.load %arg11[%c0_53, %c0_54, %c0_55] : memref<1x1x32xf32, #tpu.memory_space<vmem>>, vector<1x1x32xf32>
    %148 = vector.shape_cast %147 : vector<1x1x32xf32> to vector<1x32xf32>
    %149 = arith.mulf %146, %146 : vector<8x32xf32>
    %cst_56 = arith.constant dense<0.000000e+00> : vector<8xf32>
    %150 = vector.multi_reduction <add>, %149, %cst_56 [1] : vector<8x32xf32> to vector<8xf32>
    %151 = vector.shape_cast %150 : vector<8xf32> to vector<8x1xf32>
    %cst_57 = arith.constant 3.200000e+01 : f32
    %152 = vector.broadcast %cst_57 : f32 to vector<8x1xf32>
    %153 = arith.divf %151, %152 : vector<8x1xf32>
    %154 = vector.broadcast %148 : vector<1x32xf32> to vector<8x32xf32>
    %155 = arith.mulf %154, %146 : vector<8x32xf32>
    %cst_58 = arith.constant 9.99999974E-6 : f32
    %156 = vector.broadcast %cst_58 : f32 to vector<8x1xf32>
    %157 = arith.addf %153, %156 : vector<8x1xf32>
    %158 = math.rsqrt %157 : vector<8x1xf32>
    %159 = vector.broadcast %158 : vector<8x1xf32> to vector<8x32xf32>
    %160 = arith.mulf %155, %159 : vector<8x32xf32>
    %c0_59 = arith.constant 0 : index
    %c0_60 = arith.constant 0 : index
    %c0_61 = arith.constant 0 : index
    %161 = vector.load %arg12[%c0_59, %c0_60, %c0_61] : memref<1x32x32xf32, #tpu.memory_space<vmem>>, vector<1x32x32xf32>
    %162 = vector.shape_cast %161 : vector<1x32x32xf32> to vector<32x32xf32>
    %cst_62 = arith.constant dense<0.000000e+00> : vector<8x32xf32>
    %163 = tpu.matmul %160, %162, %cst_62 {dimension_numbers = #tpu.dot_dimension_numbers<[1], [0], [0], [1], [0, 0, 1, 1], [], []>} : vector<8x32xf32>, vector<32x32xf32>, vector<8x32xf32> -> vector<8x32xf32>
    %c0_63 = arith.constant 0 : index
    %c0_64 = arith.constant 0 : index
    %c0_65 = arith.constant 0 : index
    %164 = vector.load %arg13[%c0_63, %c0_64, %c0_65] : memref<1x1x32xf32, #tpu.memory_space<vmem>>, vector<1x1x32xf32>
    %165 = vector.shape_cast %164 : vector<1x1x32xf32> to vector<1x32xf32>
    %166 = vector.broadcast %165 : vector<1x32xf32> to vector<8x32xf32>
    %167 = arith.addf %163, %166 : vector<8x32xf32>
    %c0_66 = arith.constant 0 : index
    %c0_67 = arith.constant 0 : index
    %c0_68 = arith.constant 0 : index
    %168 = vector.load %arg14[%c0_66, %c0_67, %c0_68] : memref<1x32x64xf32, #tpu.memory_space<vmem>>, vector<1x32x64xf32>
    %169 = vector.shape_cast %168 : vector<1x32x64xf32> to vector<32x64xf32>
    %cst_69 = arith.constant dense<0.000000e+00> : vector<8x64xf32>
    %170 = tpu.matmul %6, %169, %cst_69 {dimension_numbers = #tpu.dot_dimension_numbers<[1], [0], [0], [1], [0, 0, 1, 1], [], []>} : vector<8x32xf32>, vector<32x64xf32>, vector<8x64xf32> -> vector<8x64xf32>
    %c0_70 = arith.constant 0 : index
    %c0_71 = arith.constant 0 : index
    %c0_72 = arith.constant 0 : index
    %171 = vector.load %arg15[%c0_70, %c0_71, %c0_72] : memref<1x1x64xf32, #tpu.memory_space<vmem>>, vector<1x1x64xf32>
    %172 = vector.shape_cast %171 : vector<1x1x64xf32> to vector<1x64xf32>
    %173 = vector.broadcast %172 : vector<1x64xf32> to vector<8x64xf32>
    %174 = arith.addf %170, %173 : vector<8x64xf32>
    %175 = vector.extract_strided_slice %174 {offsets = [0, 0], sizes = [8, 32], strides = [1, 1]} : vector<8x64xf32> to vector<8x32xf32>
    %176 = vector.extract_strided_slice %174 {offsets = [0, 32], sizes = [8, 32], strides = [1, 1]} : vector<8x64xf32> to vector<8x32xf32>
    %c0_73 = arith.constant 0 : index
    %c0_74 = arith.constant 0 : index
    %c0_75 = arith.constant 0 : index
    %177 = vector.load %arg5[%c0_73, %c0_74, %c0_75] : memref<1x8x8xf32, #tpu.memory_space<vmem>>, vector<1x8x8xf32>
    %178 = vector.shape_cast %177 : vector<1x8x8xf32> to vector<8x8xf32>
    %179 = tpu.iota {dimensions = array<i32: 1>} : vector<1x32xi32>
    %cst_76 = arith.constant 0.000000e+00 : f32
    %180 = vector.broadcast %cst_76 : f32 to vector<8x32xf32>
    %c0_i32_77 = arith.constant 0 : i32
    %181 = vector.broadcast %c0_i32_77 : i32 to vector<1x32xi32>
    %182 = arith.cmpi sge, %179, %181 : vector<1x32xi32>
    %c8_i32_78 = arith.constant 8 : i32
    %183 = vector.broadcast %c8_i32_78 : i32 to vector<1x32xi32>
    %184 = arith.cmpi slt, %179, %183 : vector<1x32xi32>
    %185 = arith.andi %182, %184 : vector<1x32xi1>
    %186 = arith.extui %185 : vector<1x32xi1> to vector<1x32xi32>
    %187 = arith.sitofp %186 : vector<1x32xi32> to vector<1x32xf32>
    %188 = vector.broadcast %187 : vector<1x32xf32> to vector<8x32xf32>
    %189 = arith.mulf %167, %188 : vector<8x32xf32>
    %cst_79 = arith.constant dense<0.000000e+00> : vector<8x8xf32>
    %190 = tpu.matmul %189, %175, %cst_79 {dimension_numbers = #tpu.dot_dimension_numbers<[1], [1], [0], [0], [0, 0, 1, 0], [], []>} : vector<8x32xf32>, vector<8x32xf32>, vector<8x8xf32> -> vector<8x8xf32>
    %cst_80 = arith.constant 0.353553385 : f32
    %191 = vector.broadcast %cst_80 : f32 to vector<8x8xf32>
    %192 = arith.mulf %190, %191 : vector<8x8xf32>
    %193 = arith.addf %192, %178 : vector<8x8xf32>
    %cst_81 = arith.constant dense<0xFF800000> : vector<8xf32>
    %194 = vector.multi_reduction <maximumf>, %193, %cst_81 [1] : vector<8x8xf32> to vector<8xf32>
    %195 = vector.shape_cast %194 : vector<8xf32> to vector<8x1xf32>
    %196 = vector.broadcast %195 : vector<8x1xf32> to vector<8x8xf32>
    %197 = arith.subf %193, %196 : vector<8x8xf32>
    %198 = math.exp %197 : vector<8x8xf32>
    %cst_82 = arith.constant dense<0.000000e+00> : vector<8xf32>
    %199 = vector.multi_reduction <add>, %198, %cst_82 [1] : vector<8x8xf32> to vector<8xf32>
    %200 = vector.shape_cast %199 : vector<8xf32> to vector<8x1xf32>
    %201 = vector.broadcast %200 : vector<8x1xf32> to vector<8x8xf32>
    %202 = arith.divf %198, %201 : vector<8x8xf32>
    %203 = vector.broadcast %187 : vector<1x32xf32> to vector<8x32xf32>
    %204 = arith.mulf %176, %203 : vector<8x32xf32>
    %cst_83 = arith.constant dense<0.000000e+00> : vector<8x32xf32>
    %205 = tpu.matmul %202, %204, %cst_83 {dimension_numbers = #tpu.dot_dimension_numbers<[1], [0], [0], [1], [0, 0, 1, 1], [], []>} : vector<8x8xf32>, vector<8x32xf32>, vector<8x32xf32> -> vector<8x32xf32>
    %206 = arith.addf %180, %205 : vector<8x32xf32>
    %c8_i32_84 = arith.constant 8 : i32
    %207 = vector.broadcast %c8_i32_84 : i32 to vector<1x32xi32>
    %208 = arith.cmpi sge, %179, %207 : vector<1x32xi32>
    %c16_i32_85 = arith.constant 16 : i32
    %209 = vector.broadcast %c16_i32_85 : i32 to vector<1x32xi32>
    %210 = arith.cmpi slt, %179, %209 : vector<1x32xi32>
    %211 = arith.andi %208, %210 : vector<1x32xi1>
    %212 = arith.extui %211 : vector<1x32xi1> to vector<1x32xi32>
    %213 = arith.sitofp %212 : vector<1x32xi32> to vector<1x32xf32>
    %214 = vector.broadcast %213 : vector<1x32xf32> to vector<8x32xf32>
    %215 = arith.mulf %167, %214 : vector<8x32xf32>
    %cst_86 = arith.constant dense<0.000000e+00> : vector<8x8xf32>
    %216 = tpu.matmul %215, %175, %cst_86 {dimension_numbers = #tpu.dot_dimension_numbers<[1], [1], [0], [0], [0, 0, 1, 0], [], []>} : vector<8x32xf32>, vector<8x32xf32>, vector<8x8xf32> -> vector<8x8xf32>
    %cst_87 = arith.constant 0.353553385 : f32
    %217 = vector.broadcast %cst_87 : f32 to vector<8x8xf32>
    %218 = arith.mulf %216, %217 : vector<8x8xf32>
    %219 = arith.addf %218, %178 : vector<8x8xf32>
    %cst_88 = arith.constant dense<0xFF800000> : vector<8xf32>
    %220 = vector.multi_reduction <maximumf>, %219, %cst_88 [1] : vector<8x8xf32> to vector<8xf32>
    %221 = vector.shape_cast %220 : vector<8xf32> to vector<8x1xf32>
    %222 = vector.broadcast %221 : vector<8x1xf32> to vector<8x8xf32>
    %223 = arith.subf %219, %222 : vector<8x8xf32>
    %224 = math.exp %223 : vector<8x8xf32>
    %cst_89 = arith.constant dense<0.000000e+00> : vector<8xf32>
    %225 = vector.multi_reduction <add>, %224, %cst_89 [1] : vector<8x8xf32> to vector<8xf32>
    %226 = vector.shape_cast %225 : vector<8xf32> to vector<8x1xf32>
    %227 = vector.broadcast %226 : vector<8x1xf32> to vector<8x8xf32>
    %228 = arith.divf %224, %227 : vector<8x8xf32>
    %229 = vector.broadcast %213 : vector<1x32xf32> to vector<8x32xf32>
    %230 = arith.mulf %176, %229 : vector<8x32xf32>
    %cst_90 = arith.constant dense<0.000000e+00> : vector<8x32xf32>
    %231 = tpu.matmul %228, %230, %cst_90 {dimension_numbers = #tpu.dot_dimension_numbers<[1], [0], [0], [1], [0, 0, 1, 1], [], []>} : vector<8x8xf32>, vector<8x32xf32>, vector<8x32xf32> -> vector<8x32xf32>
    %232 = arith.addf %206, %231 : vector<8x32xf32>
    %c16_i32_91 = arith.constant 16 : i32
    %233 = vector.broadcast %c16_i32_91 : i32 to vector<1x32xi32>
    %234 = arith.cmpi sge, %179, %233 : vector<1x32xi32>
    %c24_i32_92 = arith.constant 24 : i32
    %235 = vector.broadcast %c24_i32_92 : i32 to vector<1x32xi32>
    %236 = arith.cmpi slt, %179, %235 : vector<1x32xi32>
    %237 = arith.andi %234, %236 : vector<1x32xi1>
    %238 = arith.extui %237 : vector<1x32xi1> to vector<1x32xi32>
    %239 = arith.sitofp %238 : vector<1x32xi32> to vector<1x32xf32>
    %240 = vector.broadcast %239 : vector<1x32xf32> to vector<8x32xf32>
    %241 = arith.mulf %167, %240 : vector<8x32xf32>
    %cst_93 = arith.constant dense<0.000000e+00> : vector<8x8xf32>
    %242 = tpu.matmul %241, %175, %cst_93 {dimension_numbers = #tpu.dot_dimension_numbers<[1], [1], [0], [0], [0, 0, 1, 0], [], []>} : vector<8x32xf32>, vector<8x32xf32>, vector<8x8xf32> -> vector<8x8xf32>
    %cst_94 = arith.constant 0.353553385 : f32
    %243 = vector.broadcast %cst_94 : f32 to vector<8x8xf32>
    %244 = arith.mulf %242, %243 : vector<8x8xf32>
    %245 = arith.addf %244, %178 : vector<8x8xf32>
    %cst_95 = arith.constant dense<0xFF800000> : vector<8xf32>
    %246 = vector.multi_reduction <maximumf>, %245, %cst_95 [1] : vector<8x8xf32> to vector<8xf32>
    %247 = vector.shape_cast %246 : vector<8xf32> to vector<8x1xf32>
    %248 = vector.broadcast %247 : vector<8x1xf32> to vector<8x8xf32>
    %249 = arith.subf %245, %248 : vector<8x8xf32>
    %250 = math.exp %249 : vector<8x8xf32>
    %cst_96 = arith.constant dense<0.000000e+00> : vector<8xf32>
    %251 = vector.multi_reduction <add>, %250, %cst_96 [1] : vector<8x8xf32> to vector<8xf32>
    %252 = vector.shape_cast %251 : vector<8xf32> to vector<8x1xf32>
    %253 = vector.broadcast %252 : vector<8x1xf32> to vector<8x8xf32>
    %254 = arith.divf %250, %253 : vector<8x8xf32>
    %255 = vector.broadcast %239 : vector<1x32xf32> to vector<8x32xf32>
    %256 = arith.mulf %176, %255 : vector<8x32xf32>
    %cst_97 = arith.constant dense<0.000000e+00> : vector<8x32xf32>
    %257 = tpu.matmul %254, %256, %cst_97 {dimension_numbers = #tpu.dot_dimension_numbers<[1], [0], [0], [1], [0, 0, 1, 1], [], []>} : vector<8x8xf32>, vector<8x32xf32>, vector<8x32xf32> -> vector<8x32xf32>
    %258 = arith.addf %232, %257 : vector<8x32xf32>
    %c24_i32_98 = arith.constant 24 : i32
    %259 = vector.broadcast %c24_i32_98 : i32 to vector<1x32xi32>
    %260 = arith.cmpi sge, %179, %259 : vector<1x32xi32>
    %c32_i32_99 = arith.constant 32 : i32
    %261 = vector.broadcast %c32_i32_99 : i32 to vector<1x32xi32>
    %262 = arith.cmpi slt, %179, %261 : vector<1x32xi32>
    %263 = arith.andi %260, %262 : vector<1x32xi1>
    %264 = arith.extui %263 : vector<1x32xi1> to vector<1x32xi32>
    %265 = arith.sitofp %264 : vector<1x32xi32> to vector<1x32xf32>
    %266 = vector.broadcast %265 : vector<1x32xf32> to vector<8x32xf32>
    %267 = arith.mulf %167, %266 : vector<8x32xf32>
    %cst_100 = arith.constant dense<0.000000e+00> : vector<8x8xf32>
    %268 = tpu.matmul %267, %175, %cst_100 {dimension_numbers = #tpu.dot_dimension_numbers<[1], [1], [0], [0], [0, 0, 1, 0], [], []>} : vector<8x32xf32>, vector<8x32xf32>, vector<8x8xf32> -> vector<8x8xf32>
    %cst_101 = arith.constant 0.353553385 : f32
    %269 = vector.broadcast %cst_101 : f32 to vector<8x8xf32>
    %270 = arith.mulf %268, %269 : vector<8x8xf32>
    %271 = arith.addf %270, %178 : vector<8x8xf32>
    %cst_102 = arith.constant dense<0xFF800000> : vector<8xf32>
    %272 = vector.multi_reduction <maximumf>, %271, %cst_102 [1] : vector<8x8xf32> to vector<8xf32>
    %273 = vector.shape_cast %272 : vector<8xf32> to vector<8x1xf32>
    %274 = vector.broadcast %273 : vector<8x1xf32> to vector<8x8xf32>
    %275 = arith.subf %271, %274 : vector<8x8xf32>
    %276 = math.exp %275 : vector<8x8xf32>
    %cst_103 = arith.constant dense<0.000000e+00> : vector<8xf32>
    %277 = vector.multi_reduction <add>, %276, %cst_103 [1] : vector<8x8xf32> to vector<8xf32>
    %278 = vector.shape_cast %277 : vector<8xf32> to vector<8x1xf32>
    %279 = vector.broadcast %278 : vector<8x1xf32> to vector<8x8xf32>
    %280 = arith.divf %276, %279 : vector<8x8xf32>
    %281 = vector.broadcast %265 : vector<1x32xf32> to vector<8x32xf32>
    %282 = arith.mulf %176, %281 : vector<8x32xf32>
    %cst_104 = arith.constant dense<0.000000e+00> : vector<8x32xf32>
    %283 = tpu.matmul %280, %282, %cst_104 {dimension_numbers = #tpu.dot_dimension_numbers<[1], [0], [0], [1], [0, 0, 1, 1], [], []>} : vector<8x8xf32>, vector<8x32xf32>, vector<8x32xf32> -> vector<8x32xf32>
    %284 = arith.addf %258, %283 : vector<8x32xf32>
    %c0_105 = arith.constant 0 : index
    %c0_106 = arith.constant 0 : index
    %c0_107 = arith.constant 0 : index
    %285 = vector.load %arg16[%c0_105, %c0_106, %c0_107] : memref<1x32x32xf32, #tpu.memory_space<vmem>>, vector<1x32x32xf32>
    %286 = vector.shape_cast %285 : vector<1x32x32xf32> to vector<32x32xf32>
    %cst_108 = arith.constant dense<0.000000e+00> : vector<8x32xf32>
    %287 = tpu.matmul %284, %286, %cst_108 {dimension_numbers = #tpu.dot_dimension_numbers<[1], [0], [0], [1], [0, 0, 1, 1], [], []>} : vector<8x32xf32>, vector<32x32xf32>, vector<8x32xf32> -> vector<8x32xf32>
    %288 = arith.addf %146, %287 : vector<8x32xf32>
    %c0_109 = arith.constant 0 : index
    %c0_110 = arith.constant 0 : index
    %c0_111 = arith.constant 0 : index
    %289 = vector.load %arg17[%c0_109, %c0_110, %c0_111] : memref<1x1x32xf32, #tpu.memory_space<vmem>>, vector<1x1x32xf32>
    %290 = vector.shape_cast %289 : vector<1x1x32xf32> to vector<1x32xf32>
    %291 = vector.broadcast %290 : vector<1x32xf32> to vector<8x32xf32>
    %292 = arith.addf %288, %291 : vector<8x32xf32>
    %c0_112 = arith.constant 0 : index
    %c0_113 = arith.constant 0 : index
    %c0_114 = arith.constant 0 : index
    %293 = vector.load %arg18[%c0_112, %c0_113, %c0_114] : memref<1x1x32xf32, #tpu.memory_space<vmem>>, vector<1x1x32xf32>
    %294 = vector.shape_cast %293 : vector<1x1x32xf32> to vector<1x32xf32>
    %295 = arith.mulf %292, %292 : vector<8x32xf32>
    %cst_115 = arith.constant dense<0.000000e+00> : vector<8xf32>
    %296 = vector.multi_reduction <add>, %295, %cst_115 [1] : vector<8x32xf32> to vector<8xf32>
    %297 = vector.shape_cast %296 : vector<8xf32> to vector<8x1xf32>
    %cst_116 = arith.constant 3.200000e+01 : f32
    %298 = vector.broadcast %cst_116 : f32 to vector<8x1xf32>
    %299 = arith.divf %297, %298 : vector<8x1xf32>
    %300 = vector.broadcast %294 : vector<1x32xf32> to vector<8x32xf32>
    %301 = arith.mulf %300, %292 : vector<8x32xf32>
    %cst_117 = arith.constant 9.99999974E-6 : f32
    %302 = vector.broadcast %cst_117 : f32 to vector<8x1xf32>
    %303 = arith.addf %299, %302 : vector<8x1xf32>
    %304 = math.rsqrt %303 : vector<8x1xf32>
    %305 = vector.broadcast %304 : vector<8x1xf32> to vector<8x32xf32>
    %306 = arith.mulf %301, %305 : vector<8x32xf32>
    %c0_118 = arith.constant 0 : index
    %c0_119 = arith.constant 0 : index
    %c0_120 = arith.constant 0 : index
    %307 = vector.load %arg19[%c0_118, %c0_119, %c0_120] : memref<1x32x128xf32, #tpu.memory_space<vmem>>, vector<1x32x128xf32>
    %308 = vector.shape_cast %307 : vector<1x32x128xf32> to vector<32x128xf32>
    %cst_121 = arith.constant dense<0.000000e+00> : vector<8x128xf32>
    %309 = tpu.matmul %306, %308, %cst_121 {dimension_numbers = #tpu.dot_dimension_numbers<[1], [0], [0], [1], [0, 0, 1, 1], [], []>} : vector<8x32xf32>, vector<32x128xf32>, vector<8x128xf32> -> vector<8x128xf32>
    %c0_122 = arith.constant 0 : index
    %c0_123 = arith.constant 0 : index
    %c0_124 = arith.constant 0 : index
    %310 = vector.load %arg20[%c0_122, %c0_123, %c0_124] : memref<1x1x128xf32, #tpu.memory_space<vmem>>, vector<1x1x128xf32>
    %311 = vector.shape_cast %310 : vector<1x1x128xf32> to vector<1x128xf32>
    %312 = vector.broadcast %311 : vector<1x128xf32> to vector<8x128xf32>
    %313 = arith.addf %309, %312 : vector<8x128xf32>
    %cst_125 = arith.constant 5.000000e-01 : f32
    %314 = vector.broadcast %cst_125 : f32 to vector<8x128xf32>
    %315 = arith.mulf %314, %313 : vector<8x128xf32>
    %cst_126 = arith.constant 0.707106769 : f32
    %316 = vector.broadcast %cst_126 : f32 to vector<8x128xf32>
    %317 = arith.mulf %313, %316 : vector<8x128xf32>
    %318 = math.erf %317 : vector<8x128xf32>
    %cst_127 = arith.constant 1.000000e+00 : f32
    %319 = vector.broadcast %cst_127 : f32 to vector<8x128xf32>
    %320 = arith.addf %319, %318 : vector<8x128xf32>
    %321 = arith.mulf %315, %320 : vector<8x128xf32>
    %c0_128 = arith.constant 0 : index
    %c0_129 = arith.constant 0 : index
    %c0_130 = arith.constant 0 : index
    %322 = vector.load %arg21[%c0_128, %c0_129, %c0_130] : memref<1x128x32xf32, #tpu.memory_space<vmem>>, vector<1x128x32xf32>
    %323 = vector.shape_cast %322 : vector<1x128x32xf32> to vector<128x32xf32>
    %cst_131 = arith.constant dense<0.000000e+00> : vector<8x32xf32>
    %324 = tpu.matmul %321, %323, %cst_131 {dimension_numbers = #tpu.dot_dimension_numbers<[1], [0], [0], [1], [0, 0, 1, 1], [], []>} : vector<8x128xf32>, vector<128x32xf32>, vector<8x32xf32> -> vector<8x32xf32>
    %325 = arith.addf %292, %324 : vector<8x32xf32>
    %c0_132 = arith.constant 0 : index
    %c0_133 = arith.constant 0 : index
    %c0_134 = arith.constant 0 : index
    %326 = vector.load %arg22[%c0_132, %c0_133, %c0_134] : memref<1x1x32xf32, #tpu.memory_space<vmem>>, vector<1x1x32xf32>
    %327 = vector.shape_cast %326 : vector<1x1x32xf32> to vector<1x32xf32>
    %328 = vector.broadcast %327 : vector<1x32xf32> to vector<8x32xf32>
    %329 = arith.addf %325, %328 : vector<8x32xf32>
    %c0_135 = arith.constant 0 : index
    %c0_136 = arith.constant 0 : index
    %c0_137 = arith.constant 0 : index
    %330 = vector.load %arg23[%c0_135, %c0_136, %c0_137] : memref<1x8x32xf32, #tpu.memory_space<vmem>>, vector<1x8x32xf32>
    %331 = vector.shape_cast %330 : vector<1x8x32xf32> to vector<8x32xf32>
    %332 = vector.shape_cast %329 : vector<8x32xf32> to vector<1x8x32xf32>
    tpu.vector_store %arg23[%c0_135, %c0_136, %c0_137], %332 {strides = array<i32>} : memref<1x8x32xf32, #tpu.memory_space<vmem>>, vector<1x8x32xf32>,
    return
  }
  func.func @transform_0(%arg0: i32, %arg1: i32) -> (i32, i32, i32) {
    %c0_i32 = arith.constant 0 : i32
    %c0_i32_0 = arith.constant 0 : i32
    %c0_i32_1 = arith.constant 0 : i32
    return %arg0, %c0_i32, %c0_i32_0 : i32, i32, i32
  }
  func.func @transform_1(%arg0: i32, %arg1: i32) -> (i32, i32, i32) {
    %c0_i32 = arith.constant 0 : i32
    %c0_i32_0 = arith.constant 0 : i32
    %c0_i32_1 = arith.constant 0 : i32
    return %arg0, %c0_i32, %c0_i32_0 : i32, i32, i32
  }
  func.func @transform_2(%arg0: i32, %arg1: i32) -> (i32, i32, i32) {
    %c0_i32 = arith.constant 0 : i32
    %c0_i32_0 = arith.constant 0 : i32
    %c0_i32_1 = arith.constant 0 : i32
    return %arg0, %c0_i32, %c0_i32_0 : i32, i32, i32
  }
  func.func @transform_3(%arg0: i32, %arg1: i32) -> (i32, i32, i32) {
    %c0_i32 = arith.constant 0 : i32
    %c0_i32_0 = arith.constant 0 : i32
    %c0_i32_1 = arith.constant 0 : i32
    return %arg0, %c0_i32, %c0_i32_0 : i32, i32, i32
  }
  func.func @transform_4(%arg0: i32, %arg1: i32) -> (i32, i32, i32) {
    %c0_i32 = arith.constant 0 : i32
    %c0_i32_0 = arith.constant 0 : i32
    %c0_i32_1 = arith.constant 0 : i32
    return %arg1, %c0_i32, %c0_i32_0 : i32, i32, i32
  }
  func.func @transform_5(%arg0: i32, %arg1: i32) -> (i32, i32, i32) {
    %c0_i32 = arith.constant 0 : i32
    %c0_i32_0 = arith.constant 0 : i32
    %c0_i32_1 = arith.constant 0 : i32
    return %arg1, %c0_i32, %c0_i32_0 : i32, i32, i32
  }
  func.func @transform_6(%arg0: i32, %arg1: i32) -> (i32, i32, i32) {
    %c0_i32 = arith.constant 0 : i32
    %c0_i32_0 = arith.constant 0 : i32
    %c0_i32_1 = arith.constant 0 : i32
    return %arg1, %c0_i32, %c0_i32_0 : i32, i32, i32
  }
  func.func @transform_7(%arg0: i32, %arg1: i32) -> (i32, i32, i32) {
    %c0_i32 = arith.constant 0 : i32
    %c0_i32_0 = arith.constant 0 : i32
    %c0_i32_1 = arith.constant 0 : i32
    return %arg1, %c0_i32, %c0_i32_0 : i32, i32, i32
  }
  func.func @transform_8(%arg0: i32, %arg1: i32) -> (i32, i32, i32) {
    %c0_i32 = arith.constant 0 : i32
    %c0_i32_0 = arith.constant 0 : i32
    %c0_i32_1 = arith.constant 0 : i32
    return %arg1, %c0_i32, %c0_i32_0 : i32, i32, i32
  }
  func.func @transform_9(%arg0: i32, %arg1: i32) -> (i32, i32, i32) {
    %c0_i32 = arith.constant 0 : i32
    %c0_i32_0 = arith.constant 0 : i32
    %c0_i32_1 = arith.constant 0 : i32
    return %arg1, %c0_i32, %c0_i32_0 : i32, i32, i32
  }
  func.func @transform_10(%arg0: i32, %arg1: i32) -> (i32, i32, i32) {
    %c0_i32 = arith.constant 0 : i32
    %c0_i32_0 = arith.constant 0 : i32
    %c0_i32_1 = arith.constant 0 : i32
    return %arg1, %c0_i32, %c0_i32_0 : i32, i32, i32
  }
  func.func @transform_11(%arg0: i32, %arg1: i32) -> (i32, i32, i32) {
    %c0_i32 = arith.constant 0 : i32
    %c0_i32_0 = arith.constant 0 : i32
    %c0_i32_1 = arith.constant 0 : i32
    return %arg1, %c0_i32, %c0_i32_0 : i32, i32, i32
  }
  func.func @transform_12(%arg0: i32, %arg1: i32) -> (i32, i32, i32) {
    %c0_i32 = arith.constant 0 : i32
    %c0_i32_0 = arith.constant 0 : i32
    %c0_i32_1 = arith.constant 0 : i32
    return %arg1, %c0_i32, %c0_i32_0 : i32, i32, i32
  }
  func.func @transform_13(%arg0: i32, %arg1: i32) -> (i32, i32, i32) {
    %c0_i32 = arith.constant 0 : i32
    %c0_i32_0 = arith.constant 0 : i32
    %c0_i32_1 = arith.constant 0 : i32
    return %arg1, %c0_i32, %c0_i32_0 : i32, i32, i32
  }
  func.func @transform_14(%arg0: i32, %arg1: i32) -> (i32, i32, i32) {
    %c0_i32 = arith.constant 0 : i32
    %c0_i32_0 = arith.constant 0 : i32
    %c0_i32_1 = arith.constant 0 : i32
    return %arg1, %c0_i32, %c0_i32_0 : i32, i32, i32
  }
  func.func @transform_15(%arg0: i32, %arg1: i32) -> (i32, i32, i32) {
    %c0_i32 = arith.constant 0 : i32
    %c0_i32_0 = arith.constant 0 : i32
    %c0_i32_1 = arith.constant 0 : i32
    return %arg1, %c0_i32, %c0_i32_0 : i32, i32, i32
  }
  func.func @transform_16(%arg0: i32, %arg1: i32) -> (i32, i32, i32) {
    %c0_i32 = arith.constant 0 : i32
    %c0_i32_0 = arith.constant 0 : i32
    %c0_i32_1 = arith.constant 0 : i32
    return %arg1, %c0_i32, %c0_i32_0 : i32, i32, i32
  }
  func.func @transform_17(%arg0: i32, %arg1: i32) -> (i32, i32, i32) {
    %c0_i32 = arith.constant 0 : i32
    %c0_i32_0 = arith.constant 0 : i32
    %c0_i32_1 = arith.constant 0 : i32
    return %arg1, %c0_i32, %c0_i32_0 : i32, i32, i32
  }
  func.func @transform_18(%arg0: i32, %arg1: i32) -> (i32, i32, i32) {
    %c0_i32 = arith.constant 0 : i32
    %c0_i32_0 = arith.constant 0 : i32
    %c0_i32_1 = arith.constant 0 : i32
    return %arg1, %c0_i32, %c0_i32_0 : i32, i32, i32
  }
  func.func @transform_19(%arg0: i32, %arg1: i32) -> (i32, i32, i32) {
    %c0_i32 = arith.constant 0 : i32
    %c0_i32_0 = arith.constant 0 : i32
    %c0_i32_1 = arith.constant 0 : i32
    return %arg1, %c0_i32, %c0_i32_0 : i32, i32, i32
  }
  func.func @transform_20(%arg0: i32, %arg1: i32) -> (i32, i32, i32) {
    %c0_i32 = arith.constant 0 : i32
    %c0_i32_0 = arith.constant 0 : i32
    %c0_i32_1 = arith.constant 0 : i32
    return %arg1, %c0_i32, %c0_i32_0 : i32, i32, i32
  }
  func.func @transform_21(%arg0: i32, %arg1: i32) -> (i32, i32, i32) {
    %c0_i32 = arith.constant 0 : i32
    %c0_i32_0 = arith.constant 0 : i32
    %c0_i32_1 = arith.constant 0 : i32
    return %arg0, %c0_i32, %c0_i32_0 : i32, i32, i32
  }
}

</mosaic_0001>

<bundles_post_ra>
// kernel: forward.5
= control target key start
LH: loop header
LB: loop body
LE: loop exit
PB: predicated region body
PF: predicated region fallthrough
CT: control target
= control target key end

     0   :  { %vm20_vm0 = vcmask 261120   ;;  %s365_s0 = inlined_call_operand.vmem [shape: f32[16,32], index: 0, kind: input, shape index: {}]   ;;  %s366_s1 = inlined_call_operand.vmem [shape: f32[1,32], index: 1, kind: input, shape index: {}]   ;;  %s367_s2 = inlined_call_operand.vmem [shape: f32[64,32], index: 2, kind: input, shape index: {}]   ;;  %s368_s3 = inlined_call_operand.hbm [shape: f32[16,64], index: 3, kind: output, shape index: {}]  }
   0x1   :  { %v15_v0 = vld [vmem:[%s365_s0] sm:$0xff]  ;;  %v16_v1 = vld [vmem:[%s365_s0 + $0x8] sm:$0xff]  ;;  %vm302_vm1 = vmpackc.low %vm20_vm0, %vm20_vm0 }
   0x2   :  { %v18_v2 = vmul.f32 %v15_v0, %v15_v0  ;;  %v19_v4 = vmul.f32 %v16_v1, %v16_v1  ;;  %v44_v5 = vld [vmem:[%s367_s2] sm:$0xff]  ;;  %v45_v6 = vld [vmem:[%s367_s2 + $0x8] sm:$0xff]  ;;  %v46_v8 = vld [vmem:[%s367_s2 + $0x10] sm:$0xff] }
   0x3   :  { %v216_v7 = vpack.c.bf16 %v45_v6, %v44_v5  ;;  %v47_v9 = vld [vmem:[%s367_s2 + $0x18] sm:$0xff] }
   0x4   :  { %8 = vsyncpa [#allocation3], 0  ;;  %v21_v10 = vsel %vm20_vm0, %v18_v2, 0.0  ;;  %v222_v11 = vpack.c.bf16 %v47_v9, %v46_v8  ;;  %v24_v12 = vsel %vm20_vm0, %v19_v4, 0.0  ;;  %v48_v13 = vld [vmem:[%s367_s2 + $0x20] sm:$0xff]  ;;  %v49_v14 = vld [vmem:[%s367_s2 + $0x28] sm:$0xff] }
   0x5   :  { %22 = vadd.xlane.f32.xlu0 %v21_v10  ;;  %218 = vmatprep.subr.msk.bf16.mxu0 %vm302_vm1, %v216_v7  ;;  %v228_v15 = vpack.c.bf16 %v49_v14, %v48_v13  ;;  %v50_v16 = vld [vmem:[%s367_s2 + $0x30] sm:$0xff]  ;;  %v51_v17 = vld [vmem:[%s367_s2 + $0x38] sm:$0xff]  ;;  %v176_v25 = vld [vmem:[%s366_s1] ss:$0 sm:$0xff]  ;;  %s271_s2 = smov [#allocation2]   ;;  %vm157_vm2 = vcmask 523264  }
   0x6   :  { %221 = vmatpush3.bf16.xpose.msk.msra.mxu0 %vm302_vm1, %v216_v7  ;;  %v234_v18 = vpack.c.bf16 %v51_v17, %v50_v16  ;;  %v36_v26 = vmul.f32 %v176_v25, %v15_v0  ;;  %v37_v28 = vmul.f32 %v176_v25, %v16_v1  ;;  %s165_s6 = sshll.u32 %s271_s2, 4  ;;  %s166_s6 = int_to_ptr.vmem [resolvable:$true] %s165_s6 }
   0x7   :  { %224 = vmatprep.subr.msk.bf16.mxu0 %vm302_vm1, %v222_v11  ;;  %s247_s1 = scalar_lea.vmem %s166_s6, 256  ;;  %p252_p1 = scmp.lt.s32.totalorder %s166_s6, %s166_s6 }
   0x8   :  { %p248_p0 = scmp.ne.s32.totalorder %s166_s6, %s247_s1  ;;  %p253_p2 = scmp.lt.s32.totalorder %s247_s1, %s247_s1 }
   0x9   :  { %25 = vadd.xlane.f32.xlu0 %v24_v12 }
   0xa   :  { %p254_p3 = por %p253_p2, %p252_p1 }
   0xc   :  { %p255_p4 = pnand %p254_p3, %p248_p0 }
   0xe   :  { %227 = vmatpush3.bf16.xpose.msk.msra.mxu0 %vm302_vm1, %v222_v11 }
   0xf   :  { %230 = vmatprep.subr.msk.bf16.mxu0 %vm302_vm1, %v228_v15 }
  0x16   :  { %233 = vmatpush3.bf16.xpose.msk.msra.mxu0 %vm302_vm1, %v228_v15 }
  0x17   :  { %236 = vmatprep.subr.msk.bf16.mxu0 %vm302_vm1, %v234_v18 }
  0x1e   :  { %239 = vmatpush3.bf16.xpose.msk.msra.mxu0 %vm302_vm1, %v234_v18 }
  0x92   :  { %v23_v19 = vpop.xlane.xlu0 %22 }
  0x93   :  { %v28_v20 = vmul.f32 0.03125, %v23_v19 }
  0x95   :  { %v38_v21 = vadd.f32 1e-05, %v28_v20 }
  0x96   :  { %v26_v22 = vpop.xlane.xlu0 %25 }
  0x97   :  { %243 = vrsqrt.f32 %v38_v21  ;;  %v29_v23 = vmul.f32 0.03125, %v26_v22 }
  0x99   :  { %v39_v24 = vadd.f32 1e-05, %v29_v23 }
  0x9b   :  { %245 = vrsqrt.f32 %v39_v24 }
  0xa1   :  { %v244_v27 = vpop.eup %243 }
  0xa2   :  { %v42_v29 = vmul.f32 %v244_v27, %v36_v26 }
  0xa4   :  { %213 = vmatprep.mubr.msk.f32.mxu0 %vm20_vm0, %v42_v29 }
  0xa5   :  { %v246_v30 = vpop.eup %245 }
  0xa6   :  { %v43_v31 = vmul.f32 %v246_v30, %v37_v28 }
  0xa8   :  { %214 = vmatmul.mubr.msk.f32.vlgmr.msra.gmra.mrb[0].mxu0 %vm20_vm0, %v43_v31 }
 0x17b   :  { %v215_v32 = vpop.f32.mrb[0].mxu0 }
 0x17c   :  { %159 = vst.msk [vmem:[#allocation2 + $0x8] sm:$0xff] %vm157_vm2, %v215_v32  ;;  %v148_v33 = vpop.f32.mrb[1].mxu0 }
 0x17d   :  { %158 = vst.msk [vmem:[#allocation2] sm:$0xff] %vm157_vm2, %v148_v33 }
 0x17e   :  { %258 = shalt.err (!%p255_p4)
}
 0x17f   :  { %s259_s9 = scalar_lea.hbm %s368_s3, 256 }
 0x180   :  { %p260_p5 = scmp.ne.s32.totalorder %s368_s3, %s259_s9  ;;  %p263_p6 = scmp.lt.u32.totalorder %s259_s9, %s368_s3 }
 0x182   :  { %p265_p7 = pnand %p263_p6, %p260_p5 }
 0x184   :  { %268 = shalt.err (!%p265_p7)
}
 0x185   :  { %s272_s14 = smov 128   ;;  %s273_s15 = smov 8  }
 0x186   :  { %171 = dma.vmem_to_hbm [thread:$0]  %s166_s6, 256, %s368_s3, [#allocation3], %s272_s14, %s272_s14, %s273_s15  }
 0x187   :  { %269 = dma.done.wait [#allocation3], 256  }
 0x188   :  { %270 = vsyncadd [#allocation3], 4294967040 }
 0x189   :  { %175 = vsyncpa [#allocation3], 1 }

// kernel: forward.3
= control target key start
LH: loop header
LB: loop body
LE: loop exit
PB: predicated region body
PF: predicated region fallthrough
CT: control target
= control target key end

     0   :  { %s2313_s21 = smov 0   ;;  %s2315_s22 = smov 0   ;;  %s2594_s0 = inlined_call_operand.vmem [shape: f32[2,8,32], index: 0, kind: input, shape index: {}]   ;;  %s2595_s1 = inlined_call_operand.vmem [shape: f32[2,8,8], index: 1, kind: input, shape index: {}]   ;;  %s2596_s2 = inlined_call_operand.vmem [shape: f32[2,1,32], index: 2, kind: input, shape index: {}]   ;;  %s2597_s3 = inlined_call_operand.vmem [shape: f32[2,32,96], index: 3, kind: input, shape index: {}]   ;;  %s2598_s4 = inlined_call_operand.vmem [shape: f32[2,1,96], index: 4, kind: input, shape index: {}]   ;;  %s2599_s5 = inlined_call_operand.vmem [shape: f32[2,32,32], index: 5, kind: input, shape index: {}]   ;;  %s2600_s6 = inlined_call_operand.vmem [shape: f32[2,1,32], index: 6, kind: input, shape index: {}]   ;;  %s2601_s7 = inlined_call_operand.vmem [shape: f32[2,1,32], index: 7, kind: input, shape index: {}]   ;;  %s2602_s8 = inlined_call_operand.vmem [shape: f32[2,32,128], index: 8, kind: input, shape index: {}]   ;;  %s2603_s9 = inlined_call_operand.vmem [shape: f32[2,1,128], index: 9, kind: input, shape index: {}]   ;;  %s2604_s10 = inlined_call_operand.vmem [shape: f32[2,128,32], index: 10, kind: input, shape index: {}]   ;;  %s2605_s11 = inlined_call_operand.vmem [shape: f32[2,1,32], index: 11, kind: input, shape index: {}]   ;;  %s2606_s12 = inlined_call_operand.vmem [shape: f32[2,8,32], index: 12, kind: output, shape index: {}]  }
   0x1   :  { %2611 = sst [smem:[#allocation8_spill]] %s2594_s0  ;;  %s2317_s23 = smov 0  }
   0x2   :  { %2612 = sst [smem:[#allocation9_spill]] %s2595_s1  ;;  %s2319_s24 = smov 0  }
   0x3   :  { %2613 = sst [smem:[#allocation10_spill]] %s2597_s3  ;;  %s2321_s25 = smov 0  }
   0x4   :  { %2614 = sst [smem:[#allocation11_spill]] %s2599_s5 }
   0x5 LB: > { %2615 = sst [smem:[#allocation2_spill]] %s2225_s21  ;;  %s31_s26 = sadd.s32 1, %s2233_s23  ;;  %s2241_s25 = sphi %s2321_s25, %s22_s25   ;;  %s2237_s24 = sphi %s2319_s24, %s2635_s24   ;;  %s2233_s23 = sphi %s2317_s23, %s2634_s23   ;;  %s2229_s22 = sphi %s2315_s22, %s2633_s22   ;;  %s2225_s21 = sphi %s2313_s21, %s2632_s21  }
   0x6   : > { %2616 = sst [smem:[#allocation3_spill]] %s2233_s23  ;;  %s34_s27 = sadd.s32 1, %s2237_s24 }
   0x7   : > { %2617 = sst [smem:[#allocation4_spill]] %s2237_s24  ;;  %p32_p0 = scmp.ge.s32.totalorder %s31_s26, 2 }
   0x8   : > { %2618 = sst [smem:[#allocation5_spill]] %s2241_s25  ;;  %p1888_p1 = scmp.ge.s32.totalorder %s2241_s25, 1 }
   0x9   : > { %p470_p2 = scmp.lt.s32.totalorder %s2241_s25, 5  ;;  %s2637_s26 = smov (%p32_p0, %s31_s26), 0 }
   0xa   : > { %2619 = sst [smem:[#allocation6_spill]] %s2637_s26  ;;  %s2639_s27 = smov (!%p32_p0, %s34_s27), %s2237_s24 }
   0xb   : > { %p471_p3 = pnand %p1888_p1, %p470_p2  ;;  %p36_p4 = scmp.ge.s32.totalorder %s2639_s27, 2 }
   0xc   : > { %p552_p5 = scmp.lt.s32.totalorder (!%p471_p3), %s2229_s22, 1  ;;  %p560_p6 = scmp.lt.s32.totalorder (!%p471_p3), %s2225_s21, 1 }
   0xd   : > { %s2641_s27 = smov (%p36_p4, %s2639_s27), 0  ;;  %474 = sbr.rel (%p471_p3) target bundleno = 2134 (0x856), region = 68 }
   0xe   : > { %2620 = sst [smem:[#allocation7_spill]] %s2641_s27  ;;  %s2621_s0 = sld [smem:[#allocation8_spill]] (!%p471_p3) }
   0xf   : > { %s2623_s3 = sld [smem:[#allocation10_spill]] (!%p471_p3)  ;;  %s2624_s5 = sld [smem:[#allocation11_spill]] (!%p471_p3) }
  0x14   : > { %s2643_s22 = smov (!%p552_p5, %s2229_s22), 1 }
  0x15   : > { %s2347_s28 = scalar_select %p560_p6, %s2225_s21, 1 }
  0x16   : > { %s2349_s29 = sshll.u32 %s2643_s22, 3 }
  0x17   : > { %s555_s14 = scalar_lea.vmem %s2621_s0, %s2349_s29  ;;  %s1928_s27 = sshll.u32 %s2347_s28, 5 }
  0x18   : > { %s567_s22 = scalar_lea.vmem %s2623_s3, %s1928_s27  ;;  %s2374_s0 = scalar_lea.vmem %s2624_s5, %s1928_s27 }
  0x19   : > { %s578_s17 = scalar_lea.vmem %s2600_s6, %s2347_s28  ;;  %s2387_s26 = scalar_lea.vmem %s2602_s8, %s1928_s27 }
  0x1a   : > { %s589_s30 = scalar_lea.vmem %s2603_s9, %s2347_s28  ;;  %s1931_s21 = sshll.u32 %s2347_s28, 7 }
  0x1b   : > { %s2397_s5 = scalar_lea.vmem %s2604_s10, %s1931_s21  ;;  %s597_s18 = scalar_lea.vmem %s2605_s11, %s2347_s28 }
  0x1c   : > { %s2407_s1 = scalar_lea.vmem %s2606_s12, %s2349_s29  ;;  %s2625_s27 = sld [smem:[#allocation2_spill]] }
  0x22   : > { %p1900_p7 = scmp.ne.s32.totalorder %s2625_s27, 0 }
  0x23   : > { %v606_v0 = vld [vmem:[%s555_s14] sm:$0xff] (!%p1900_p7)  ;;  %vm607_vm0 = vcmask (!%p1900_p7), 261120  }
  0x24   : > { %605 = sbr.rel (%p1900_p7) target bundleno = 43 (0x2b), region = 72  ;;  %608 = vst.msk [vmem:[%s2407_s1] sm:$0xff] (!%p1900_p7), %vm607_vm0, %v606_v0 }
  0x2b PF: > { %v2412_v1 = vld [vmem:[%s2407_s1] sm:$0xff]  ;;  %vm612_vm1 = vcmask 261120   ;;  %v629_v5 = vld [vmem:[%s567_s22 + $0x8] sm:$0xff]  ;;  %v630_v6 = vld [vmem:[%s567_s22 + $0x10] sm:$0xff]  ;;  %v2243_v7 = vmov 0.0|0.0   ;;  %vm2244_vm2 = vmmov 0   ;;  %s2626_s20 = scalar_lea.vmem %s2596_s2, %s2347_s28  ;;  %v713_v19 = vlaneseq  ;;  %s2627_s23 = scalar_lea.vmem %s2598_s4, %s2347_s28 }
  0x2c   : > { %v611_v2 = vmul.f32 %v2412_v1, %v2412_v1  ;;  %v628_v4 = vld [vmem:[%s567_s22] sm:$0xff]  ;;  %2088 = vmatprep.subr.bf16.mxu0 %v2243_v7  ;;  %v631_v9 = vld [vmem:[%s567_s22 + $0x18] sm:$0xff]  ;;  %v2245_v10 = vmov 0.0   ;;  %s2246_s25 = smov 96   ;;  %s2247_s21 = smov 64   ;;  %vm801_vm13 = vcmask 64512  }
  0x2d   : > { %v2089_v8 = vpack.c.bf16 %v629_v5, %v628_v4  ;;  %1988 = vmatprep.mubr.msk.f32.mxu0 %vm2244_vm2, %v2245_v10  ;;  %1996 = vmatprep.subr.mxu1 %v2245_v10  ;;  %v2092_v11 = vpack.c.bf16 %v631_v9, %v630_v6  ;;  %v1901_v15 = vld [vmem:[%s2626_s20] ss:$0 sm:$0xff]  ;;  %v714_v21 = vand.u32 127, %v713_v19  ;;  %s2628_s16 = sld [smem:[#allocation9_spill]]  ;;  %s2630_s27 = scalar_lea.vmem %s2601_s7, %s2347_s28 }
  0x2e   : > { %v613_v3 = vsel %vm612_vm1, %v611_v2, 0.0  ;;  %1998 = vmatprep.mubr.msk.f32.mxu1 %vm2244_vm2, %v2245_v10  ;;  %v624_v16 = vmul.f32 %v1901_v15, %v2412_v1  ;;  %v1902_v20 = vld [vmem:[%s2627_s23] ss:$0 sm:$0xff] }
  0x2f   : > { %614 = vadd.xlane.f32.xlu0 %v613_v3  ;;  %2090 = vmatpush3.bf16.msra.mxu0 %v2089_v8  ;;  %vm716_vm3 = vcmp.lt.s32.totalorder %v714_v21, 8  ;;  %vm1069_vm4 = vcmp.ge.s32.totalorder %v714_v21, 16  ;;  %vm1070_vm5 = vcmp.lt.s32.totalorder %v714_v21, 24  ;;  %vm818_vm7 = vcmp.ge.s32.totalorder %v714_v21, 8 }
  0x30   : > { %2091 = vmatprep.subr.bf16.mxu0 %v2243_v7  ;;  %v1904_v25 = vsel %vm716_vm3, 1.0, %v2245_v10  ;;  %vm1071_vm6 = vmand %vm1069_vm4, %vm1070_vm5  ;;  %vm819_vm8 = vcmp.lt.s32.totalorder %v714_v21, 16  ;;  %vm1244_vm10 = vcmp.ge.s32.totalorder %v714_v21, 24  ;;  %vm1245_vm11 = vcmp.lt.s32.totalorder %v714_v21, 32 }
  0x31   : > { %v1912_v26 = vsel %vm1071_vm6, 1.0, %v2245_v10  ;;  %vm820_vm9 = vmand %vm818_vm7, %vm819_vm8 }
  0x32   : > { %v1907_v27 = vsel %vm820_vm9, 1.0, %v2245_v10  ;;  %vm1246_vm12 = vmand %vm1244_vm10, %vm1245_vm11 }
  0x33   : > { %2093 = vmatpush3.bf16.msra.mxu0 %v2092_v11  ;;  %v1916_v32 = vsel %vm1246_vm12, 1.0, %v2245_v10  ;;  %s2629_s19 = scalar_lea.vmem %s2628_s16, %s2349_s29 }
  0x34   : > { %1991 = vmatprep.subr.mxu0 %v2245_v10  ;;  %v712_v36 = vld [vmem:[%s2629_s19] sm:$0xff] }
  0xbc   : > { %v615_v12 = vpop.xlane.xlu0 %614 }
  0xbd   : > { %v617_v13 = vmul.f32 0.03125, %v615_v12 }
  0xbf   : > { %v625_v14 = vadd.f32 1e-05, %v617_v13 }
  0xc1   : > { %2181 = vrsqrt.f32 %v625_v14 }
  0xcb   : > { %v2182_v17 = vpop.eup %2181 }
  0xcc   : > { %v627_v18 = vmul.f32 %v2182_v17, %v624_v16 }
  0xce   : > { %1989 = vmatmul.mubr.msk.f32.vlgmr.msra.gmra.mrb[0].mxu0 %vm612_vm1, %v627_v18 }
  0xcf   : > { %1993 = vmatprep.mubr.msk.f32.mxu0 %vm2244_vm2, %v2245_v10 }
 0x1a1   : > { %v708_v22 = vpop.f32.mrb[0].mxu0 }
 0x1a2   : > { %v2439_v23 = vadd.f32 %v1902_v20, %v708_v22  ;;  %v1990_v24 = vpop.f32.mrb[1].mxu0 }
 0x1a4   : > { %722 = vrot.lane.b32.xlu0 %v2439_v23, %s2246_s25  ;;  %v720_v29 = vmul.f32 %v1904_v25, %v2439_v23  ;;  %v823_v30 = vmul.f32 %v1907_v27, %v2439_v23  ;;  %v1074_v31 = vmul.f32 %v1912_v26, %v2439_v23  ;;  %v1249_v33 = vmul.f32 %v1916_v32, %v2439_v23 }
 0x1a8   : > { %814 = vrot.lane.b32.xlu0 %v1904_v25, %s2247_s21 }
 0x1ac   : > { %1162 = vrot.lane.b32.xlu0 %v1912_v26, %s2247_s21 }
 0x216   : > { %v723_v28 = vpop.permute.xlu0 %722 }
 0x217   : > { %1992 = vmatpush3.xpose.msk.msra.mxu0 %vm612_vm1, %v723_v28  ;;  %1997 = vmatpush3.xpose.msk.msra.mxu1 %vm612_vm1, %v723_v28 }
 0x218   : > { %2011 = vmatprep.subr.mxu1 %v2245_v10  ;;  %2001 = vmatprep.subr.mxu0 %v2245_v10 }
 0x21a   : > { %1994 = vmatmul.mubr.msk.f32.vlgmr.msra.gmra.mrb[2].mxu0 %vm612_vm1, %v720_v29  ;;  %1999 = vmatmul.mubr.msk.f32.vlgmr.msra.gmra.mrb[0].mxu1 %vm612_vm1, %v823_v30  ;;  %v815_v14 = vpop.permute.xlu0 %814 }
 0x21b   : > { %2012 = vmatpush3.xpose.msk.msra.mxu1 %vm612_vm1, %v723_v28  ;;  %2013 = vmatprep.mubr.msk.f32.mxu1 %vm2244_vm2, %v2245_v10  ;;  %v817_v16 = vmul.f32 %v815_v14, %v2439_v23 }
 0x21c   : > { %2021 = vmatprep.subr.mxu1 %v2245_v10  ;;  %2003 = vmatprep.mubr.msk.f32.mxu0 %vm2244_vm2, %v2245_v10 }
 0x21e   : > { %2014 = vmatmul.mubr.msk.f32.vlgmr.msra.gmra.mrb[2].mxu1 %vm612_vm1, %v1074_v31  ;;  %v1163_v17 = vpop.permute.xlu0 %1162 }
 0x21f   : > { %2022 = vmatpush3.xpose.msk.msra.mxu1 %vm612_vm1, %v723_v28  ;;  %2023 = vmatprep.mubr.msk.f32.mxu1 %vm2244_vm2, %v2245_v10  ;;  %v1165_v18 = vmul.f32 %v1163_v17, %v2439_v23 }
 0x220   : > { %2106 = vmatprep.subr.bf16.mxu1 %v2243_v7 }
 0x222   : > { %2024 = vmatmul.mubr.msk.f32.vlgmr.msra.gmra.mrb[4].mxu1 %vm612_vm1, %v1249_v33 }
 0x223   : > { %2085 = vmatprep.mubr.msk.f32.mxu1 %vm2244_vm2, %v2245_v10 }
 0x2ed   : > { %v795_v34 = vpop.f32.mrb[2].mxu0  ;;  %v893_v35 = vpop.f32.mrb[0].mxu1 }
 0x2ee   : > { %v799_v37 = vmul.f32 0.35355338, %v795_v34  ;;  %v897_v38 = vmul.f32 0.35355338, %v893_v35  ;;  %v1995_v39 = vpop.f32.mrb[3].mxu0  ;;  %v2000_v40 = vpop.f32.mrb[1].mxu1 }
 0x2f0   : > { %v898_v41 = vadd.f32 %v897_v38, %v712_v36  ;;  %v800_v46 = vadd.f32 %v799_v37, %v712_v36  ;;  %v1420_v37 = vld [vmem:[%s2374_s0 + $0x8] sm:$0xff] }
 0x2f1   : > { %v1144_v42 = vpop.f32.mrb[2].mxu1 }
 0x2f2   : > { %v1148_v43 = vmul.f32 0.35355338, %v1144_v42  ;;  %v2015_v44 = vpop.f32.mrb[3].mxu1  ;;  %v899_v45 = vsel %vm801_vm13, %v898_v41, -inf  ;;  %v802_v50 = vsel %vm801_vm13, %v800_v46, -inf  ;;  %v1422_v42 = vld [vmem:[%s2374_s0 + $0x18] sm:$0xff] }
 0x2f3   : > { %900 = vmax.xlane.f32.xlu1 %v899_v45 }
 0x2f4   : > { %v1149_v51 = vadd.f32 %v1148_v43, %v712_v36 }
 0x2f5   : > { %v1319_v47 = vpop.f32.mrb[4].mxu1 }
 0x2f6   : > { %v1323_v48 = vmul.f32 0.35355338, %v1319_v47  ;;  %v2025_v49 = vpop.f32.mrb[5].mxu1  ;;  %v1150_v52 = vsel %vm801_vm13, %v1149_v51, -inf  ;;  %v1921_v47 = vld [vmem:[%s578_s17] ss:$0 sm:$0xff] }
 0x2f7   : > { %803 = vmax.xlane.f32.xlu1 %v802_v50 }
 0x2f8   : > { %v1324_v53 = vadd.f32 %v1323_v48, %v712_v36  ;;  %v1419_v36 = vld [vmem:[%s2374_s0] sm:$0xff] }
 0x2f9   : > { %v2095_v39 = vpack.c.bf16 %v1420_v37, %v1419_v36  ;;  %v1925_v36 = vld [vmem:[%s597_s18] ss:$0 sm:$0xff] }
 0x2fa   : > { %v1325_v54 = vsel %vm801_vm13, %v1324_v53, -inf }
 0x2fb   : > { %1151 = vmax.xlane.f32.xlu1 %v1150_v52  ;;  %v1521_v52 = vld [vmem:[%s2387_s26] sm:$0xff] }
 0x2ff   : > { %1326 = vmax.xlane.f32.xlu1 %v1325_v54 }
 0x310   : > { %911 = vrot.lane.b32.xlu1 %v1907_v27, %s2247_s21 }
 0x314   : > { %1337 = vrot.lane.b32.xlu1 %v1916_v32, %s2247_s21 }
 0x380   : > { %v901_v55 = vpop.xlane.xlu1 %900 }
 0x381   : > { %v902_v56 = vsub.f32 %v898_v41, %v901_v55  ;;  %v1421_v41 = vld [vmem:[%s2374_s0 + $0x10] sm:$0xff]  ;;  %v1524_v55 = vld [vmem:[%s2387_s26 + $0x18] sm:$0xff] }
 0x382   : > { %v2098_v43 = vpack.c.bf16 %v1422_v42, %v1421_v41 }
 0x383   : > { %v903_v57 = vmul.f32 1.442695, %v902_v56 }
 0x384   : > { %v804_v58 = vpop.xlane.xlu1 %803 }
 0x385   : > { %2183 = vpow2.f32 %v903_v57  ;;  %v805_v59 = vsub.f32 %v800_v46, %v804_v58  ;;  %v1610_v57 = vld [vmem:[%s2397_s5] sm:$0xff]  ;;  %v1611_v58 = vld [vmem:[%s2397_s5 + $0x8] sm:$0xff] }
 0x387   : > { %v806_v60 = vmul.f32 1.442695, %v805_v59  ;;  %v1612_v59 = vld [vmem:[%s2397_s5 + $0x10] sm:$0xff] }
 0x388   : > { %v1152_v61 = vpop.xlane.xlu1 %1151 }
 0x389   : > { %2185 = vpow2.f32 %v806_v60  ;;  %v1153_v62 = vsub.f32 %v1149_v51, %v1152_v61  ;;  %v2107_v60 = vpack.c.bf16 %v1611_v58, %v1610_v57  ;;  %v1613_v61 = vld [vmem:[%s2397_s5 + $0x18] sm:$0xff] }
 0x38b   : > { %v1154_v63 = vmul.f32 1.442695, %v1153_v62  ;;  %2108 = vmatpush3.bf16.msra.mxu1 %v2107_v60  ;;  %v2110_v62 = vpack.c.bf16 %v1613_v61, %v1612_v59 }
 0x38c   : > { %v1327_v0 = vpop.xlane.xlu1 %1326  ;;  %2109 = vmatprep.subr.bf16.mxu1 %v2243_v7 }
 0x38d   : > { %2187 = vpow2.f32 %v1154_v63  ;;  %v1328_v2 = vsub.f32 %v1324_v53, %v1327_v0  ;;  %v1522_v53 = vld [vmem:[%s2387_s26 + $0x8] sm:$0xff]  ;;  %v1614_v63 = vld [vmem:[%s2397_s5 + $0x20] sm:$0xff] }
 0x38e   : > { %v2101_v54 = vpack.c.bf16 %v1522_v53, %v1521_v52  ;;  %v1615_v0 = vld [vmem:[%s2397_s5 + $0x28] sm:$0xff] }
 0x38f   : > { %v2184_v3 = vpop.eup %2183  ;;  %v1329_v4 = vmul.f32 1.442695, %v1328_v2  ;;  %2111 = vmatpush3.bf16.msra.mxu1 %v2110_v62  ;;  %v2113_v2 = vpack.c.bf16 %v1615_v0, %v1614_v63 }
 0x390   : > { %v905_v5 = vsel %vm801_vm13, %v2184_v3, 0.0  ;;  %v912_v15 = vpop.permute.xlu1 %911  ;;  %2112 = vmatprep.subr.bf16.mxu1 %v2243_v7 }
 0x391   : > { %2189 = vpow2.f32 %v1329_v4  ;;  %906 = vadd.xlane.f32.xlu0 %v905_v5  ;;  %v914_v21 = vmul.f32 %v912_v15, %v2439_v23  ;;  %v1618_v15 = vld [vmem:[%s2397_s5 + $0x40] sm:$0xff] }
 0x393   : > { %v2186_v6 = vpop.eup %2185  ;;  %2114 = vmatpush3.bf16.msra.mxu1 %v2113_v2 }
 0x394   : > { %v808_v8 = vsel %vm801_vm13, %v2186_v6, 0.0  ;;  %v1338_v19 = vpop.permute.xlu1 %1337  ;;  %2115 = vmatprep.subr.bf16.mxu1 %v2243_v7 }
 0x395   : > { %809 = vadd.xlane.f32.xlu1 %v808_v8  ;;  %v1340_v20 = vmul.f32 %v1338_v19, %v2439_v23  ;;  %v1621_v19 = vld [vmem:[%s2397_s5 + $0x58] sm:$0xff] }
 0x397   : > { %v2188_v9 = vpop.eup %2187 }
 0x398   : > { %v1156_v11 = vsel %vm801_vm13, %v2188_v9, 0.0 }
 0x399   : > { %1157 = vadd.xlane.f32.xlu0 %v1156_v11 }
 0x39b   : > { %v2190_v12 = vpop.eup %2189 }
 0x39c   : > { %v1331_v13 = vsel %vm801_vm13, %v2190_v12, 0.0 }
 0x39d   : > { %1332 = vadd.xlane.f32.xlu0 %v1331_v13  ;;  %v1617_v13 = vld [vmem:[%s2397_s5 + $0x38] sm:$0xff] }
 0x3a6   : > { %993 = vrot.lane.b32.xlu1 %v817_v16, %s2247_s21  ;;  %v1619_v16 = vld [vmem:[%s2397_s5 + $0x48] sm:$0xff] }
 0x3a7   : > { %v2119_v17 = vpack.c.bf16 %v1619_v16, %v1618_v15 }
 0x3aa   : > { %1167 = vrot.lane.b32.xlu1 %v1165_v18, %s2247_s21  ;;  %v1620_v18 = vld [vmem:[%s2397_s5 + $0x50] sm:$0xff] }
 0x3ae   : > { %1342 = vrot.lane.b32.xlu1 %v1340_v20, %s2247_s21  ;;  %v2122_v20 = vpack.c.bf16 %v1621_v19, %v1620_v18 }
 0x3b3   : > { %916 = vrot.lane.b32.xlu0 %v914_v21, %s2247_s21  ;;  %v1622_v21 = vld [vmem:[%s2397_s5 + $0x60] sm:$0xff] }
 0x41e   : > { %v907_v22 = vpop.xlane.xlu0 %906 }
 0x41f   : > { %2191 = vrcp.f32 %v907_v22  ;;  %v1623_v22 = vld [vmem:[%s2397_s5 + $0x68] sm:$0xff] }
 0x422   : > { %v810_v24 = vpop.xlane.xlu1 %809 }
 0x423   : > { %2193 = vrcp.f32 %v810_v24  ;;  %v2125_v24 = vpack.c.bf16 %v1623_v22, %v1622_v21 }
 0x426   : > { %v1158_v25 = vpop.xlane.xlu0 %1157  ;;  %v994_v30 = vpop.permute.xlu1 %993 }
 0x427   : > { %2195 = vrcp.f32 %v1158_v25  ;;  %v1624_v25 = vld [vmem:[%s2397_s5 + $0x70] sm:$0xff] }
 0x429   : > { %v2192_v27 = vpop.eup %2191 }
 0x42a   : > { %v1333_v26 = vpop.xlane.xlu0 %1332  ;;  %v909_v28 = vmul.f32 %v2192_v27, %v2184_v3  ;;  %v1168_v32 = vpop.permute.xlu1 %1167 }
 0x42b   : > { %2197 = vrcp.f32 %v1333_v26  ;;  %v1625_v26 = vld [vmem:[%s2397_s5 + $0x78] sm:$0xff] }
 0x42c   : > { %v2128_v27 = vpack.c.bf16 %v1625_v26, %v1624_v25 }
 0x42d   : > { %v2194_v23 = vpop.eup %2193 }
 0x42e   : > { %v917_v29 = vpop.permute.xlu0 %916  ;;  %v812_v31 = vmul.f32 %v2194_v23, %v2186_v6  ;;  %v1343_v35 = vpop.permute.xlu1 %1342  ;;  %v1922_v6 = vld [vmem:[%s2630_s27] ss:$0 sm:$0xff] }
 0x42f   : > { %2002 = vmatpush3.msra.mxu0 %v917_v29 }
 0x430   : > { %2004 = vmatmul.mubr.msk.f32.vlgmr.msra.gmra.mrb[4].mxu0 %vm801_vm13, %v909_v28  ;;  %2006 = vmatprep.subr.mxu0 %v2245_v10  ;;  %v1923_v28 = vld [vmem:[%s589_s30] ss:$0 sm:$0xff] }
 0x431   : > { %2007 = vmatpush3.msra.mxu0 %v994_v30  ;;  %2008 = vmatprep.mubr.msk.f32.mxu0 %vm2244_vm2, %v2245_v10  ;;  %v2196_v33 = vpop.eup %2195 }
 0x432   : > { %2016 = vmatprep.subr.mxu0 %v2245_v10  ;;  %v1160_v34 = vmul.f32 %v2196_v33, %v2188_v9 }
 0x435   : > { %v2198_v38 = vpop.eup %2197 }
 0x436   : > { %v1335_v40 = vmul.f32 %v2198_v38, %v2190_v12  ;;  %v1616_v12 = vld [vmem:[%s2397_s5 + $0x30] sm:$0xff] }
 0x437   : > { %v2116_v14 = vpack.c.bf16 %v1617_v13, %v1616_v12 }
 0x438   : > { %2009 = vmatmul.mubr.msk.f32.vlgmr.msra.gmra.mrb[4].mxu0 %vm801_vm13, %v812_v31 }
 0x439   : > { %2017 = vmatpush3.msra.mxu0 %v1168_v32  ;;  %2018 = vmatprep.mubr.msk.f32.mxu0 %vm2244_vm2, %v2245_v10 }
 0x43a   : > { %2026 = vmatprep.subr.mxu0 %v2245_v10  ;;  %2117 = vmatpush3.bf16.msra.mxu1 %v2116_v14 }
 0x43b   : > { %2118 = vmatprep.subr.bf16.mxu1 %v2243_v7 }
 0x43e   : > { %2120 = vmatpush3.bf16.msra.mxu1 %v2119_v17 }
 0x43f   : > { %2121 = vmatprep.subr.bf16.mxu1 %v2243_v7 }
 0x440   : > { %2019 = vmatmul.mubr.msk.f32.vlgmr.msra.gmra.mrb[4].mxu0 %vm801_vm13, %v1160_v34 }
 0x441   : > { %2027 = vmatpush3.msra.mxu0 %v1343_v35  ;;  %2028 = vmatprep.mubr.msk.f32.mxu0 %vm2244_vm2, %v2245_v10 }
 0x442   : > { %2094 = vmatprep.subr.bf16.mxu0 %v2243_v7  ;;  %2123 = vmatpush3.bf16.msra.mxu1 %v2122_v20 }
 0x443   : > { %2124 = vmatprep.subr.bf16.mxu1 %v2243_v7 }
 0x446   : > { %2126 = vmatpush3.bf16.msra.mxu1 %v2125_v24 }
 0x447   : > { %2127 = vmatprep.subr.bf16.mxu1 %v2243_v7 }
 0x448   : > { %2029 = vmatmul.mubr.msk.f32.vlgmr.msra.gmra.mrb[4].mxu0 %vm801_vm13, %v1335_v40 }
 0x449   : > { %2096 = vmatpush3.bf16.msra.mxu0 %v2095_v39  ;;  %2039 = vmatprep.mubr.msk.f32.mxu0 %vm2244_vm2, %v2245_v10 }
 0x44a   : > { %2097 = vmatprep.subr.bf16.mxu0 %v2243_v7  ;;  %2129 = vmatpush3.bf16.msra.mxu1 %v2128_v27 }
 0x44d   : > { %2099 = vmatpush3.bf16.msra.mxu0 %v2098_v43 }
 0x44e   : > { %2100 = vmatprep.subr.bf16.mxu0 %v2243_v7 }
 0x51b   : > { %v1414_v44 = vpop.f32.mrb[4].mxu0 }
 0x51c   : > { %v2030_v45 = vpop.f32.mrb[5].mxu0  ;;  %2040 = vmatmul.mubr.msk.f32.vlgmr.msra.gmra.mrb[6].mxu0 %vm612_vm1, %v1414_v44 }
 0x51d   : > { %2050 = vmatprep.mubr.msk.f32.mxu0 %vm2244_vm2, %v2245_v10  ;;  %2102 = vmatpush3.bf16.msra.mxu0 %v2101_v54 }
 0x51e   : > { %2103 = vmatprep.subr.bf16.mxu0 %v2243_v7 }
 0x5ef   : > { %v1492_v46 = vpop.f32.mrb[6].mxu0 }
 0x5f0   : > { %v1496_v48 = vadd.f32 %v1492_v46, %v2412_v1  ;;  %v2041_v49 = vpop.f32.mrb[7].mxu0  ;;  %v1523_v1 = vld [vmem:[%s2387_s26 + $0x10] sm:$0xff] }
 0x5f1   : > { %v2104_v56 = vpack.c.bf16 %v1524_v55, %v1523_v1 }
 0x5f2   : > { %v2526_v50 = vadd.f32 %v1921_v47, %v1496_v48 }
 0x5f3   : > { %2105 = vmatpush3.bf16.msra.mxu0 %v2104_v56 }
 0x5f4   : > { %v1506_v51 = vmul.f32 %v2526_v50, %v2526_v50  ;;  %v1517_v8 = vmul.f32 %v1922_v6, %v2526_v50 }
 0x5f6   : > { %v1507_v10 = vsel %vm612_vm1, %v1506_v51, 0.0 }
 0x5f7   : > { %1508 = vadd.xlane.f32.xlu0 %v1507_v10 }
 0x684   : > { %v1509_v3 = vpop.xlane.xlu0 %1508 }
 0x685   : > { %v1510_v4 = vmul.f32 0.03125, %v1509_v3 }
 0x687   : > { %v1518_v5 = vadd.f32 1e-05, %v1510_v4 }
 0x689   : > { %2199 = vrsqrt.f32 %v1518_v5 }
 0x693   : > { %v2200_v9 = vpop.eup %2199 }
 0x694   : > { %v1520_v11 = vmul.f32 %v2200_v9, %v1517_v8 }
 0x696   : > { %2051 = vmatmul.mubr.msk.f32.vlgmr.msra.gmra.mrb[8].mxu0 %vm612_vm1, %v1520_v11 }
 0x769   : > { %v1601_v29 = vpop.f32.mrb[8].mxu0 }
 0x76a   : > { %v1602_v30 = vadd.f32 %v1923_v28, %v1601_v29  ;;  %v2052_v23 = vpop.f32.mrb[9].mxu0 }
 0x76c   : > { %v1606_v31 = vmul.f32 0.70710677, %v1602_v30  ;;  %v1605_v33 = vmul.f32 0.5, %v1602_v30 }
 0x76e   : > { %2201 = verf.f32 %v1606_v31 }
 0x778   : > { %v2202_v32 = vpop.eup %2201 }
 0x779   : > { %v1608_v34 = vadd.f32 1.0, %v2202_v32 }
 0x77b   : > { %v1609_v7 = vmul.f32 %v1608_v34, %v1605_v33 }
 0x77d   : > { %2086 = vmatmul.mubr.f32.vlgmr.msra.gmra.mrb[6].mxu1 %v1609_v7 }
 0x850   : > { %v1692_v35 = vpop.f32.mrb[6].mxu1 }
 0x851   : > { %v1696_v37 = vadd.f32 %v1692_v35, %v2526_v50  ;;  %v2087_v38 = vpop.f32.mrb[7].mxu1 }
 0x853   : > { %v1704_v39 = vadd.f32 %v1925_v36, %v1696_v37 }
 0x855   : > { %1705 = vst.msk [vmem:[%s2407_s1] sm:$0xff] %vm612_vm1, %v1704_v39 }
 0x856 PF: > { %s2631_s30 = sld [smem:[#allocation5_spill]]  ;;  %s2632_s21 = sld [smem:[#allocation3_spill]] }
 0x857   : > { %s2633_s22 = sld [smem:[#allocation4_spill]]  ;;  %s2634_s23 = sld [smem:[#allocation6_spill]] }
 0x858   : > { %s2635_s24 = sld [smem:[#allocation7_spill]] }
 0x85c   : > { %s22_s25 = sadd.s32 1, %s2631_s30  }
 0x85d   : > { %p19_p8 = scmp.ge.s32.totalorder %s22_s25, 6  }
 0x85f   :  { %21 = sbr.rel (!%p19_p8) target bundleno = 5 (0x5), region = 135 }

// kernel: forward.4
= control target key start
LH: loop header
LB: loop body
LE: loop exit
PB: predicated region body
PF: predicated region fallthrough
CT: control target
= control target key end

     0   :  { %s3976_s25 = smov 0   ;;  %s3978_s26 = smov 0   ;;  %s4447_s0 = inlined_call_operand.vmem [shape: f32[2,8,32], index: 0, kind: input, shape index: {}]   ;;  %s4448_s1 = inlined_call_operand.vmem [shape: f32[2,8,32], index: 1, kind: input, shape index: {}]   ;;  %s4449_s2 = inlined_call_operand.vmem [shape: f32[2,8,8], index: 2, kind: input, shape index: {}]   ;;  %s4450_s3 = inlined_call_operand.vmem [shape: f32[2,8,8], index: 3, kind: input, shape index: {}]   ;;  %s4451_s4 = inlined_call_operand.vmem [shape: f32[2,1,32], index: 4, kind: input, shape index: {}]   ;;  %s4452_s5 = inlined_call_operand.vmem [shape: f32[2,32,96], index: 5, kind: input, shape index: {}]   ;;  %s4453_s6 = inlined_call_operand.vmem [shape: f32[2,1,96], index: 6, kind: input, shape index: {}]   ;;  %s4454_s7 = inlined_call_operand.vmem [shape: f32[2,32,32], index: 7, kind: input, shape index: {}]   ;;  %s4455_s8 = inlined_call_operand.vmem [shape: f32[2,1,32], index: 8, kind: input, shape index: {}]   ;;  %s4456_s9 = inlined_call_operand.vmem [shape: f32[2,1,32], index: 9, kind: input, shape index: {}]   ;;  %s4457_s10 = inlined_call_operand.vmem [shape: f32[2,32,32], index: 10, kind: input, shape index: {}]   ;;  %s4458_s11 = inlined_call_operand.vmem [shape: f32[2,1,32], index: 11, kind: input, shape index: {}]   ;;  %s4459_s12 = inlined_call_operand.vmem [shape: f32[2,32,64], index: 12, kind: input, shape index: {}]   ;;  %s4460_s13 = inlined_call_operand.vmem [shape: f32[2,1,64], index: 13, kind: input, shape index: {}]   ;;  %s4461_s14 = inlined_call_operand.vmem [shape: f32[2,32,32], index: 14, kind: input, shape index: {}]   ;;  %s4462_s15 = inlined_call_operand.vmem [shape: f32[2,1,32], index: 15, kind: input, shape index: {}]   ;;  %s4463_s16 = inlined_call_operand.vmem [shape: f32[2,1,32], index: 16, kind: input, shape index: {}]   ;;  %s4464_s17 = inlined_call_operand.vmem [shape: f32[2,32,128], index: 17, kind: input, shape index: {}]   ;;  %s4465_s18 = inlined_call_operand.vmem [shape: f32[2,1,128], index: 18, kind: input, shape index: {}]   ;;  %s4466_s19 = inlined_call_operand.vmem [shape: f32[2,128,32], index: 19, kind: input, shape index: {}]   ;;  %s4467_s20 = inlined_call_operand.vmem [shape: f32[2,1,32], index: 20, kind: input, shape index: {}]   ;;  %s4468_s21 = inlined_call_operand.vmem [shape: f32[2,8,32], index: 21, kind: output, shape index: {}]  }
   0x1   :  { %4474 = sst [smem:[#allocation9_spill]] %s4447_s0  ;;  %s3980_s27 = smov 0  }
   0x2   :  { %4475 = sst [smem:[#allocation10_spill]] %s4448_s1 }
   0x3   :  { %4476 = sst [smem:[#allocation11_spill]] %s4449_s2  ;;  %s3974_s2 = smov 0  }
   0x4   :  { %4477 = sst [smem:[#allocation12_spill]] %s4450_s3  ;;  %s3982_s3 = smov 0  }
   0x5   :  { %4478 = sst [smem:[#allocation13_spill]] %s4451_s4 }
   0x6   :  { %4479 = sst [smem:[#allocation14_spill]] %s4452_s5 }
   0x7   :  { %4480 = sst [smem:[#allocation15_spill]] %s4454_s7 }
   0x8   :  { %4481 = sst [smem:[#allocation16_spill]] %s4456_s9 }
   0x9   :  { %4482 = sst [smem:[#allocation17_spill]] %s4457_s10 }
   0xa   :  { %4483 = sst [smem:[#allocation18_spill]] %s4458_s11 }
   0xb   :  { %4484 = sst [smem:[#allocation19_spill]] %s4459_s12 }
   0xc   :  { %4485 = sst [smem:[#allocation20_spill]] %s4460_s13 }
   0xd   :  { %4486 = sst [smem:[#allocation21_spill]] %s4461_s14 }
   0xe   :  { %4487 = sst [smem:[#allocation22_spill]] %s4462_s15 }
   0xf   :  { %4488 = sst [smem:[#allocation23_spill]] %s4463_s16 }
  0x10   :  { %4489 = sst [smem:[#allocation24_spill]] %s4464_s17 }
  0x11   :  { %4490 = sst [smem:[#allocation25_spill]] %s4465_s18 }
  0x12   :  { %4491 = sst [smem:[#allocation26_spill]] %s4466_s19 }
  0x13   :  { %4492 = sst [smem:[#allocation27_spill]] %s4467_s20 }
  0x14   :  { %4493 = sst [smem:[#allocation28_spill]] %s4468_s21 }
  0x15 LB: > { %4494 = sst [smem:[#allocation2_spill]] %s3840_s2  ;;  %s40_s28 = sadd.s32 1, %s3848_s26  ;;  %s3856_s3 = sphi %s3982_s3, %s31_s3   ;;  %s3852_s27 = sphi %s3980_s27, %s4548_s27   ;;  %s3848_s26 = sphi %s3978_s26, %s4547_s26   ;;  %s3844_s25 = sphi %s3976_s25, %s4546_s25   ;;  %s3840_s2 = sphi %s3974_s2, %s4545_s2  }
  0x16   : > { %4495 = sst [smem:[#allocation3_spill]] %s3848_s26  ;;  %s43_s29 = sadd.s32 1, %s3852_s27 }
  0x17   : > { %4496 = sst [smem:[#allocation4_spill]] %s3852_s27  ;;  %p41_p0 = scmp.ge.s32.totalorder %s40_s28, 2 }
  0x18   : > { %4497 = sst [smem:[#allocation5_spill]] %s3856_s3  ;;  %p3326_p1 = scmp.ge.s32.totalorder %s3856_s3, 1 }
  0x19   : > { %p775_p2 = scmp.lt.s32.totalorder %s3856_s3, 5  ;;  %s4550_s28 = smov (%p41_p0, %s40_s28), 0 }
  0x1a   : > { %4498 = sst [smem:[#allocation6_spill]] %s4550_s28  ;;  %s4552_s29 = smov (!%p41_p0, %s43_s29), %s3852_s27 }
  0x1b   : > { %p776_p3 = pnand %p3326_p1, %p775_p2  ;;  %p45_p4 = scmp.ge.s32.totalorder %s4552_s29, 2 }
  0x1d   : > { %s4554_s29 = smov (%p45_p4, %s4552_s29), 0  ;;  %779 = sbr.rel (%p776_p3) target bundleno = 3521 (0xdc1), region = 104 }
  0x1e   : > { %4499 = sst [smem:[#allocation7_spill]] %s4554_s29 }
  0x24   : > { %p910_p5 = scmp.lt.s32.totalorder %s3844_s25, 1  ;;  %p926_p6 = scmp.lt.s32.totalorder %s3840_s2, 1 }
  0x25   : > { %s4500_s22 = sld [smem:[#allocation9_spill]]  ;;  %s4505_s24 = sld [smem:[#allocation14_spill]] }
  0x26   : > { %s4556_s25 = smov (!%p910_p5, %s3844_s25), 1  ;;  %s4506_s7 = sld [smem:[#allocation15_spill]] }
  0x27   : > { %s4008_s0 = scalar_select %p926_p6, %s3840_s2, 1 }
  0x28   : > { %s4010_s4 = sshll.u32 %s4556_s25, 3  ;;  %s4508_s10 = sld [smem:[#allocation17_spill]] }
  0x29   : > { %s4510_s12 = sld [smem:[#allocation19_spill]]  ;;  %s4512_s14 = sld [smem:[#allocation21_spill]] }
  0x2a   : > { %s4515_s28 = sld [smem:[#allocation23_spill]]  ;;  %s4517_s30 = sld [smem:[#allocation25_spill]] }
  0x2b   : > { %s913_s23 = scalar_lea.vmem %s4500_s22, %s4010_s4  ;;  %s3393_s22 = sshll.u32 %s4008_s0, 5 }
  0x2c   : > { %s4036_s29 = scalar_lea.vmem %s4505_s24, %s3393_s22  ;;  %s4045_s19 = scalar_lea.vmem %s4506_s7, %s3393_s22 }
  0x2d   : > { %s3399_s20 = sshll.u32 %s4008_s0, 7  ;;  %s4519_s7 = sld [smem:[#allocation26_spill]] }
  0x2e   : > { %s4058_s2 = scalar_lea.vmem %s4508_s10, %s3393_s22  ;;  %s4520_s27 = sld [smem:[#allocation28_spill]] }
  0x2f   : > { %s4067_s17 = scalar_lea.vmem %s4510_s12, %s3393_s22  ;;  %s4076_s16 = scalar_lea.vmem %s4512_s14, %s3393_s22 }
  0x30   : > { %4513 = sst [smem:[#allocation8_spill]] %s4076_s16  ;;  %s974_s10 = scalar_lea.vmem %s4515_s28, %s4008_s0 }
  0x31   : > { %s4516_s12 = sld [smem:[#allocation24_spill]]  ;;  %s982_s13 = scalar_lea.vmem %s4517_s30, %s4008_s0 }
  0x32   : > { %s4518_s16 = sld [smem:[#allocation27_spill]] }
  0x33   : > { %s4103_s15 = scalar_lea.vmem %s4519_s7, %s3399_s20 }
  0x34   : > { %s4109_s3 = scalar_lea.vmem %s4520_s27, %s4010_s4 }
  0x37   : > { %s4089_s11 = scalar_lea.vmem %s4516_s12, %s3393_s22  ;;  %s4521_s12 = sld [smem:[#allocation2_spill]] }
  0x38   : > { %s990_s9 = scalar_lea.vmem %s4518_s16, %s4008_s0 }
  0x3d   : > { %p3346_p7 = scmp.ne.s32.totalorder %s4521_s12, 0 }
  0x3e   : > { %v999_v0 = vld [vmem:[%s913_s23] sm:$0xff] (!%p3346_p7)  ;;  %vm1000_vm0 = vcmask (!%p3346_p7), 261120  }
  0x3f   : > { %998 = sbr.rel (%p3346_p7) target bundleno = 70 (0x46), region = 108  ;;  %1001 = vst.msk [vmem:[%s4109_s3] sm:$0xff] (!%p3346_p7), %vm1000_vm0, %v999_v0 }
  0x46 PF: > { %v4114_v1 = vld [vmem:[%s4109_s3] sm:$0xff]  ;;  %vm1006_vm1 = vcmask 261120   ;;  %v1023_v5 = vld [vmem:[%s4036_s29 + $0x8] sm:$0xff]  ;;  %v1024_v6 = vld [vmem:[%s4036_s29 + $0x10] sm:$0xff]  ;;  %v3858_v7 = vmov 0.0|0.0   ;;  %vm3859_vm2 = vmmov 0   ;;  %v1107_v19 = vlaneseq  ;;  %s4524_s16 = scalar_lea.vmem %s4453_s6, %s4008_s0  ;;  %s4527_s28 = scalar_lea.vmem %s4455_s8, %s4008_s0 }
  0x47   : > { %v1005_v2 = vmul.f32 %v4114_v1, %v4114_v1  ;;  %v1022_v4 = vld [vmem:[%s4036_s29] sm:$0xff]  ;;  %3660 = vmatprep.subr.bf16.mxu0 %v3858_v7  ;;  %v1025_v9 = vld [vmem:[%s4036_s29 + $0x18] sm:$0xff]  ;;  %v3860_v10 = vmov 0.0   ;;  %s4522_s23 = sld [smem:[#allocation13_spill]]  ;;  %s3861_s21 = smov 96   ;;  %vm1195_vm13 = vcmask 64512  }
  0x48   : > { %v3661_v8 = vpack.c.bf16 %v1023_v5, %v1022_v4  ;;  %3487 = vmatprep.mubr.msk.f32.mxu0 %vm3859_vm2, %v3860_v10  ;;  %3495 = vmatprep.subr.mxu1 %v3860_v10  ;;  %v3664_v11 = vpack.c.bf16 %v1025_v9, %v1024_v6  ;;  %v3348_v20 = vld [vmem:[%s4524_s16] ss:$0 sm:$0xff]  ;;  %v1108_v21 = vand.u32 127, %v1107_v19  ;;  %s3862_s18 = smov 64   ;;  %s4525_s5 = sld [smem:[#allocation11_spill]] }
  0x49   : > { %v1007_v3 = vsel %vm1006_vm1, %v1005_v2, 0.0  ;;  %3497 = vmatprep.mubr.msk.f32.mxu1 %vm3859_vm2, %v3860_v10  ;;  %s4528_s12 = sld [smem:[#allocation10_spill]]  ;;  %s4530_s14 = sld [smem:[#allocation16_spill]] }
  0x4a   : > { %1008 = vadd.xlane.f32.xlu0 %v1007_v3  ;;  %3662 = vmatpush3.bf16.msra.mxu0 %v3661_v8  ;;  %vm1110_vm3 = vcmp.lt.s32.totalorder %v1108_v21, 8  ;;  %vm1463_vm4 = vcmp.ge.s32.totalorder %v1108_v21, 16  ;;  %vm1464_vm5 = vcmp.lt.s32.totalorder %v1108_v21, 24  ;;  %vm1212_vm7 = vcmp.ge.s32.totalorder %v1108_v21, 8  ;;  %s4532_s30 = sld [smem:[#allocation20_spill]]  ;;  %s4534_s20 = sld [smem:[#allocation18_spill]] }
  0x4b   : > { %3663 = vmatprep.subr.bf16.mxu0 %v3858_v7  ;;  %v4150_v25 = vsel %vm1110_vm3, 1.0, %v3860_v10  ;;  %vm1465_vm6 = vmand %vm1463_vm4, %vm1464_vm5  ;;  %vm1213_vm8 = vcmp.lt.s32.totalorder %v1108_v21, 16  ;;  %vm1638_vm10 = vcmp.ge.s32.totalorder %v1108_v21, 24  ;;  %vm1639_vm11 = vcmp.lt.s32.totalorder %v1108_v21, 32  ;;  %s4536_s24 = sld [smem:[#allocation12_spill]]  ;;  %s4538_s26 = sld [smem:[#allocation8_spill]] }
  0x4c   : > { %v4155_v26 = vsel %vm1465_vm6, 1.0, %v3860_v10  ;;  %vm1214_vm9 = vmand %vm1212_vm7, %vm1213_vm8 }
  0x4d   : > { %s4523_s22 = scalar_lea.vmem %s4522_s23, %s4008_s0  ;;  %v4160_v27 = vsel %vm1214_vm9, 1.0, %v3860_v10  ;;  %vm1640_vm12 = vmand %vm1638_vm10, %vm1639_vm11 }
  0x4e   : > { %3665 = vmatpush3.bf16.msra.mxu0 %v3664_v11  ;;  %v3347_v15 = vld [vmem:[%s4523_s22] ss:$0 sm:$0xff]  ;;  %v4181_v32 = vsel %vm1640_vm12, 1.0, %v3860_v10  ;;  %s4526_s1 = scalar_lea.vmem %s4525_s5, %s4010_s4 }
  0x4f   : > { %3490 = vmatprep.subr.mxu0 %v3860_v10  ;;  %v1018_v16 = vmul.f32 %v3347_v15, %v4114_v1  ;;  %v1106_v36 = vld [vmem:[%s4526_s1] sm:$0xff]  ;;  %s4529_s7 = scalar_lea.vmem %s4528_s12, %s4010_s4  ;;  %s4531_s23 = scalar_lea.vmem %s4530_s14, %s4008_s0 }
  0x50   : > { %s4533_s16 = scalar_lea.vmem %s4532_s30, %s4008_s0  ;;  %s4535_s5 = scalar_lea.vmem %s4534_s20, %s4008_s0 }
  0x51   : > { %s4539_s12 = sld [smem:[#allocation22_spill]] }
  0xd7   : > { %v1009_v12 = vpop.xlane.xlu0 %1008 }
  0xd8   : > { %v1011_v13 = vmul.f32 0.03125, %v1009_v12 }
  0xda   : > { %v1019_v14 = vadd.f32 1e-05, %v1011_v13 }
  0xdc   : > { %3778 = vrsqrt.f32 %v1019_v14 }
  0xe6   : > { %v3779_v17 = vpop.eup %3778 }
  0xe7   : > { %v1021_v18 = vmul.f32 %v3779_v17, %v1018_v16 }
  0xe9   : > { %3488 = vmatmul.mubr.msk.f32.vlgmr.msra.gmra.mrb[0].mxu0 %vm1006_vm1, %v1021_v18 }
  0xea   : > { %3492 = vmatprep.mubr.msk.f32.mxu0 %vm3859_vm2, %v3860_v10 }
 0x1bc   : > { %v1102_v22 = vpop.f32.mrb[0].mxu0 }
 0x1bd   : > { %v4145_v23 = vadd.f32 %v3348_v20, %v1102_v22  ;;  %v3489_v24 = vpop.f32.mrb[1].mxu0 }
 0x1bf   : > { %1116 = vrot.lane.b32.xlu0 %v4145_v23, %s3861_s21  ;;  %v1114_v29 = vmul.f32 %v4150_v25, %v4145_v23  ;;  %v1217_v30 = vmul.f32 %v4160_v27, %v4145_v23  ;;  %v1468_v31 = vmul.f32 %v4155_v26, %v4145_v23  ;;  %v1643_v33 = vmul.f32 %v4181_v32, %v4145_v23 }
 0x1c3   : > { %1208 = vrot.lane.b32.xlu0 %v4150_v25, %s3862_s18 }
 0x1c7   : > { %1556 = vrot.lane.b32.xlu0 %v4155_v26, %s3862_s18 }
 0x231   : > { %v1117_v28 = vpop.permute.xlu0 %1116 }
 0x232   : > { %3491 = vmatpush3.xpose.msk.msra.mxu0 %vm1006_vm1, %v1117_v28  ;;  %3496 = vmatpush3.xpose.msk.msra.mxu1 %vm1006_vm1, %v1117_v28 }
 0x233   : > { %3510 = vmatprep.subr.mxu1 %v3860_v10  ;;  %3500 = vmatprep.subr.mxu0 %v3860_v10 }
 0x235   : > { %3493 = vmatmul.mubr.msk.f32.vlgmr.msra.gmra.mrb[2].mxu0 %vm1006_vm1, %v1114_v29  ;;  %3498 = vmatmul.mubr.msk.f32.vlgmr.msra.gmra.mrb[0].mxu1 %vm1006_vm1, %v1217_v30  ;;  %v1209_v14 = vpop.permute.xlu0 %1208 }
 0x236   : > { %3511 = vmatpush3.xpose.msk.msra.mxu1 %vm1006_vm1, %v1117_v28  ;;  %3512 = vmatprep.mubr.msk.f32.mxu1 %vm3859_vm2, %v3860_v10  ;;  %v1211_v16 = vmul.f32 %v1209_v14, %v4145_v23 }
 0x237   : > { %3520 = vmatprep.subr.mxu1 %v3860_v10  ;;  %3502 = vmatprep.mubr.msk.f32.mxu0 %vm3859_vm2, %v3860_v10 }
 0x239   : > { %3513 = vmatmul.mubr.msk.f32.vlgmr.msra.gmra.mrb[2].mxu1 %vm1006_vm1, %v1468_v31  ;;  %v1557_v17 = vpop.permute.xlu0 %1556 }
 0x23a   : > { %3521 = vmatpush3.xpose.msk.msra.mxu1 %vm1006_vm1, %v1117_v28  ;;  %3522 = vmatprep.mubr.msk.f32.mxu1 %vm3859_vm2, %v3860_v10  ;;  %v1559_v18 = vmul.f32 %v1557_v17, %v4145_v23 }
 0x23b   : > { %3678 = vmatprep.subr.bf16.mxu1 %v3858_v7 }
 0x23d   : > { %3523 = vmatmul.mubr.msk.f32.vlgmr.msra.gmra.mrb[4].mxu1 %vm1006_vm1, %v1643_v33 }
 0x23e   : > { %3560 = vmatprep.mubr.msk.f32.mxu1 %vm3859_vm2, %v3860_v10 }
 0x308   : > { %v1189_v34 = vpop.f32.mrb[2].mxu0  ;;  %v1287_v35 = vpop.f32.mrb[0].mxu1 }
 0x309   : > { %v1193_v37 = vmul.f32 0.35355338, %v1189_v34  ;;  %v1291_v38 = vmul.f32 0.35355338, %v1287_v35  ;;  %v3494_v39 = vpop.f32.mrb[3].mxu0  ;;  %v3499_v40 = vpop.f32.mrb[1].mxu1 }
 0x30a   : > { %v1813_v40 = vld [vmem:[%s4045_s19] sm:$0xff] }
 0x30b   : > { %v1292_v41 = vadd.f32 %v1291_v38, %v1106_v36  ;;  %v1194_v46 = vadd.f32 %v1193_v37, %v1106_v36 }
 0x30c   : > { %v1538_v42 = vpop.f32.mrb[2].mxu1 }
 0x30d   : > { %v1542_v43 = vmul.f32 0.35355338, %v1538_v42  ;;  %v3514_v44 = vpop.f32.mrb[3].mxu1  ;;  %v1293_v45 = vsel %vm1195_vm13, %v1292_v41, -inf  ;;  %v1196_v50 = vsel %vm1195_vm13, %v1194_v46, -inf }
 0x30e   : > { %1294 = vmax.xlane.f32.xlu1 %v1293_v45  ;;  %v1815_v45 = vld [vmem:[%s4045_s19 + $0x10] sm:$0xff] }
 0x30f   : > { %v1543_v51 = vadd.f32 %v1542_v43, %v1106_v36 }
 0x310   : > { %v1713_v47 = vpop.f32.mrb[4].mxu1 }
 0x311   : > { %v1717_v48 = vmul.f32 0.35355338, %v1713_v47  ;;  %v3524_v49 = vpop.f32.mrb[5].mxu1  ;;  %v1544_v52 = vsel %vm1195_vm13, %v1543_v51, -inf }
 0x312   : > { %1197 = vmax.xlane.f32.xlu1 %v1196_v50 }
 0x313   : > { %v1718_v53 = vadd.f32 %v1717_v48, %v1106_v36 }
 0x315   : > { %v1719_v54 = vsel %vm1195_vm13, %v1718_v53, -inf }
 0x316   : > { %1545 = vmax.xlane.f32.xlu1 %v1544_v52 }
 0x31a   : > { %1720 = vmax.xlane.f32.xlu1 %v1719_v54 }
 0x32b   : > { %1305 = vrot.lane.b32.xlu1 %v4160_v27, %s3862_s18 }
 0x32f   : > { %1731 = vrot.lane.b32.xlu1 %v4181_v32, %s3862_s18 }
 0x39b   : > { %v1295_v55 = vpop.xlane.xlu1 %1294 }
 0x39c   : > { %v1296_v56 = vsub.f32 %v1292_v41, %v1295_v55  ;;  %v1814_v41 = vld [vmem:[%s4045_s19 + $0x8] sm:$0xff] }
 0x39d   : > { %v3667_v43 = vpack.c.bf16 %v1814_v41, %v1813_v40 }
 0x39e   : > { %v1297_v57 = vmul.f32 1.442695, %v1296_v56 }
 0x39f   : > { %v1198_v58 = vpop.xlane.xlu1 %1197 }
 0x3a0   : > { %3780 = vpow2.f32 %v1297_v57  ;;  %v1199_v59 = vsub.f32 %v1194_v46, %v1198_v58  ;;  %v1816_v46 = vld [vmem:[%s4045_s19 + $0x18] sm:$0xff]  ;;  %v1999_v57 = vld [vmem:[%s4067_s17] sm:$0xff]  ;;  %v2000_v58 = vld [vmem:[%s4067_s17 + $0x8] sm:$0xff] }
 0x3a1   : > { %v3670_v47 = vpack.c.bf16 %v1816_v46, %v1815_v45 }
 0x3a2   : > { %v1200_v60 = vmul.f32 1.442695, %v1199_v59  ;;  %v1915_v59 = vld [vmem:[%s4058_s2] sm:$0xff] }
 0x3a3   : > { %v1546_v61 = vpop.xlane.xlu1 %1545 }
 0x3a4   : > { %3782 = vpow2.f32 %v1200_v60  ;;  %v1547_v62 = vsub.f32 %v1543_v51, %v1546_v61  ;;  %v3367_v51 = vld [vmem:[%s4527_s28] ss:$0 sm:$0xff]  ;;  %v3679_v60 = vpack.c.bf16 %v2000_v58, %v1999_v57  ;;  %v1916_v61 = vld [vmem:[%s4058_s2 + $0x8] sm:$0xff]  ;;  %s4537_s28 = scalar_lea.vmem %s4536_s24, %s4010_s4  ;;  %s3863_s4 = smov 32  }
 0x3a6   : > { %v1548_v63 = vmul.f32 1.442695, %v1547_v62  ;;  %v2001_v62 = vld [vmem:[%s4067_s17 + $0x10] sm:$0xff]  ;;  %3680 = vmatpush3.bf16.msra.mxu1 %v3679_v60 }
 0x3a7   : > { %v1721_v0 = vpop.xlane.xlu1 %1720  ;;  %3681 = vmatprep.subr.bf16.mxu1 %v3858_v7 }
 0x3a8   : > { %3784 = vpow2.f32 %v1548_v63  ;;  %v1722_v2 = vsub.f32 %v1718_v53, %v1721_v0  ;;  %v2002_v63 = vld [vmem:[%s4067_s17 + $0x18] sm:$0xff]  ;;  %v3673_v0 = vpack.c.bf16 %v1916_v61, %v1915_v59 }
 0x3aa   : > { %v3781_v3 = vpop.eup %3780  ;;  %v1723_v4 = vmul.f32 1.442695, %v1722_v2  ;;  %v1917_v2 = vld [vmem:[%s4058_s2 + $0x10] sm:$0xff] }
 0x3ab   : > { %v1299_v5 = vsel %vm1195_vm13, %v3781_v3, 0.0  ;;  %v1306_v15 = vpop.permute.xlu1 %1305 }
 0x3ac   : > { %3786 = vpow2.f32 %v1723_v4  ;;  %1300 = vadd.xlane.f32.xlu0 %v1299_v5  ;;  %v1308_v21 = vmul.f32 %v1306_v15, %v4145_v23  ;;  %v1003_v5 = vld [vmem:[%s4529_s7] sm:$0xff]  ;;  %s4540_s7 = scalar_lea.vmem %s4539_s12, %s4008_s0 }
 0x3ad   : > { %v3371_v15 = vld [vmem:[%s4533_s16] ss:$0 sm:$0xff] }
 0x3ae   : > { %v3783_v6 = vpop.eup %3782 }
 0x3af   : > { %v1202_v8 = vsel %vm1195_vm13, %v3783_v6, 0.0  ;;  %v1732_v19 = vpop.permute.xlu1 %1731 }
 0x3b0   : > { %1203 = vadd.xlane.f32.xlu1 %v1202_v8  ;;  %v1734_v20 = vmul.f32 %v1732_v19, %v4145_v23  ;;  %v3369_v19 = vld [vmem:[%s4535_s5] ss:$0 sm:$0xff] }
 0x3b2   : > { %v3785_v9 = vpop.eup %3784 }
 0x3b3   : > { %v1550_v11 = vsel %vm1195_vm13, %v3785_v9, 0.0 }
 0x3b4   : > { %1551 = vadd.xlane.f32.xlu0 %v1550_v11  ;;  %v3368_v11 = vld [vmem:[%s4531_s23] ss:$0 sm:$0xff] }
 0x3b6   : > { %v3787_v12 = vpop.eup %3786 }
 0x3b7   : > { %v1725_v13 = vsel %vm1195_vm13, %v3787_v12, 0.0 }
 0x3b8   : > { %1726 = vadd.xlane.f32.xlu0 %v1725_v13 }
 0x3c1   : > { %1387 = vrot.lane.b32.xlu1 %v1211_v16, %s3862_s18 }
 0x3c5   : > { %1561 = vrot.lane.b32.xlu1 %v1559_v18, %s3862_s18 }
 0x3c9   : > { %1736 = vrot.lane.b32.xlu1 %v1734_v20, %s3862_s18 }
 0x3ce   : > { %1310 = vrot.lane.b32.xlu0 %v1308_v21, %s3862_s18 }
 0x439   : > { %v1301_v22 = vpop.xlane.xlu0 %1300 }
 0x43a   : > { %3788 = vrcp.f32 %v1301_v22 }
 0x43d   : > { %v1204_v24 = vpop.xlane.xlu1 %1203 }
 0x43e   : > { %3790 = vrcp.f32 %v1204_v24 }
 0x441   : > { %v1552_v28 = vpop.xlane.xlu0 %1551  ;;  %v1388_v34 = vpop.permute.xlu1 %1387 }
 0x442   : > { %3792 = vrcp.f32 %v1552_v28 }
 0x444   : > { %v3789_v30 = vpop.eup %3788 }
 0x445   : > { %v1727_v29 = vpop.xlane.xlu0 %1726  ;;  %v1303_v31 = vmul.f32 %v3789_v30, %v3781_v3  ;;  %v1562_v36 = vpop.permute.xlu1 %1561  ;;  %v3682_v3 = vpack.c.bf16 %v2002_v63, %v2001_v62 }
 0x446   : > { %3794 = vrcp.f32 %v1727_v29 }
 0x447   : > { %3683 = vmatpush3.bf16.msra.mxu1 %v3682_v3 }
 0x448   : > { %v3791_v23 = vpop.eup %3790  ;;  %3568 = vmatprep.subr.mxu1 %v3860_v10 }
 0x449   : > { %v1311_v33 = vpop.permute.xlu0 %1310  ;;  %v1206_v35 = vmul.f32 %v3791_v23, %v3783_v6  ;;  %v1737_v39 = vpop.permute.xlu1 %1736 }
 0x44a   : > { %3501 = vmatpush3.msra.mxu0 %v1311_v33  ;;  %3561 = vmatmul.mubr.msk.f32.vlgmr.msra.gmra.mrb[6].mxu1 %vm1006_vm1, %v1003_v5 }
 0x44b   : > { %3503 = vmatmul.mubr.msk.f32.vlgmr.msra.gmra.mrb[4].mxu0 %vm1195_vm13, %v1303_v31  ;;  %3505 = vmatprep.subr.mxu0 %v3860_v10 }
 0x44c   : > { %3506 = vmatpush3.msra.mxu0 %v1388_v34  ;;  %3507 = vmatprep.mubr.msk.f32.mxu0 %vm3859_vm2, %v3860_v10  ;;  %v3793_v37 = vpop.eup %3792  ;;  %v2083_v34 = vld [vmem:[%s4537_s28] sm:$0xff] }
 0x44d   : > { %3515 = vmatprep.subr.mxu0 %v3860_v10  ;;  %v1554_v38 = vmul.f32 %v3793_v37, %v3785_v9  ;;  %3570 = vmatprep.mubr.msk.f32.mxu1 %vm3859_vm2, %v3860_v10 }
 0x450   : > { %v3795_v42 = vpop.eup %3794 }
 0x451   : > { %v1729_v44 = vmul.f32 %v3795_v42, %v3787_v12 }
 0x453   : > { %3508 = vmatmul.mubr.msk.f32.vlgmr.msra.gmra.mrb[4].mxu0 %vm1195_vm13, %v1206_v35 }
 0x454   : > { %3516 = vmatpush3.msra.mxu0 %v1562_v36  ;;  %3517 = vmatprep.mubr.msk.f32.mxu0 %vm3859_vm2, %v3860_v10 }
 0x455   : > { %3525 = vmatprep.subr.mxu0 %v3860_v10 }
 0x45b   : > { %3518 = vmatmul.mubr.msk.f32.vlgmr.msra.gmra.mrb[4].mxu0 %vm1195_vm13, %v1554_v38 }
 0x45c   : > { %3526 = vmatpush3.msra.mxu0 %v1737_v39  ;;  %3527 = vmatprep.mubr.msk.f32.mxu0 %vm3859_vm2, %v3860_v10 }
 0x45d   : > { %3666 = vmatprep.subr.bf16.mxu0 %v3858_v7 }
 0x463   : > { %3528 = vmatmul.mubr.msk.f32.vlgmr.msra.gmra.mrb[4].mxu0 %vm1195_vm13, %v1729_v44 }
 0x464   : > { %3668 = vmatpush3.bf16.msra.mxu0 %v3667_v43  ;;  %3538 = vmatprep.mubr.msk.f32.mxu0 %vm3859_vm2, %v3860_v10 }
 0x465   : > { %3669 = vmatprep.subr.bf16.mxu0 %v3858_v7 }
 0x468   : > { %3671 = vmatpush3.bf16.msra.mxu0 %v3670_v47 }
 0x469   : > { %3672 = vmatprep.subr.bf16.mxu0 %v3858_v7 }
 0x51d   : > { %v2079_v16 = vpop.f32.mrb[6].mxu1 }
 0x51e   : > { %v4288_v17 = vadd.f32 %v3371_v15, %v2079_v16  ;;  %v3562_v18 = vpop.f32.mrb[7].mxu1  ;;  %v2761_v15 = vld [vmem:[%s4538_s26] sm:$0xff]  ;;  %v2762_v16 = vld [vmem:[%s4538_s26 + $0x8] sm:$0xff] }
 0x51f   : > { %v2763_v18 = vld [vmem:[%s4538_s26 + $0x10] sm:$0xff] }
 0x520   : > { %3569 = vmatpush3.xpose.msk.msra.mxu1 %vm1006_vm1, %v4288_v17 }
 0x521   : > { %3583 = vmatprep.subr.mxu1 %v3860_v10 }
 0x536   : > { %v1808_v48 = vpop.f32.mrb[4].mxu0 }
 0x537   : > { %v3529_v49 = vpop.f32.mrb[5].mxu0  ;;  %3539 = vmatmul.mubr.msk.f32.vlgmr.msra.gmra.mrb[6].mxu0 %vm1006_vm1, %v1808_v48 }
 0x538   : > { %3549 = vmatprep.mubr.msk.f32.mxu0 %vm3859_vm2, %v3860_v10  ;;  %3674 = vmatpush3.bf16.msra.mxu0 %v3673_v0 }
 0x539   : > { %3675 = vmatprep.subr.bf16.mxu0 %v3858_v7 }
 0x60a   : > { %v1886_v50 = vpop.f32.mrb[6].mxu0 }
 0x60b   : > { %v1890_v52 = vadd.f32 %v1886_v50, %v4114_v1  ;;  %v3540_v53 = vpop.f32.mrb[7].mxu0  ;;  %v1918_v1 = vld [vmem:[%s4058_s2 + $0x18] sm:$0xff] }
 0x60c   : > { %v3676_v4 = vpack.c.bf16 %v1918_v1, %v1917_v2 }
 0x60d   : > { %v4249_v54 = vadd.f32 %v3367_v51, %v1890_v52 }
 0x60e   : > { %3677 = vmatpush3.bf16.msra.mxu0 %v3676_v4 }
 0x60f   : > { %v1900_v55 = vmul.f32 %v4249_v54, %v4249_v54  ;;  %3563 = vmatprep.subr.mxu0 %v3860_v10  ;;  %v1911_v12 = vmul.f32 %v3368_v11, %v4249_v54 }
 0x611   : > { %v1901_v56 = vsel %vm1006_vm1, %v1900_v55, 0.0 }
 0x612   : > { %1902 = vadd.xlane.f32.xlu0 %v1901_v56 }
 0x69f   : > { %v1903_v6 = vpop.xlane.xlu0 %1902 }
 0x6a0   : > { %v1904_v8 = vmul.f32 0.03125, %v1903_v6 }
 0x6a2   : > { %v1912_v9 = vadd.f32 1e-05, %v1904_v8 }
 0x6a4   : > { %3796 = vrsqrt.f32 %v1912_v9 }
 0x6ae   : > { %v3797_v13 = vpop.eup %3796 }
 0x6af   : > { %v1914_v14 = vmul.f32 %v3797_v13, %v1911_v12 }
 0x6b1   : > { %3550 = vmatmul.mubr.msk.f32.vlgmr.msra.gmra.mrb[8].mxu0 %vm1006_vm1, %v1914_v14 }
 0x6b2   : > { %3565 = vmatprep.mubr.msk.f32.mxu0 %vm3859_vm2, %v3860_v10  ;;  %3564 = vmatpush3.xpose.msk.msra.mxu0 %vm1006_vm1, %v4288_v17 }
 0x6b3   : > { %3573 = vmatprep.subr.mxu0 %v3860_v10 }
 0x784   : > { %v1995_v20 = vpop.f32.mrb[8].mxu0 }
 0x785   : > { %v1996_v21 = vadd.f32 %v3369_v19, %v1995_v20  ;;  %v3551_v22 = vpop.f32.mrb[9].mxu0  ;;  %v3685_v19 = vpack.c.bf16 %v2762_v16, %v2761_v15  ;;  %v2764_v20 = vld [vmem:[%s4538_s26 + $0x18] sm:$0xff]  ;;  %v2965_v15 = vld [vmem:[%s4103_s15 + $0x68] sm:$0xff] }
 0x787   : > { %v2084_v24 = vmul.f32 %v4150_v25, %v1996_v21  ;;  %v2178_v28 = vmul.f32 %v4160_v27, %v1996_v21  ;;  %v2423_v29 = vmul.f32 %v4155_v26, %v1996_v21  ;;  %v2592_v30 = vmul.f32 %v4181_v32, %v1996_v21 }
 0x788   : > { %v3688_v21 = vpack.c.bf16 %v2764_v20, %v2763_v18  ;;  %v2966_v18 = vld [vmem:[%s4103_s15 + $0x70] sm:$0xff] }
 0x789   : > { %3566 = vmatmul.mubr.msk.f32.vlgmr.msra.gmra.mrb[10].mxu0 %vm1006_vm1, %v2084_v24  ;;  %3571 = vmatmul.mubr.msk.f32.vlgmr.msra.gmra.mrb[8].mxu1 %vm1006_vm1, %v2178_v28 }
 0x78a   : > { %3584 = vmatpush3.xpose.msk.msra.mxu1 %vm1006_vm1, %v4288_v17  ;;  %3585 = vmatprep.mubr.msk.f32.mxu1 %vm3859_vm2, %v3860_v10 }
 0x78b   : > { %3593 = vmatprep.subr.mxu1 %v3860_v10  ;;  %3575 = vmatprep.mubr.msk.f32.mxu0 %vm3859_vm2, %v3860_v10 }
 0x78d   : > { %3586 = vmatmul.mubr.msk.f32.vlgmr.msra.gmra.mrb[10].mxu1 %vm1006_vm1, %v2423_v29 }
 0x78e   : > { %3594 = vmatpush3.xpose.msk.msra.mxu1 %vm1006_vm1, %v4288_v17  ;;  %3595 = vmatprep.mubr.msk.f32.mxu1 %vm3859_vm2, %v3860_v10 }
 0x78f   : > { %3684 = vmatprep.subr.bf16.mxu1 %v3858_v7 }
 0x791   : > { %3596 = vmatmul.mubr.msk.f32.vlgmr.msra.gmra.mrb[12].mxu1 %vm1006_vm1, %v2592_v30 }
 0x792   : > { %3611 = vmatprep.mubr.msk.f32.mxu1 %vm3859_vm2, %v3860_v10  ;;  %3686 = vmatpush3.bf16.msra.mxu1 %v3685_v19  ;;  %v2967_v19 = vld [vmem:[%s4103_s15 + $0x78] sm:$0xff] }
 0x793   : > { %3687 = vmatprep.subr.bf16.mxu1 %v3858_v7  ;;  %v3718_v20 = vpack.c.bf16 %v2967_v19, %v2966_v18 }
 0x796   : > { %3689 = vmatpush3.bf16.msra.mxu1 %v3688_v21  ;;  %v3388_v21 = vld [vmem:[%s982_s13] ss:$0 sm:$0xff] }
 0x797   : > { %3696 = vmatprep.subr.bf16.mxu1 %v3858_v7 }
 0x85c   : > { %v2157_v31 = vpop.f32.mrb[10].mxu0  ;;  %v2248_v33 = vpop.f32.mrb[8].mxu1 }
 0x85d   : > { %v2161_v23 = vmul.f32 0.35355338, %v2157_v31  ;;  %v2252_v35 = vmul.f32 0.35355338, %v2248_v33  ;;  %v3567_v36 = vpop.f32.mrb[11].mxu0  ;;  %v3572_v37 = vpop.f32.mrb[9].mxu1 }
 0x85f   : > { %v2253_v38 = vadd.f32 %v2252_v35, %v2083_v34  ;;  %v2162_v39 = vadd.f32 %v2161_v23, %v2083_v34 }
 0x860   : > { %v2493_v40 = vpop.f32.mrb[10].mxu1 }
 0x861   : > { %v2497_v41 = vmul.f32 0.35355338, %v2493_v40  ;;  %v3587_v42 = vpop.f32.mrb[11].mxu1  ;;  %v2254_v43 = vsel %vm1195_vm13, %v2253_v38, -inf  ;;  %v2163_v44 = vsel %vm1195_vm13, %v2162_v39, -inf }
 0x862   : > { %2255 = vmax.xlane.f32.xlu1 %v2254_v43  ;;  %2164 = vmax.xlane.f32.xlu0 %v2163_v44  ;;  %v3386_v44 = vld [vmem:[%s4540_s7] ss:$0 sm:$0xff] }
 0x863   : > { %v2498_v45 = vadd.f32 %v2497_v41, %v2083_v34 }
 0x864   : > { %v2662_v46 = vpop.f32.mrb[12].mxu1 }
 0x865   : > { %v2666_v47 = vmul.f32 0.35355338, %v2662_v46  ;;  %v3597_v48 = vpop.f32.mrb[13].mxu1  ;;  %v2499_v49 = vsel %vm1195_vm13, %v2498_v45, -inf }
 0x866   : > { %2500 = vmax.xlane.f32.xlu0 %v2499_v49  ;;  %v2863_v49 = vld [vmem:[%s4089_s11] sm:$0xff] }
 0x867   : > { %v2667_v50 = vadd.f32 %v2666_v47, %v2083_v34 }
 0x869   : > { %v2668_v51 = vsel %vm1195_vm13, %v2667_v50, -inf }
 0x86a   : > { %2669 = vmax.xlane.f32.xlu0 %v2668_v51 }
 0x873   : > { %2265 = vrot.lane.b32.xlu1 %v4160_v27, %s3863_s4 }
 0x877   : > { %2510 = vrot.lane.b32.xlu1 %v4155_v26, %s3863_s4 }
 0x87b   : > { %2679 = vrot.lane.b32.xlu1 %v4181_v32, %s3863_s4 }
 0x880   : > { %2174 = vrot.lane.b32.xlu0 %v4150_v25, %s3863_s4 }
 0x8ef   : > { %v2256_v52 = vpop.xlane.xlu1 %2255  ;;  %v2165_v53 = vpop.xlane.xlu0 %2164 }
 0x8f0   : > { %v2257_v55 = vsub.f32 %v2253_v38, %v2256_v52  ;;  %v2166_v56 = vsub.f32 %v2162_v39, %v2165_v53  ;;  %v2866_v52 = vld [vmem:[%s4089_s11 + $0x18] sm:$0xff] }
 0x8f2   : > { %v2258_v57 = vmul.f32 1.442695, %v2257_v55  ;;  %v2167_v58 = vmul.f32 1.442695, %v2166_v56  ;;  %v2952_v55 = vld [vmem:[%s4103_s15] sm:$0xff]  ;;  %v2953_v56 = vld [vmem:[%s4103_s15 + $0x8] sm:$0xff] }
 0x8f3   : > { %v2501_v59 = vpop.xlane.xlu0 %2500  ;;  %v2266_v5 = vpop.permute.xlu1 %2265 }
 0x8f4   : > { %3798 = vpow2.f32 %v2258_v57  ;;  %v2502_v60 = vsub.f32 %v2498_v45, %v2501_v59  ;;  %v2268_v8 = vmul.f32 %v2266_v5, %v4288_v17  ;;  %v2954_v57 = vld [vmem:[%s4103_s15 + $0x10] sm:$0xff]  ;;  %v2955_v59 = vld [vmem:[%s4103_s15 + $0x18] sm:$0xff] }
 0x8f5   : > { %3800 = vpow2.f32 %v2167_v58  ;;  %v3697_v58 = vpack.c.bf16 %v2953_v56, %v2952_v55 }
 0x8f6   : > { %v2503_v61 = vmul.f32 1.442695, %v2502_v60  ;;  %v3700_v60 = vpack.c.bf16 %v2955_v59, %v2954_v57 }
 0x8f7   : > { %v2670_v62 = vpop.xlane.xlu0 %2669  ;;  %v2511_v6 = vpop.permute.xlu1 %2510 }
 0x8f8   : > { %3802 = vpow2.f32 %v2503_v61  ;;  %v2671_v27 = vsub.f32 %v2667_v50, %v2670_v62  ;;  %v2513_v9 = vmul.f32 %v2511_v6, %v4288_v17  ;;  %v2864_v50 = vld [vmem:[%s4089_s11 + $0x8] sm:$0xff]  ;;  %v2956_v61 = vld [vmem:[%s4103_s15 + $0x20] sm:$0xff] }
 0x8f9   : > { %v3691_v51 = vpack.c.bf16 %v2864_v50, %v2863_v49  ;;  %v2957_v62 = vld [vmem:[%s4103_s15 + $0x28] sm:$0xff]  ;;  %v2960_v6 = vld [vmem:[%s4103_s15 + $0x40] sm:$0xff] }
 0x8fa   : > { %v2672_v63 = vmul.f32 1.442695, %v2671_v27  ;;  %v3703_v27 = vpack.c.bf16 %v2957_v62, %v2956_v61 }
 0x8fb   : > { %v2680_v11 = vpop.permute.xlu1 %2679  ;;  %v2175_v13 = vpop.permute.xlu0 %2174 }
 0x8fc   : > { %3804 = vpow2.f32 %v2672_v63  ;;  %v2682_v12 = vmul.f32 %v2680_v11, %v4288_v17  ;;  %v2177_v14 = vmul.f32 %v2175_v13, %v4288_v17  ;;  %v2962_v11 = vld [vmem:[%s4103_s15 + $0x50] sm:$0xff] }
 0x8fe   : > { %v3799_v26 = vpop.eup %3798 }
 0x8ff   : > { %v3801_v32 = vpop.eup %3800  ;;  %v2260_v25 = vsel %vm1195_vm13, %v3799_v26, 0.0 }
 0x900   : > { %2261 = vadd.xlane.f32.xlu1 %v2260_v25  ;;  %v2169_v0 = vsel %vm1195_vm13, %v3801_v32, 0.0  ;;  %v3387_v25 = vld [vmem:[%s974_s10] ss:$0 sm:$0xff] }
 0x901   : > { %2170 = vadd.xlane.f32.xlu0 %v2169_v0 }
 0x902   : > { %v3803_v2 = vpop.eup %3802 }
 0x903   : > { %v2505_v1 = vsel %vm1195_vm13, %v3803_v2, 0.0 }
 0x905   : > { %2506 = vadd.xlane.f32.xlu0 %v2505_v1 }
 0x906   : > { %v3805_v3 = vpop.eup %3804 }
 0x907   : > { %v2674_v4 = vsel %vm1195_vm13, %v3805_v3, 0.0 }
 0x909   : > { %2675 = vadd.xlane.f32.xlu0 %v2674_v4  ;;  %v2959_v4 = vld [vmem:[%s4103_s15 + $0x38] sm:$0xff] }
 0x911   : > { %2270 = vrot.lane.b32.xlu1 %v2268_v8, %s3861_s21  ;;  %v2961_v8 = vld [vmem:[%s4103_s15 + $0x48] sm:$0xff] }
 0x915   : > { %2515 = vrot.lane.b32.xlu1 %v2513_v9, %s3861_s21  ;;  %v3709_v9 = vpack.c.bf16 %v2961_v8, %v2960_v6 }
 0x919   : > { %2684 = vrot.lane.b32.xlu1 %v2682_v12, %s3861_s21  ;;  %v2963_v12 = vld [vmem:[%s4103_s15 + $0x58] sm:$0xff] }
 0x91a   : > { %v3712_v13 = vpack.c.bf16 %v2963_v12, %v2962_v11 }
 0x91f   : > { %2347 = vrot.lane.b32.xlu0 %v2177_v14, %s3861_s21  ;;  %v2964_v14 = vld [vmem:[%s4103_s15 + $0x60] sm:$0xff] }
 0x920   : > { %v3715_v16 = vpack.c.bf16 %v2965_v15, %v2964_v14 }
 0x98d   : > { %v2262_v22 = vpop.xlane.xlu1 %2261 }
 0x98e   : > { %3806 = vrcp.f32 %v2262_v22  ;;  %v2171_v24 = vpop.xlane.xlu0 %2170 }
 0x98f   : > { %3808 = vrcp.f32 %v2171_v24 }
 0x991   : > { %v2271_v28 = vpop.permute.xlu1 %2270 }
 0x992   : > { %v2507_v29 = vpop.xlane.xlu0 %2506  ;;  %3574 = vmatpush3.msra.mxu0 %v2271_v28 }
 0x993   : > { %3578 = vmatprep.subr.mxu0 %v3860_v10  ;;  %3810 = vrcp.f32 %v2507_v29 }
 0x995   : > { %v2516_v35 = vpop.permute.xlu1 %2515 }
 0x996   : > { %v2676_v17 = vpop.xlane.xlu0 %2675 }
 0x997   : > { %3812 = vrcp.f32 %v2676_v17 }
 0x998   : > { %v3807_v30 = vpop.eup %3806 }
 0x999   : > { %v2264_v31 = vmul.f32 %v3807_v30, %v3799_v26  ;;  %v3809_v34 = vpop.eup %3808  ;;  %v2685_v38 = vpop.permute.xlu1 %2684 }
 0x99a   : > { %v2348_v33 = vpop.permute.xlu0 %2347  ;;  %v2173_v23 = vmul.f32 %v3809_v34, %v3801_v32  ;;  %v3390_v34 = vld [vmem:[%s990_s9] ss:$0 sm:$0xff] }
 0x99b   : > { %3576 = vmatmul.mubr.msk.f32.vlgmr.msra.gmra.mrb[12].mxu0 %vm1195_vm13, %v2264_v31 }
 0x99c   : > { %3579 = vmatpush3.msra.mxu0 %v2348_v33  ;;  %3580 = vmatprep.mubr.msk.f32.mxu0 %vm3859_vm2, %v3860_v10 }
 0x99d   : > { %3588 = vmatprep.subr.mxu0 %v3860_v10  ;;  %v3811_v36 = vpop.eup %3810 }
 0x99e   : > { %v2509_v37 = vmul.f32 %v3811_v36, %v3803_v2 }
 0x9a1   : > { %v3813_v39 = vpop.eup %3812 }
 0x9a2   : > { %v2678_v40 = vmul.f32 %v3813_v39, %v3805_v3  ;;  %v2958_v3 = vld [vmem:[%s4103_s15 + $0x30] sm:$0xff] }
 0x9a3   : > { %3581 = vmatmul.mubr.msk.f32.vlgmr.msra.gmra.mrb[12].mxu0 %vm1195_vm13, %v2173_v23  ;;  %v3706_v5 = vpack.c.bf16 %v2959_v4, %v2958_v3 }
 0x9a4   : > { %3589 = vmatpush3.msra.mxu0 %v2516_v35  ;;  %3590 = vmatprep.mubr.msk.f32.mxu0 %vm3859_vm2, %v3860_v10 }
 0x9a5   : > { %3598 = vmatprep.subr.mxu0 %v3860_v10 }
 0x9ab   : > { %3591 = vmatmul.mubr.msk.f32.vlgmr.msra.gmra.mrb[12].mxu0 %vm1195_vm13, %v2509_v37 }
 0x9ac   : > { %3599 = vmatpush3.msra.mxu0 %v2685_v38  ;;  %3600 = vmatprep.mubr.msk.f32.mxu0 %vm3859_vm2, %v3860_v10 }
 0x9ad   : > { %3690 = vmatprep.subr.bf16.mxu0 %v3858_v7 }
 0x9b3   : > { %3601 = vmatmul.mubr.msk.f32.vlgmr.msra.gmra.mrb[12].mxu0 %vm1195_vm13, %v2678_v40 }
 0x9b4   : > { %3622 = vmatprep.mubr.msk.f32.mxu0 %vm3859_vm2, %v3860_v10  ;;  %3692 = vmatpush3.bf16.msra.mxu0 %v3691_v51 }
 0x9b5   : > { %3693 = vmatprep.subr.bf16.mxu0 %v3858_v7 }
 0xa86   : > { %v2756_v41 = vpop.f32.mrb[12].mxu0 }
 0xa87   : > { %v3602_v42 = vpop.f32.mrb[13].mxu0  ;;  %3612 = vmatmul.mubr.msk.f32.vlgmr.msra.gmra.mrb[14].mxu1 %vm1006_vm1, %v2756_v41 }
 0xa88   : > { %3657 = vmatprep.mubr.msk.f32.mxu1 %vm3859_vm2, %v3860_v10  ;;  %3698 = vmatpush3.bf16.msra.mxu1 %v3697_v58 }
 0xa89   : > { %3699 = vmatprep.subr.bf16.mxu1 %v3858_v7 }
 0xa8c   : > { %3701 = vmatpush3.bf16.msra.mxu1 %v3700_v60 }
 0xa8d   : > { %3702 = vmatprep.subr.bf16.mxu1 %v3858_v7 }
 0xa90   : > { %3704 = vmatpush3.bf16.msra.mxu1 %v3703_v27 }
 0xa91   : > { %3705 = vmatprep.subr.bf16.mxu1 %v3858_v7 }
 0xa94   : > { %3707 = vmatpush3.bf16.msra.mxu1 %v3706_v5 }
 0xa95   : > { %3708 = vmatprep.subr.bf16.mxu1 %v3858_v7 }
 0xa98   : > { %3710 = vmatpush3.bf16.msra.mxu1 %v3709_v9 }
 0xa99   : > { %3711 = vmatprep.subr.bf16.mxu1 %v3858_v7 }
 0xa9c   : > { %3713 = vmatpush3.bf16.msra.mxu1 %v3712_v13 }
 0xa9d   : > { %3714 = vmatprep.subr.bf16.mxu1 %v3858_v7 }
 0xaa0   : > { %3716 = vmatpush3.bf16.msra.mxu1 %v3715_v16 }
 0xaa1   : > { %3717 = vmatprep.subr.bf16.mxu1 %v3858_v7 }
 0xaa4   : > { %3719 = vmatpush3.bf16.msra.mxu1 %v3718_v20 }
 0xb5a   : > { %v2834_v43 = vpop.f32.mrb[14].mxu1 }
 0xb5b   : > { %v2838_v45 = vadd.f32 %v2834_v43, %v4249_v54  ;;  %v3613_v46 = vpop.f32.mrb[15].mxu1  ;;  %v2865_v54 = vld [vmem:[%s4089_s11 + $0x10] sm:$0xff] }
 0xb5c   : > { %v3694_v53 = vpack.c.bf16 %v2866_v52, %v2865_v54 }
 0xb5d   : > { %v4379_v47 = vadd.f32 %v3386_v44, %v2838_v45 }
 0xb5e   : > { %3695 = vmatpush3.bf16.msra.mxu0 %v3694_v53 }
 0xb5f   : > { %v2848_v48 = vmul.f32 %v4379_v47, %v4379_v47  ;;  %v2859_v0 = vmul.f32 %v3387_v25, %v4379_v47 }
 0xb61   : > { %v2849_v10 = vsel %vm1006_vm1, %v2848_v48, 0.0 }
 0xb62   : > { %2850 = vadd.xlane.f32.xlu1 %v2849_v10 }
 0xbef   : > { %v2851_v63 = vpop.xlane.xlu1 %2850 }
 0xbf0   : > { %v2852_v26 = vmul.f32 0.03125, %v2851_v63 }
 0xbf2   : > { %v2860_v32 = vadd.f32 1e-05, %v2852_v26 }
 0xbf4   : > { %3814 = vrsqrt.f32 %v2860_v32 }
 0xbfe   : > { %v3815_v2 = vpop.eup %3814 }
 0xbff   : > { %v2862_v1 = vmul.f32 %v3815_v2, %v2859_v0 }
 0xc01   : > { %3623 = vmatmul.mubr.msk.f32.vlgmr.msra.gmra.mrb[14].mxu0 %vm1006_vm1, %v2862_v1 }
 0xcd4   : > { %v2943_v22 = vpop.f32.mrb[14].mxu0 }
 0xcd5   : > { %v2944_v24 = vadd.f32 %v3388_v21, %v2943_v22  ;;  %v3624_v28 = vpop.f32.mrb[15].mxu0 }
 0xcd7   : > { %v2948_v29 = vmul.f32 0.70710677, %v2944_v24  ;;  %v2947_v30 = vmul.f32 0.5, %v2944_v24 }
 0xcd9   : > { %3816 = verf.f32 %v2948_v29 }
 0xce3   : > { %v3817_v17 = vpop.eup %3816 }
 0xce4   : > { %v2950_v31 = vadd.f32 1.0, %v3817_v17 }
 0xce6   : > { %v2951_v7 = vmul.f32 %v2950_v31, %v2947_v30 }
 0xce8   : > { %3658 = vmatmul.mubr.f32.vlgmr.msra.gmra.mrb[16].mxu1 %v2951_v7 }
 0xdbb   : > { %v3034_v33 = vpop.f32.mrb[16].mxu1 }
 0xdbc   : > { %v3038_v23 = vadd.f32 %v3034_v33, %v4379_v47  ;;  %v3659_v35 = vpop.f32.mrb[17].mxu1 }
 0xdbe   : > { %v3046_v36 = vadd.f32 %v3390_v34, %v3038_v23 }
 0xdc0   : > { %3047 = vst.msk [vmem:[%s4109_s3] sm:$0xff] %vm1006_vm1, %v3046_v36 }
 0xdc1 PF: > { %s4544_s13 = sld [smem:[#allocation5_spill]]  ;;  %s4545_s2 = sld [smem:[#allocation3_spill]] }
 0xdc2   : > { %s4546_s25 = sld [smem:[#allocation4_spill]]  ;;  %s4547_s26 = sld [smem:[#allocation6_spill]] }
 0xdc3   : > { %s4548_s27 = sld [smem:[#allocation7_spill]] }
 0xdc7   : > { %s31_s3 = sadd.s32 1, %s4544_s13  }
 0xdc8   : > { %p28_p8 = scmp.ge.s32.totalorder %s31_s3, 6  }
 0xdca   :  { %30 = sbr.rel (!%p28_p8) target bundleno = 21 (0x15), region = 198 }

</bundles_post_ra>
